<compile_context>
chip_gen: v6e
topology: v6e:2x2x1
jax: 0.10.0
libtpu: 0.0.40
codegen_flags: <defaults>
</compile_context>

<pallas_src>
import functools

import numpy as np
import jax
import jax.numpy as jnp
from jax.experimental import pallas as pl
from jax.experimental.pallas import tpu as pltpu


# ------------------------------ Pallas kernel --------------------------------

def _lenet_fused_kernel(x_ref, t1_ref, b1_ref, t2_ref, b2_ref,
                        wf1_ref, bf1_ref, wf2_ref, bf2_ref, wf3_ref, bf3_ref,
                        o_ref, scr1, p1s, scr2, *, B):
    """Whole LeNet forward for one batch tile of B images, VMEM-resident.

    Layouts (per tile):
      x_ref  : (28, B, 84)    rows = input h, middle = batch, lanes = (w, cin)
      t1_ref : (5, 84, 144)   per-kh Toeplitz conv1 weights, out lanes (ow1, c1)
      t2_ref : (5, 138, 128)  per-kh Toeplitz conv2 weights over the w-maxed
                              conv1 lane space (pool1 w-compaction folded in)
      wf1_ref: (4, 112, 128)  fc1 weights split by pooled-h row over the
                              w-maxed conv2 lane space (pool2 w-compaction and
                              torch (c,h,w) flatten order folded in)
      o_ref  : (B, 128)       logits padded to 128 lanes (sliced to 10 outside)
      scr1   : (24, B, 138)   conv1 pre-activation after the w-direction max
      p1s    : (12, B, 138)   pooled conv1 activations (bf16)
      scr2   : (8, B, 128)    conv2 pre-activation rows (oh2, b)
    """
    f32 = jnp.float32
    bf16 = jnp.bfloat16

    # ---- conv1 (valid, stride 1): 5 accumulated MXU matmuls, batch folded
    #      into M (rows ordered (h, b); B % 8 == 0 makes the reshape free). ---
    acc = jnp.dot(x_ref[0:24, :, :].reshape(24 * B, 84), t1_ref[0],
                  preferred_element_type=f32)
    for kh in range(1, 5):
        acc = acc + jnp.dot(x_ref[kh:kh + 24, :, :].reshape(24 * B, 84),
                            t1_ref[kh], preferred_element_type=f32)
    z1 = acc + b1_ref[...]                                   # (24B, 144)

    # w-direction half of the 2x2/2 max pool (adjacent ow pairs).  The
    # "keep every other pair" compaction is folded into t2's rows, so this is
    # a pure VPU max -- no selection matmul, no strided access.
    u1 = jnp.maximum(z1[:, : 23 * 6], z1[:, 6:])             # (24B, 138)
    scr1[...] = u1.reshape(24, B, 138)

    # h-direction half of the pool + ReLU (relu(max(.)) == max(relu(.))).
    for j in range(12):
        r = jnp.maximum(scr1[2 * j, :, :], scr1[2 * j + 1, :, :])   # (B, 138)
        p1s[j, :, :] = jnp.maximum(r, 0.0).astype(bf16)

    # ---- conv2: 5 accumulated matmuls on (oh2, b)-folded rows ---------------
    acc2 = jnp.dot(p1s[0:8, :, :].reshape(8 * B, 138), t2_ref[0],
                   preferred_element_type=f32)
    for kh in range(1, 5):
        acc2 = acc2 + jnp.dot(p1s[kh:kh + 8, :, :].reshape(8 * B, 138),
                              t2_ref[kh], preferred_element_type=f32)
    scr2[...] = (acc2 + b2_ref[...]).reshape(8, B, 128)      # rows (oh2, b)

    # ---- pool2 + ReLU + fc1: the w-compaction and torch's (c, h, w) flatten
    #      order are folded into wf1's rows -> fc1 is 4 accumulated matmuls. --
    h1 = None
    for j in range(4):
        m = jnp.maximum(scr2[2 * j, :, :], scr2[2 * j + 1, :, :])   # (B, 128)
        mw = jnp.maximum(m[:, :112], m[:, 16:])                     # (B, 112)
        a = jnp.maximum(mw, 0.0).astype(bf16)
        d = jnp.dot(a, wf1_ref[j], preferred_element_type=f32)
        h1 = d if h1 is None else h1 + d
    h1 = jnp.maximum(h1 + bf1_ref[...], 0.0).astype(bf16)    # (B, 128)

    # ---- fc2 -> fc3 (zero-padded to 128 lanes -> lane-dense stores) ---------
    h2 = jnp.dot(h1, wf2_ref[...], preferred_element_type=f32)
    h2 = jnp.maximum(h2 + bf2_ref[...], 0.0).astype(bf16)
    o = jnp.dot(h2, wf3_ref[...], preferred_element_type=f32) + bf3_ref[...]
    o_ref[...] = o


# ------------------------------- wrapper -------------------------------------

def _round_up(x, m):
    return ((x + m - 1) // m) * m


def _pick_batch_tile(n):
    # 128 rows fills the v5e MXU M dim; bump to 256 for v6e/v7x large batches.
    if n >= 128:
        return 128
    return max(8, _round_up(n, 8))


def _fused_net(kp, x_hbw, bt):
    """x_hbw: (28, n_pad, 84) bf16 -> logits (n_pad, 128) f32."""
    n_pad = x_hbw.shape[1]
    grid = (n_pad // bt,)
    kern = functools.partial(_lenet_fused_kernel, B=bt)

    flops = int(n_pad) * 2 * (24 * 84 * 144 * 5 + 8 * 138 * 128 * 5
                              + 4 * 112 * 128 + 2 * 128 * 128)
    w_names = ("t1", "b1", "t2", "b2", "wf1", "bf1", "wf2", "bf2", "wf3", "bf3")
    w_bytes = sum(int(kp[k].size) * kp[k].dtype.itemsize for k in w_names)
    bytes_accessed = int(x_hbw.size) * 2 + int(n_pad) * 128 * 4 + w_bytes

    return pl.pallas_call(
        kern,
        grid=grid,
        out_shape=jax.ShapeDtypeStruct((n_pad, 128), jnp.float32),
        in_specs=[
            pl.BlockSpec((28, bt, 84), lambda i: (0, i, 0)),
            pl.BlockSpec((5, 84, 144), lambda i: (0, 0, 0)),
            pl.BlockSpec((1, 144), lambda i: (0, 0)),
            pl.BlockSpec((5, 138, 128), lambda i: (0, 0, 0)),
            pl.BlockSpec((1, 128), lambda i: (0, 0)),
            pl.BlockSpec((4, 112, 128), lambda i: (0, 0, 0)),
            pl.BlockSpec((1, 128), lambda i: (0, 0)),
            pl.BlockSpec((128, 128), lambda i: (0, 0)),
            pl.BlockSpec((1, 128), lambda i: (0, 0)),
            pl.BlockSpec((128, 128), lambda i: (0, 0)),
            pl.BlockSpec((1, 128), lambda i: (0, 0)),
        ],
        out_specs=pl.BlockSpec((bt, 128), lambda i: (i, 0)),
        scratch_shapes=[
            pltpu.VMEM((24, bt, 138), jnp.float32),
            pltpu.VMEM((12, bt, 138), jnp.bfloat16),
            pltpu.VMEM((8, bt, 128), jnp.float32),
        ],
        compiler_params=pltpu.CompilerParams(
            dimension_semantics=("parallel",),
            vmem_limit_bytes=32 * 1024 * 1024),
        cost_estimate=pl.CostEstimate(flops=flops, transcendentals=0,
                                      bytes_accessed=bytes_accessed),
    )(x_hbw, kp["t1"], kp["b1"], kp["t2"], kp["b2"],
      kp["wf1"], kp["bf1"], kp["wf2"], kp["bf2"], kp["wf3"], kp["bf3"])


def net_forward(kp, x_nchw):
    n = x_nchw.shape[0]
    bt = _pick_batch_tile(n)
    n_pad = _round_up(n, bt)
    # Layout: rows = input h (per-kh conv slices become leading-dim ref
    # slices), middle = batch, lanes = (w, cin).  Cast to bf16 for the MXU.
    # This is a single cheap relayout of the (small) input tensor.
    x = jnp.transpose(x_nchw, (2, 0, 3, 1)).reshape(28, n, 84)
    x = x.astype(jnp.bfloat16)
    if n_pad != n:
        x = jnp.pad(x, ((0, 0), (0, n_pad - n), (0, 0)))
    logits = _fused_net(kp, x, bt)                           # (n_pad, 128)
    return logits[:n, :10]


# ---------------------- host-side parameter preparation ----------------------

def _toeplitz_weights(w_hwio, width):
    """Per-kh lowered conv weights: T[kh, (w,ci), (ow,co)] = w[kh, w-ow, ci, co]."""
    k, _, cin, cout = w_hwio.shape
    ow_n = width - k + 1
    T = np.zeros((k, width * cin, ow_n * cout), np.float32)
    for kh in range(k):
        for ow in range(ow_n):
            for kw in range(k):
                wi = ow + kw
                T[kh, wi * cin:(wi + 1) * cin,
                  ow * cout:(ow + 1) * cout] = w_hwio[kh, kw]
    return T


def _toeplitz_conv2_from_pooled(w_hwio):
    """conv2 per-kh Toeplitz over the w-maxed conv1 lane space (23*6 = 138).

    Only even lane groups (w1m = 2*(ow+kw)) carry pooled data; odd groups are
    zero rows, which folds the pool1 w-compaction into this weight matrix.
    """
    k, _, cin, cout = w_hwio.shape          # (5, 5, 6, 16)
    W1M, OW = 23, 8
    T = np.zeros((k, W1M * cin, OW * cout), np.float32)
    for kh in range(k):
        for ow in range(OW):
            for kw in range(k):
                w1m = 2 * (ow + kw)
                T[kh, w1m * cin:(w1m + 1) * cin,
                  ow * cout:(ow + 1) * cout] = w_hwio[kh, kw]
    return T


def _fc1_lowered(w_fc1_torch):
    """fc1 weights split by pooled-h row j over the w-maxed conv2 lane space.

    Input lanes are (w2m*16 + c2), w2m in 0..6; only even w2m = 2*wp carry
    pooled data (pool2 w-compaction folded in).  torch's view(-1, 16*4*4)
    flatten order (c, h, w) is matched here.  Output cols padded 120 -> 128.
    """
    W = np.zeros((4, 112, 128), np.float32)
    for j in range(4):
        for wp in range(4):
            for c in range(16):
                W[j, (2 * wp) * 16 + c, :120] = w_fc1_torch[c * 16 + j * 4 + wp, :]
    return W


def prepare_params(params):
    """One-time host-side conversion of raw params into kernel-ready constants."""
    p = {k: np.asarray(v, np.float32) for k, v in params.items()}
    kp = {}
    kp["t1"] = jnp.asarray(_toeplitz_weights(p["w1"], width=28), jnp.bfloat16)
    kp["b1"] = jnp.asarray(np.tile(p["b1"], 24)[None, :])              # (1, 144)
    kp["t2"] = jnp.asarray(_toeplitz_conv2_from_pooled(p["w2"]), jnp.bfloat16)
    kp["b2"] = jnp.asarray(np.tile(p["b2"], 8)[None, :])               # (1, 128)
    kp["wf1"] = jnp.asarray(_fc1_lowered(p["w_fc1"]), jnp.bfloat16)    # (4,112,128)
    bf1 = np.zeros((1, 128), np.float32); bf1[0, :120] = p["b_fc1"]
    kp["bf1"] = jnp.asarray(bf1)
    wf2 = np.zeros((128, 128), np.float32); wf2[:120, :84] = p["w_fc2"]
    kp["wf2"] = jnp.asarray(wf2, jnp.bfloat16)
    bf2 = np.zeros((1, 128), np.float32); bf2[0, :84] = p["b_fc2"]
    kp["bf2"] = jnp.asarray(bf2)
    wf3 = np.zeros((128, 128), np.float32); wf3[:84, :10] = p["w_fc3"]
    kp["wf3"] = jnp.asarray(wf3, jnp.bfloat16)
    bf3 = np.zeros((1, 128), np.float32); bf3[0, :10] = p["b_fc3"]
    kp["bf3"] = jnp.asarray(bf3)
    return kp


def init_params(key):
    """Raw parameters (equivalent layouts to the torch module)."""
    ks = jax.random.split(key, 10)

    def u(k, shape, fan_in):
        bound = 1.0 / np.sqrt(float(fan_in))
        return jax.random.uniform(k, shape, jnp.float32, -bound, bound)

    return {
        "w1": u(ks[0], (5, 5, 3, 6), 5 * 5 * 3),        # conv1 (HWIO)
        "b1": u(ks[1], (6,), 5 * 5 * 3),
        "w2": u(ks[2], (5, 5, 6, 16), 5 * 5 * 6),       # conv2 (HWIO)
        "b2": u(ks[3], (16,), 5 * 5 * 6),
        "w_fc1": u(ks[4], (16 * 4 * 4, 120), 256),      # rows in torch (c,h,w) order
        "b_fc1": u(ks[5], (120,), 256),
        "w_fc2": u(ks[6], (120, 84), 120),
        "b_fc2": u(ks[7], (84,), 120),
        "w_fc3": u(ks[8], (84, 10), 84),
        "b_fc3": u(ks[9], (10,), 84),
    }


# ------------------------------ reference ------------------------------------

def net_reference(params, x_nchw):
    """Pure-JAX reference with identical semantics (validation only)."""
    hi = jax.lax.Precision.HIGHEST
    x = jnp.transpose(x_nchw, (0, 2, 3, 1))
    for wk, bk in (("w1", "b1"), ("w2", "b2")):
        x = jax.lax.conv_general_dilated(
            x, params[wk], (1, 1), "VALID",
            dimension_numbers=("NHWC", "HWIO", "NHWC"), precision=hi)
        x = jnp.maximum(x + params[bk], 0.0)
        x = jax.lax.reduce_window(x, -jnp.inf, jax.lax.max,
                                  (1, 2, 2, 1), (1, 2, 2, 1), "VALID")
    n = x.shape[0]
    x = jnp.transpose(x, (0, 3, 1, 2)).reshape(n, 16 * 4 * 4)   # torch view order
    x = jnp.maximum(jnp.dot(x, params["w_fc1"], precision=hi) + params["b_fc1"], 0.0)
    x = jnp.maximum(jnp.dot(x, params["w_fc2"], precision=hi) + params["b_fc2"], 0.0)
    return jnp.dot(x, params["w_fc3"], precision=hi) + params["b_fc3"]


if __name__ == "__main__":
    key = jax.random.PRNGKey(0)
    pkey, xkey = jax.random.split(key)
    raw_params = init_params(pkey)
    kernel_params = prepare_params(raw_params)
    x = jax.random.normal(xkey, (2, 3, 28, 28), jnp.float32)    # batch=2, NCHW

    out = jax.block_until_ready(jax.jit(net_forward)(kernel_params, x))
    assert out.shape == (2, 10) and out.dtype == jnp.float32

    ref = jax.block_until_ready(jax.jit(net_reference)(raw_params, x))
    max_diff = float(jnp.max(jnp.abs(out - ref)))
    # bf16 MXU operands (perf-review item) vs. f32 HIGHEST reference -> 3e-2.
    assert bool(jnp.allclose(out, ref, atol=3e-2, rtol=3e-2)), (
        f"mismatch vs reference: max|diff|={max_diff}")
    print("KERNEL_OK")
</pallas_src>

<mosaic_0001>
module attributes {stable_mosaic.version = 11 : i64} {
  func.func @_lenet_fused_kernel(%arg0: i32, %arg1: memref<28x8x84xbf16, #tpu.memory_space<vmem>>, %arg2: memref<5x84x144xbf16, #tpu.memory_space<vmem>>, %arg3: memref<1x144xf32, #tpu.memory_space<vmem>>, %arg4: memref<5x138x128xbf16, #tpu.memory_space<vmem>>, %arg5: memref<1x128xf32, #tpu.memory_space<vmem>>, %arg6: memref<4x112x128xbf16, #tpu.memory_space<vmem>>, %arg7: memref<1x128xf32, #tpu.memory_space<vmem>>, %arg8: memref<128x128xbf16, #tpu.memory_space<vmem>>, %arg9: memref<1x128xf32, #tpu.memory_space<vmem>>, %arg10: memref<128x128xbf16, #tpu.memory_space<vmem>>, %arg11: memref<1x128xf32, #tpu.memory_space<vmem>>, %arg12: memref<8x128xf32, #tpu.memory_space<vmem>>, %arg13: memref<24x8x138xf32, #tpu.memory_space<vmem>>, %arg14: memref<12x8x138xbf16, #tpu.memory_space<vmem>>, %arg15: memref<8x8x128xf32, #tpu.memory_space<vmem>>) attributes {dimension_semantics = [#tpu.dimension_semantics<parallel>], iteration_bounds = array<i64: 1>, scalar_prefetch = 0 : i64, scratch_operands = 3 : i64, tpu.core_type = #tpu.core_type<tc>, window_params = [{transform_indices = @transform_0, window_bounds = array<i64: 28, 8, 84>}, {pipeline_mode = #tpu.pipeline_mode<synchronous>, transform_indices = @transform_1, window_bounds = array<i64: 5, 84, 144>}, {pipeline_mode = #tpu.pipeline_mode<synchronous>, transform_indices = @transform_2, window_bounds = array<i64: 1, 144>}, {pipeline_mode = #tpu.pipeline_mode<synchronous>, transform_indices = @transform_3, window_bounds = array<i64: 5, 138, 128>}, {pipeline_mode = #tpu.pipeline_mode<synchronous>, transform_indices = @transform_4, window_bounds = array<i64: 1, 128>}, {pipeline_mode = #tpu.pipeline_mode<synchronous>, transform_indices = @transform_5, window_bounds = array<i64: 4, 112, 128>}, {pipeline_mode = #tpu.pipeline_mode<synchronous>, transform_indices = @transform_6, window_bounds = array<i64: 1, 128>}, {pipeline_mode = #tpu.pipeline_mode<synchronous>, transform_indices = @transform_7, window_bounds = array<i64: 128, 128>}, {pipeline_mode = #tpu.pipeline_mode<synchronous>, transform_indices = @transform_8, window_bounds = array<i64: 1, 128>}, {pipeline_mode = #tpu.pipeline_mode<synchronous>, transform_indices = @transform_9, window_bounds = array<i64: 128, 128>}, {pipeline_mode = #tpu.pipeline_mode<synchronous>, transform_indices = @transform_10, window_bounds = array<i64: 1, 128>}, {transform_indices = @transform_11, window_bounds = array<i64: 8, 128>}]} {
    %c0 = arith.constant 0 : index
    %c0_0 = arith.constant 0 : index
    %c0_1 = arith.constant 0 : index
    %0 = vector.load %arg1[%c0, %c0_0, %c0_1] : memref<28x8x84xbf16, #tpu.memory_space<vmem>>, vector<24x8x84xbf16>
    %1 = vector.shape_cast %0 : vector<24x8x84xbf16> to vector<192x84xbf16>
    %c0_2 = arith.constant 0 : index
    %c0_3 = arith.constant 0 : index
    %c0_4 = arith.constant 0 : index
    %2 = vector.load %arg2[%c0_2, %c0_3, %c0_4] : memref<5x84x144xbf16, #tpu.memory_space<vmem>>, vector<1x84x144xbf16>
    %3 = vector.shape_cast %2 : vector<1x84x144xbf16> to vector<84x144xbf16>
    %cst = arith.constant dense<0.000000e+00> : vector<192x144xf32>
    %4 = tpu.matmul %1, %3, %cst {dimension_numbers = #tpu.dot_dimension_numbers<[1], [0], [0], [1], [0, 0, 1, 1], [], []>} : vector<192x84xbf16>, vector<84x144xbf16>, vector<192x144xf32> -> vector<192x144xf32>
    %c1 = arith.constant 1 : index
    %c0_5 = arith.constant 0 : index
    %c0_6 = arith.constant 0 : index
    %5 = vector.load %arg1[%c1, %c0_5, %c0_6] : memref<28x8x84xbf16, #tpu.memory_space<vmem>>, vector<24x8x84xbf16>
    %6 = vector.shape_cast %5 : vector<24x8x84xbf16> to vector<192x84xbf16>
    %c1_7 = arith.constant 1 : index
    %c0_8 = arith.constant 0 : index
    %c0_9 = arith.constant 0 : index
    %7 = vector.load %arg2[%c1_7, %c0_8, %c0_9] : memref<5x84x144xbf16, #tpu.memory_space<vmem>>, vector<1x84x144xbf16>
    %8 = vector.shape_cast %7 : vector<1x84x144xbf16> to vector<84x144xbf16>
    %cst_10 = arith.constant dense<0.000000e+00> : vector<192x144xf32>
    %9 = tpu.matmul %6, %8, %cst_10 {dimension_numbers = #tpu.dot_dimension_numbers<[1], [0], [0], [1], [0, 0, 1, 1], [], []>} : vector<192x84xbf16>, vector<84x144xbf16>, vector<192x144xf32> -> vector<192x144xf32>
    %10 = arith.addf %4, %9 : vector<192x144xf32>
    %c2 = arith.constant 2 : index
    %c0_11 = arith.constant 0 : index
    %c0_12 = arith.constant 0 : index
    %11 = vector.load %arg1[%c2, %c0_11, %c0_12] : memref<28x8x84xbf16, #tpu.memory_space<vmem>>, vector<24x8x84xbf16>
    %12 = vector.shape_cast %11 : vector<24x8x84xbf16> to vector<192x84xbf16>
    %c2_13 = arith.constant 2 : index
    %c0_14 = arith.constant 0 : index
    %c0_15 = arith.constant 0 : index
    %13 = vector.load %arg2[%c2_13, %c0_14, %c0_15] : memref<5x84x144xbf16, #tpu.memory_space<vmem>>, vector<1x84x144xbf16>
    %14 = vector.shape_cast %13 : vector<1x84x144xbf16> to vector<84x144xbf16>
    %cst_16 = arith.constant dense<0.000000e+00> : vector<192x144xf32>
    %15 = tpu.matmul %12, %14, %cst_16 {dimension_numbers = #tpu.dot_dimension_numbers<[1], [0], [0], [1], [0, 0, 1, 1], [], []>} : vector<192x84xbf16>, vector<84x144xbf16>, vector<192x144xf32> -> vector<192x144xf32>
    %16 = arith.addf %10, %15 : vector<192x144xf32>
    %c3 = arith.constant 3 : index
    %c0_17 = arith.constant 0 : index
    %c0_18 = arith.constant 0 : index
    %17 = vector.load %arg1[%c3, %c0_17, %c0_18] : memref<28x8x84xbf16, #tpu.memory_space<vmem>>, vector<24x8x84xbf16>
    %18 = vector.shape_cast %17 : vector<24x8x84xbf16> to vector<192x84xbf16>
    %c3_19 = arith.constant 3 : index
    %c0_20 = arith.constant 0 : index
    %c0_21 = arith.constant 0 : index
    %19 = vector.load %arg2[%c3_19, %c0_20, %c0_21] : memref<5x84x144xbf16, #tpu.memory_space<vmem>>, vector<1x84x144xbf16>
    %20 = vector.shape_cast %19 : vector<1x84x144xbf16> to vector<84x144xbf16>
    %cst_22 = arith.constant dense<0.000000e+00> : vector<192x144xf32>
    %21 = tpu.matmul %18, %20, %cst_22 {dimension_numbers = #tpu.dot_dimension_numbers<[1], [0], [0], [1], [0, 0, 1, 1], [], []>} : vector<192x84xbf16>, vector<84x144xbf16>, vector<192x144xf32> -> vector<192x144xf32>
    %22 = arith.addf %16, %21 : vector<192x144xf32>
    %c4 = arith.constant 4 : index
    %c0_23 = arith.constant 0 : index
    %c0_24 = arith.constant 0 : index
    %23 = vector.load %arg1[%c4, %c0_23, %c0_24] : memref<28x8x84xbf16, #tpu.memory_space<vmem>>, vector<24x8x84xbf16>
    %24 = vector.shape_cast %23 : vector<24x8x84xbf16> to vector<192x84xbf16>
    %c4_25 = arith.constant 4 : index
    %c0_26 = arith.constant 0 : index
    %c0_27 = arith.constant 0 : index
    %25 = vector.load %arg2[%c4_25, %c0_26, %c0_27] : memref<5x84x144xbf16, #tpu.memory_space<vmem>>, vector<1x84x144xbf16>
    %26 = vector.shape_cast %25 : vector<1x84x144xbf16> to vector<84x144xbf16>
    %cst_28 = arith.constant dense<0.000000e+00> : vector<192x144xf32>
    %27 = tpu.matmul %24, %26, %cst_28 {dimension_numbers = #tpu.dot_dimension_numbers<[1], [0], [0], [1], [0, 0, 1, 1], [], []>} : vector<192x84xbf16>, vector<84x144xbf16>, vector<192x144xf32> -> vector<192x144xf32>
    %28 = arith.addf %22, %27 : vector<192x144xf32>
    %c0_29 = arith.constant 0 : index
    %c0_30 = arith.constant 0 : index
    %29 = vector.load %arg3[%c0_29, %c0_30] : memref<1x144xf32, #tpu.memory_space<vmem>>, vector<1x144xf32>
    %30 = vector.broadcast %29 : vector<1x144xf32> to vector<192x144xf32>
    %31 = arith.addf %28, %30 : vector<192x144xf32>
    %32 = vector.extract_strided_slice %31 {offsets = [0, 0], sizes = [192, 138], strides = [1, 1]} : vector<192x144xf32> to vector<192x138xf32>
    %33 = vector.extract_strided_slice %31 {offsets = [0, 6], sizes = [192, 138], strides = [1, 1]} : vector<192x144xf32> to vector<192x138xf32>
    %34 = arith.maximumf %32, %33 : vector<192x138xf32>
    %35 = vector.shape_cast %34 : vector<192x138xf32> to vector<24x8x138xf32>
    %c0_31 = arith.constant 0 : index
    %c0_32 = arith.constant 0 : index
    %c0_33 = arith.constant 0 : index
    %36 = vector.load %arg13[%c0_31, %c0_32, %c0_33] : memref<24x8x138xf32, #tpu.memory_space<vmem>>, vector<24x8x138xf32>
    tpu.vector_store %arg13[%c0_31, %c0_32, %c0_33], %35 {strides = array<i32>} : memref<24x8x138xf32, #tpu.memory_space<vmem>>, vector<24x8x138xf32>,
    %c0_34 = arith.constant 0 : index
    %c0_35 = arith.constant 0 : index
    %c0_36 = arith.constant 0 : index
    %37 = vector.load %arg13[%c0_34, %c0_35, %c0_36] : memref<24x8x138xf32, #tpu.memory_space<vmem>>, vector<1x8x138xf32>
    %38 = vector.shape_cast %37 : vector<1x8x138xf32> to vector<8x138xf32>
    %c1_37 = arith.constant 1 : index
    %c0_38 = arith.constant 0 : index
    %c0_39 = arith.constant 0 : index
    %39 = vector.load %arg13[%c1_37, %c0_38, %c0_39] : memref<24x8x138xf32, #tpu.memory_space<vmem>>, vector<1x8x138xf32>
    %40 = vector.shape_cast %39 : vector<1x8x138xf32> to vector<8x138xf32>
    %41 = arith.maximumf %38, %40 : vector<8x138xf32>
    %cst_40 = arith.constant 0.000000e+00 : f32
    %42 = vector.broadcast %cst_40 : f32 to vector<8x138xf32>
    %43 = arith.maximumf %41, %42 : vector<8x138xf32>
    %44 = arith.truncf %43 : vector<8x138xf32> to vector<8x138xbf16>
    %c0_41 = arith.constant 0 : index
    %c0_42 = arith.constant 0 : index
    %c0_43 = arith.constant 0 : index
    %45 = vector.load %arg14[%c0_41, %c0_42, %c0_43] : memref<12x8x138xbf16, #tpu.memory_space<vmem>>, vector<1x8x138xbf16>
    %46 = vector.shape_cast %45 : vector<1x8x138xbf16> to vector<8x138xbf16>
    %47 = vector.shape_cast %44 : vector<8x138xbf16> to vector<1x8x138xbf16>
    tpu.vector_store %arg14[%c0_41, %c0_42, %c0_43], %47 {strides = array<i32>} : memref<12x8x138xbf16, #tpu.memory_space<vmem>>, vector<1x8x138xbf16>,
    %c2_44 = arith.constant 2 : index
    %c0_45 = arith.constant 0 : index
    %c0_46 = arith.constant 0 : index
    %48 = vector.load %arg13[%c2_44, %c0_45, %c0_46] : memref<24x8x138xf32, #tpu.memory_space<vmem>>, vector<1x8x138xf32>
    %49 = vector.shape_cast %48 : vector<1x8x138xf32> to vector<8x138xf32>
    %c3_47 = arith.constant 3 : index
    %c0_48 = arith.constant 0 : index
    %c0_49 = arith.constant 0 : index
    %50 = vector.load %arg13[%c3_47, %c0_48, %c0_49] : memref<24x8x138xf32, #tpu.memory_space<vmem>>, vector<1x8x138xf32>
    %51 = vector.shape_cast %50 : vector<1x8x138xf32> to vector<8x138xf32>
    %52 = arith.maximumf %49, %51 : vector<8x138xf32>
    %cst_50 = arith.constant 0.000000e+00 : f32
    %53 = vector.broadcast %cst_50 : f32 to vector<8x138xf32>
    %54 = arith.maximumf %52, %53 : vector<8x138xf32>
    %55 = arith.truncf %54 : vector<8x138xf32> to vector<8x138xbf16>
    %c1_51 = arith.constant 1 : index
    %c0_52 = arith.constant 0 : index
    %c0_53 = arith.constant 0 : index
    %56 = vector.load %arg14[%c1_51, %c0_52, %c0_53] : memref<12x8x138xbf16, #tpu.memory_space<vmem>>, vector<1x8x138xbf16>
    %57 = vector.shape_cast %56 : vector<1x8x138xbf16> to vector<8x138xbf16>
    %58 = vector.shape_cast %55 : vector<8x138xbf16> to vector<1x8x138xbf16>
    tpu.vector_store %arg14[%c1_51, %c0_52, %c0_53], %58 {strides = array<i32>} : memref<12x8x138xbf16, #tpu.memory_space<vmem>>, vector<1x8x138xbf16>,
    %c4_54 = arith.constant 4 : index
    %c0_55 = arith.constant 0 : index
    %c0_56 = arith.constant 0 : index
    %59 = vector.load %arg13[%c4_54, %c0_55, %c0_56] : memref<24x8x138xf32, #tpu.memory_space<vmem>>, vector<1x8x138xf32>
    %60 = vector.shape_cast %59 : vector<1x8x138xf32> to vector<8x138xf32>
    %c5 = arith.constant 5 : index
    %c0_57 = arith.constant 0 : index
    %c0_58 = arith.constant 0 : index
    %61 = vector.load %arg13[%c5, %c0_57, %c0_58] : memref<24x8x138xf32, #tpu.memory_space<vmem>>, vector<1x8x138xf32>
    %62 = vector.shape_cast %61 : vector<1x8x138xf32> to vector<8x138xf32>
    %63 = arith.maximumf %60, %62 : vector<8x138xf32>
    %cst_59 = arith.constant 0.000000e+00 : f32
    %64 = vector.broadcast %cst_59 : f32 to vector<8x138xf32>
    %65 = arith.maximumf %63, %64 : vector<8x138xf32>
    %66 = arith.truncf %65 : vector<8x138xf32> to vector<8x138xbf16>
    %c2_60 = arith.constant 2 : index
    %c0_61 = arith.constant 0 : index
    %c0_62 = arith.constant 0 : index
    %67 = vector.load %arg14[%c2_60, %c0_61, %c0_62] : memref<12x8x138xbf16, #tpu.memory_space<vmem>>, vector<1x8x138xbf16>
    %68 = vector.shape_cast %67 : vector<1x8x138xbf16> to vector<8x138xbf16>
    %69 = vector.shape_cast %66 : vector<8x138xbf16> to vector<1x8x138xbf16>
    tpu.vector_store %arg14[%c2_60, %c0_61, %c0_62], %69 {strides = array<i32>} : memref<12x8x138xbf16, #tpu.memory_space<vmem>>, vector<1x8x138xbf16>,
    %c6 = arith.constant 6 : index
    %c0_63 = arith.constant 0 : index
    %c0_64 = arith.constant 0 : index
    %70 = vector.load %arg13[%c6, %c0_63, %c0_64] : memref<24x8x138xf32, #tpu.memory_space<vmem>>, vector<1x8x138xf32>
    %71 = vector.shape_cast %70 : vector<1x8x138xf32> to vector<8x138xf32>
    %c7 = arith.constant 7 : index
    %c0_65 = arith.constant 0 : index
    %c0_66 = arith.constant 0 : index
    %72 = vector.load %arg13[%c7, %c0_65, %c0_66] : memref<24x8x138xf32, #tpu.memory_space<vmem>>, vector<1x8x138xf32>
    %73 = vector.shape_cast %72 : vector<1x8x138xf32> to vector<8x138xf32>
    %74 = arith.maximumf %71, %73 : vector<8x138xf32>
    %cst_67 = arith.constant 0.000000e+00 : f32
    %75 = vector.broadcast %cst_67 : f32 to vector<8x138xf32>
    %76 = arith.maximumf %74, %75 : vector<8x138xf32>
    %77 = arith.truncf %76 : vector<8x138xf32> to vector<8x138xbf16>
    %c3_68 = arith.constant 3 : index
    %c0_69 = arith.constant 0 : index
    %c0_70 = arith.constant 0 : index
    %78 = vector.load %arg14[%c3_68, %c0_69, %c0_70] : memref<12x8x138xbf16, #tpu.memory_space<vmem>>, vector<1x8x138xbf16>
    %79 = vector.shape_cast %78 : vector<1x8x138xbf16> to vector<8x138xbf16>
    %80 = vector.shape_cast %77 : vector<8x138xbf16> to vector<1x8x138xbf16>
    tpu.vector_store %arg14[%c3_68, %c0_69, %c0_70], %80 {strides = array<i32>} : memref<12x8x138xbf16, #tpu.memory_space<vmem>>, vector<1x8x138xbf16>,
    %c8 = arith.constant 8 : index
    %c0_71 = arith.constant 0 : index
    %c0_72 = arith.constant 0 : index
    %81 = vector.load %arg13[%c8, %c0_71, %c0_72] : memref<24x8x138xf32, #tpu.memory_space<vmem>>, vector<1x8x138xf32>
    %82 = vector.shape_cast %81 : vector<1x8x138xf32> to vector<8x138xf32>
    %c9 = arith.constant 9 : index
    %c0_73 = arith.constant 0 : index
    %c0_74 = arith.constant 0 : index
    %83 = vector.load %arg13[%c9, %c0_73, %c0_74] : memref<24x8x138xf32, #tpu.memory_space<vmem>>, vector<1x8x138xf32>
    %84 = vector.shape_cast %83 : vector<1x8x138xf32> to vector<8x138xf32>
    %85 = arith.maximumf %82, %84 : vector<8x138xf32>
    %cst_75 = arith.constant 0.000000e+00 : f32
    %86 = vector.broadcast %cst_75 : f32 to vector<8x138xf32>
    %87 = arith.maximumf %85, %86 : vector<8x138xf32>
    %88 = arith.truncf %87 : vector<8x138xf32> to vector<8x138xbf16>
    %c4_76 = arith.constant 4 : index
    %c0_77 = arith.constant 0 : index
    %c0_78 = arith.constant 0 : index
    %89 = vector.load %arg14[%c4_76, %c0_77, %c0_78] : memref<12x8x138xbf16, #tpu.memory_space<vmem>>, vector<1x8x138xbf16>
    %90 = vector.shape_cast %89 : vector<1x8x138xbf16> to vector<8x138xbf16>
    %91 = vector.shape_cast %88 : vector<8x138xbf16> to vector<1x8x138xbf16>
    tpu.vector_store %arg14[%c4_76, %c0_77, %c0_78], %91 {strides = array<i32>} : memref<12x8x138xbf16, #tpu.memory_space<vmem>>, vector<1x8x138xbf16>,
    %c10 = arith.constant 10 : index
    %c0_79 = arith.constant 0 : index
    %c0_80 = arith.constant 0 : index
    %92 = vector.load %arg13[%c10, %c0_79, %c0_80] : memref<24x8x138xf32, #tpu.memory_space<vmem>>, vector<1x8x138xf32>
    %93 = vector.shape_cast %92 : vector<1x8x138xf32> to vector<8x138xf32>
    %c11 = arith.constant 11 : index
    %c0_81 = arith.constant 0 : index
    %c0_82 = arith.constant 0 : index
    %94 = vector.load %arg13[%c11, %c0_81, %c0_82] : memref<24x8x138xf32, #tpu.memory_space<vmem>>, vector<1x8x138xf32>
    %95 = vector.shape_cast %94 : vector<1x8x138xf32> to vector<8x138xf32>
    %96 = arith.maximumf %93, %95 : vector<8x138xf32>
    %cst_83 = arith.constant 0.000000e+00 : f32
    %97 = vector.broadcast %cst_83 : f32 to vector<8x138xf32>
    %98 = arith.maximumf %96, %97 : vector<8x138xf32>
    %99 = arith.truncf %98 : vector<8x138xf32> to vector<8x138xbf16>
    %c5_84 = arith.constant 5 : index
    %c0_85 = arith.constant 0 : index
    %c0_86 = arith.constant 0 : index
    %100 = vector.load %arg14[%c5_84, %c0_85, %c0_86] : memref<12x8x138xbf16, #tpu.memory_space<vmem>>, vector<1x8x138xbf16>
    %101 = vector.shape_cast %100 : vector<1x8x138xbf16> to vector<8x138xbf16>
    %102 = vector.shape_cast %99 : vector<8x138xbf16> to vector<1x8x138xbf16>
    tpu.vector_store %arg14[%c5_84, %c0_85, %c0_86], %102 {strides = array<i32>} : memref<12x8x138xbf16, #tpu.memory_space<vmem>>, vector<1x8x138xbf16>,
    %c12 = arith.constant 12 : index
    %c0_87 = arith.constant 0 : index
    %c0_88 = arith.constant 0 : index
    %103 = vector.load %arg13[%c12, %c0_87, %c0_88] : memref<24x8x138xf32, #tpu.memory_space<vmem>>, vector<1x8x138xf32>
    %104 = vector.shape_cast %103 : vector<1x8x138xf32> to vector<8x138xf32>
    %c13 = arith.constant 13 : index
    %c0_89 = arith.constant 0 : index
    %c0_90 = arith.constant 0 : index
    %105 = vector.load %arg13[%c13, %c0_89, %c0_90] : memref<24x8x138xf32, #tpu.memory_space<vmem>>, vector<1x8x138xf32>
    %106 = vector.shape_cast %105 : vector<1x8x138xf32> to vector<8x138xf32>
    %107 = arith.maximumf %104, %106 : vector<8x138xf32>
    %cst_91 = arith.constant 0.000000e+00 : f32
    %108 = vector.broadcast %cst_91 : f32 to vector<8x138xf32>
    %109 = arith.maximumf %107, %108 : vector<8x138xf32>
    %110 = arith.truncf %109 : vector<8x138xf32> to vector<8x138xbf16>
    %c6_92 = arith.constant 6 : index
    %c0_93 = arith.constant 0 : index
    %c0_94 = arith.constant 0 : index
    %111 = vector.load %arg14[%c6_92, %c0_93, %c0_94] : memref<12x8x138xbf16, #tpu.memory_space<vmem>>, vector<1x8x138xbf16>
    %112 = vector.shape_cast %111 : vector<1x8x138xbf16> to vector<8x138xbf16>
    %113 = vector.shape_cast %110 : vector<8x138xbf16> to vector<1x8x138xbf16>
    tpu.vector_store %arg14[%c6_92, %c0_93, %c0_94], %113 {strides = array<i32>} : memref<12x8x138xbf16, #tpu.memory_space<vmem>>, vector<1x8x138xbf16>,
    %c14 = arith.constant 14 : index
    %c0_95 = arith.constant 0 : index
    %c0_96 = arith.constant 0 : index
    %114 = vector.load %arg13[%c14, %c0_95, %c0_96] : memref<24x8x138xf32, #tpu.memory_space<vmem>>, vector<1x8x138xf32>
    %115 = vector.shape_cast %114 : vector<1x8x138xf32> to vector<8x138xf32>
    %c15 = arith.constant 15 : index
    %c0_97 = arith.constant 0 : index
    %c0_98 = arith.constant 0 : index
    %116 = vector.load %arg13[%c15, %c0_97, %c0_98] : memref<24x8x138xf32, #tpu.memory_space<vmem>>, vector<1x8x138xf32>
    %117 = vector.shape_cast %116 : vector<1x8x138xf32> to vector<8x138xf32>
    %118 = arith.maximumf %115, %117 : vector<8x138xf32>
    %cst_99 = arith.constant 0.000000e+00 : f32
    %119 = vector.broadcast %cst_99 : f32 to vector<8x138xf32>
    %120 = arith.maximumf %118, %119 : vector<8x138xf32>
    %121 = arith.truncf %120 : vector<8x138xf32> to vector<8x138xbf16>
    %c7_100 = arith.constant 7 : index
    %c0_101 = arith.constant 0 : index
    %c0_102 = arith.constant 0 : index
    %122 = vector.load %arg14[%c7_100, %c0_101, %c0_102] : memref<12x8x138xbf16, #tpu.memory_space<vmem>>, vector<1x8x138xbf16>
    %123 = vector.shape_cast %122 : vector<1x8x138xbf16> to vector<8x138xbf16>
    %124 = vector.shape_cast %121 : vector<8x138xbf16> to vector<1x8x138xbf16>
    tpu.vector_store %arg14[%c7_100, %c0_101, %c0_102], %124 {strides = array<i32>} : memref<12x8x138xbf16, #tpu.memory_space<vmem>>, vector<1x8x138xbf16>,
    %c16 = arith.constant 16 : index
    %c0_103 = arith.constant 0 : index
    %c0_104 = arith.constant 0 : index
    %125 = vector.load %arg13[%c16, %c0_103, %c0_104] : memref<24x8x138xf32, #tpu.memory_space<vmem>>, vector<1x8x138xf32>
    %126 = vector.shape_cast %125 : vector<1x8x138xf32> to vector<8x138xf32>
    %c17 = arith.constant 17 : index
    %c0_105 = arith.constant 0 : index
    %c0_106 = arith.constant 0 : index
    %127 = vector.load %arg13[%c17, %c0_105, %c0_106] : memref<24x8x138xf32, #tpu.memory_space<vmem>>, vector<1x8x138xf32>
    %128 = vector.shape_cast %127 : vector<1x8x138xf32> to vector<8x138xf32>
    %129 = arith.maximumf %126, %128 : vector<8x138xf32>
    %cst_107 = arith.constant 0.000000e+00 : f32
    %130 = vector.broadcast %cst_107 : f32 to vector<8x138xf32>
    %131 = arith.maximumf %129, %130 : vector<8x138xf32>
    %132 = arith.truncf %131 : vector<8x138xf32> to vector<8x138xbf16>
    %c8_108 = arith.constant 8 : index
    %c0_109 = arith.constant 0 : index
    %c0_110 = arith.constant 0 : index
    %133 = vector.load %arg14[%c8_108, %c0_109, %c0_110] : memref<12x8x138xbf16, #tpu.memory_space<vmem>>, vector<1x8x138xbf16>
    %134 = vector.shape_cast %133 : vector<1x8x138xbf16> to vector<8x138xbf16>
    %135 = vector.shape_cast %132 : vector<8x138xbf16> to vector<1x8x138xbf16>
    tpu.vector_store %arg14[%c8_108, %c0_109, %c0_110], %135 {strides = array<i32>} : memref<12x8x138xbf16, #tpu.memory_space<vmem>>, vector<1x8x138xbf16>,
    %c18 = arith.constant 18 : index
    %c0_111 = arith.constant 0 : index
    %c0_112 = arith.constant 0 : index
    %136 = vector.load %arg13[%c18, %c0_111, %c0_112] : memref<24x8x138xf32, #tpu.memory_space<vmem>>, vector<1x8x138xf32>
    %137 = vector.shape_cast %136 : vector<1x8x138xf32> to vector<8x138xf32>
    %c19 = arith.constant 19 : index
    %c0_113 = arith.constant 0 : index
    %c0_114 = arith.constant 0 : index
    %138 = vector.load %arg13[%c19, %c0_113, %c0_114] : memref<24x8x138xf32, #tpu.memory_space<vmem>>, vector<1x8x138xf32>
    %139 = vector.shape_cast %138 : vector<1x8x138xf32> to vector<8x138xf32>
    %140 = arith.maximumf %137, %139 : vector<8x138xf32>
    %cst_115 = arith.constant 0.000000e+00 : f32
    %141 = vector.broadcast %cst_115 : f32 to vector<8x138xf32>
    %142 = arith.maximumf %140, %141 : vector<8x138xf32>
    %143 = arith.truncf %142 : vector<8x138xf32> to vector<8x138xbf16>
    %c9_116 = arith.constant 9 : index
    %c0_117 = arith.constant 0 : index
    %c0_118 = arith.constant 0 : index
    %144 = vector.load %arg14[%c9_116, %c0_117, %c0_118] : memref<12x8x138xbf16, #tpu.memory_space<vmem>>, vector<1x8x138xbf16>
    %145 = vector.shape_cast %144 : vector<1x8x138xbf16> to vector<8x138xbf16>
    %146 = vector.shape_cast %143 : vector<8x138xbf16> to vector<1x8x138xbf16>
    tpu.vector_store %arg14[%c9_116, %c0_117, %c0_118], %146 {strides = array<i32>} : memref<12x8x138xbf16, #tpu.memory_space<vmem>>, vector<1x8x138xbf16>,
    %c20 = arith.constant 20 : index
    %c0_119 = arith.constant 0 : index
    %c0_120 = arith.constant 0 : index
    %147 = vector.load %arg13[%c20, %c0_119, %c0_120] : memref<24x8x138xf32, #tpu.memory_space<vmem>>, vector<1x8x138xf32>
    %148 = vector.shape_cast %147 : vector<1x8x138xf32> to vector<8x138xf32>
    %c21 = arith.constant 21 : index
    %c0_121 = arith.constant 0 : index
    %c0_122 = arith.constant 0 : index
    %149 = vector.load %arg13[%c21, %c0_121, %c0_122] : memref<24x8x138xf32, #tpu.memory_space<vmem>>, vector<1x8x138xf32>
    %150 = vector.shape_cast %149 : vector<1x8x138xf32> to vector<8x138xf32>
    %151 = arith.maximumf %148, %150 : vector<8x138xf32>
    %cst_123 = arith.constant 0.000000e+00 : f32
    %152 = vector.broadcast %cst_123 : f32 to vector<8x138xf32>
    %153 = arith.maximumf %151, %152 : vector<8x138xf32>
    %154 = arith.truncf %153 : vector<8x138xf32> to vector<8x138xbf16>
    %c10_124 = arith.constant 10 : index
    %c0_125 = arith.constant 0 : index
    %c0_126 = arith.constant 0 : index
    %155 = vector.load %arg14[%c10_124, %c0_125, %c0_126] : memref<12x8x138xbf16, #tpu.memory_space<vmem>>, vector<1x8x138xbf16>
    %156 = vector.shape_cast %155 : vector<1x8x138xbf16> to vector<8x138xbf16>
    %157 = vector.shape_cast %154 : vector<8x138xbf16> to vector<1x8x138xbf16>
    tpu.vector_store %arg14[%c10_124, %c0_125, %c0_126], %157 {strides = array<i32>} : memref<12x8x138xbf16, #tpu.memory_space<vmem>>, vector<1x8x138xbf16>,
    %c22 = arith.constant 22 : index
    %c0_127 = arith.constant 0 : index
    %c0_128 = arith.constant 0 : index
    %158 = vector.load %arg13[%c22, %c0_127, %c0_128] : memref<24x8x138xf32, #tpu.memory_space<vmem>>, vector<1x8x138xf32>
    %159 = vector.shape_cast %158 : vector<1x8x138xf32> to vector<8x138xf32>
    %c23 = arith.constant 23 : index
    %c0_129 = arith.constant 0 : index
    %c0_130 = arith.constant 0 : index
    %160 = vector.load %arg13[%c23, %c0_129, %c0_130] : memref<24x8x138xf32, #tpu.memory_space<vmem>>, vector<1x8x138xf32>
    %161 = vector.shape_cast %160 : vector<1x8x138xf32> to vector<8x138xf32>
    %162 = arith.maximumf %159, %161 : vector<8x138xf32>
    %cst_131 = arith.constant 0.000000e+00 : f32
    %163 = vector.broadcast %cst_131 : f32 to vector<8x138xf32>
    %164 = arith.maximumf %162, %163 : vector<8x138xf32>
    %165 = arith.truncf %164 : vector<8x138xf32> to vector<8x138xbf16>
    %c11_132 = arith.constant 11 : index
    %c0_133 = arith.constant 0 : index
    %c0_134 = arith.constant 0 : index
    %166 = vector.load %arg14[%c11_132, %c0_133, %c0_134] : memref<12x8x138xbf16, #tpu.memory_space<vmem>>, vector<1x8x138xbf16>
    %167 = vector.shape_cast %166 : vector<1x8x138xbf16> to vector<8x138xbf16>
    %168 = vector.shape_cast %165 : vector<8x138xbf16> to vector<1x8x138xbf16>
    tpu.vector_store %arg14[%c11_132, %c0_133, %c0_134], %168 {strides = array<i32>} : memref<12x8x138xbf16, #tpu.memory_space<vmem>>, vector<1x8x138xbf16>,
    %c0_135 = arith.constant 0 : index
    %c0_136 = arith.constant 0 : index
    %c0_137 = arith.constant 0 : index
    %169 = vector.load %arg14[%c0_135, %c0_136, %c0_137] : memref<12x8x138xbf16, #tpu.memory_space<vmem>>, vector<8x8x138xbf16>
    %170 = vector.shape_cast %169 : vector<8x8x138xbf16> to vector<64x138xbf16>
    %c0_138 = arith.constant 0 : index
    %c0_139 = arith.constant 0 : index
    %c0_140 = arith.constant 0 : index
    %171 = vector.load %arg4[%c0_138, %c0_139, %c0_140] : memref<5x138x128xbf16, #tpu.memory_space<vmem>>, vector<1x138x128xbf16>
    %172 = vector.shape_cast %171 : vector<1x138x128xbf16> to vector<138x128xbf16>
    %cst_141 = arith.constant dense<0.000000e+00> : vector<64x128xf32>
    %173 = tpu.matmul %170, %172, %cst_141 {dimension_numbers = #tpu.dot_dimension_numbers<[1], [0], [0], [1], [0, 0, 1, 1], [], []>} : vector<64x138xbf16>, vector<138x128xbf16>, vector<64x128xf32> -> vector<64x128xf32>
    %c1_142 = arith.constant 1 : index
    %c0_143 = arith.constant 0 : index
    %c0_144 = arith.constant 0 : index
    %174 = vector.load %arg14[%c1_142, %c0_143, %c0_144] : memref<12x8x138xbf16, #tpu.memory_space<vmem>>, vector<8x8x138xbf16>
    %175 = vector.shape_cast %174 : vector<8x8x138xbf16> to vector<64x138xbf16>
    %c1_145 = arith.constant 1 : index
    %c0_146 = arith.constant 0 : index
    %c0_147 = arith.constant 0 : index
    %176 = vector.load %arg4[%c1_145, %c0_146, %c0_147] : memref<5x138x128xbf16, #tpu.memory_space<vmem>>, vector<1x138x128xbf16>
    %177 = vector.shape_cast %176 : vector<1x138x128xbf16> to vector<138x128xbf16>
    %cst_148 = arith.constant dense<0.000000e+00> : vector<64x128xf32>
    %178 = tpu.matmul %175, %177, %cst_148 {dimension_numbers = #tpu.dot_dimension_numbers<[1], [0], [0], [1], [0, 0, 1, 1], [], []>} : vector<64x138xbf16>, vector<138x128xbf16>, vector<64x128xf32> -> vector<64x128xf32>
    %179 = arith.addf %173, %178 : vector<64x128xf32>
    %c2_149 = arith.constant 2 : index
    %c0_150 = arith.constant 0 : index
    %c0_151 = arith.constant 0 : index
    %180 = vector.load %arg14[%c2_149, %c0_150, %c0_151] : memref<12x8x138xbf16, #tpu.memory_space<vmem>>, vector<8x8x138xbf16>
    %181 = vector.shape_cast %180 : vector<8x8x138xbf16> to vector<64x138xbf16>
    %c2_152 = arith.constant 2 : index
    %c0_153 = arith.constant 0 : index
    %c0_154 = arith.constant 0 : index
    %182 = vector.load %arg4[%c2_152, %c0_153, %c0_154] : memref<5x138x128xbf16, #tpu.memory_space<vmem>>, vector<1x138x128xbf16>
    %183 = vector.shape_cast %182 : vector<1x138x128xbf16> to vector<138x128xbf16>
    %cst_155 = arith.constant dense<0.000000e+00> : vector<64x128xf32>
    %184 = tpu.matmul %181, %183, %cst_155 {dimension_numbers = #tpu.dot_dimension_numbers<[1], [0], [0], [1], [0, 0, 1, 1], [], []>} : vector<64x138xbf16>, vector<138x128xbf16>, vector<64x128xf32> -> vector<64x128xf32>
    %185 = arith.addf %179, %184 : vector<64x128xf32>
    %c3_156 = arith.constant 3 : index
    %c0_157 = arith.constant 0 : index
    %c0_158 = arith.constant 0 : index
    %186 = vector.load %arg14[%c3_156, %c0_157, %c0_158] : memref<12x8x138xbf16, #tpu.memory_space<vmem>>, vector<8x8x138xbf16>
    %187 = vector.shape_cast %186 : vector<8x8x138xbf16> to vector<64x138xbf16>
    %c3_159 = arith.constant 3 : index
    %c0_160 = arith.constant 0 : index
    %c0_161 = arith.constant 0 : index
    %188 = vector.load %arg4[%c3_159, %c0_160, %c0_161] : memref<5x138x128xbf16, #tpu.memory_space<vmem>>, vector<1x138x128xbf16>
    %189 = vector.shape_cast %188 : vector<1x138x128xbf16> to vector<138x128xbf16>
    %cst_162 = arith.constant dense<0.000000e+00> : vector<64x128xf32>
    %190 = tpu.matmul %187, %189, %cst_162 {dimension_numbers = #tpu.dot_dimension_numbers<[1], [0], [0], [1], [0, 0, 1, 1], [], []>} : vector<64x138xbf16>, vector<138x128xbf16>, vector<64x128xf32> -> vector<64x128xf32>
    %191 = arith.addf %185, %190 : vector<64x128xf32>
    %c4_163 = arith.constant 4 : index
    %c0_164 = arith.constant 0 : index
    %c0_165 = arith.constant 0 : index
    %192 = vector.load %arg14[%c4_163, %c0_164, %c0_165] : memref<12x8x138xbf16, #tpu.memory_space<vmem>>, vector<8x8x138xbf16>
    %193 = vector.shape_cast %192 : vector<8x8x138xbf16> to vector<64x138xbf16>
    %c4_166 = arith.constant 4 : index
    %c0_167 = arith.constant 0 : index
    %c0_168 = arith.constant 0 : index
    %194 = vector.load %arg4[%c4_166, %c0_167, %c0_168] : memref<5x138x128xbf16, #tpu.memory_space<vmem>>, vector<1x138x128xbf16>
    %195 = vector.shape_cast %194 : vector<1x138x128xbf16> to vector<138x128xbf16>
    %cst_169 = arith.constant dense<0.000000e+00> : vector<64x128xf32>
    %196 = tpu.matmul %193, %195, %cst_169 {dimension_numbers = #tpu.dot_dimension_numbers<[1], [0], [0], [1], [0, 0, 1, 1], [], []>} : vector<64x138xbf16>, vector<138x128xbf16>, vector<64x128xf32> -> vector<64x128xf32>
    %197 = arith.addf %191, %196 : vector<64x128xf32>
    %c0_170 = arith.constant 0 : index
    %c0_171 = arith.constant 0 : index
    %198 = vector.load %arg5[%c0_170, %c0_171] : memref<1x128xf32, #tpu.memory_space<vmem>>, vector<1x128xf32>
    %199 = vector.broadcast %198 : vector<1x128xf32> to vector<64x128xf32>
    %200 = arith.addf %197, %199 : vector<64x128xf32>
    %201 = vector.shape_cast %200 : vector<64x128xf32> to vector<8x8x128xf32>
    %c0_172 = arith.constant 0 : index
    %c0_173 = arith.constant 0 : index
    %c0_174 = arith.constant 0 : index
    %202 = vector.load %arg15[%c0_172, %c0_173, %c0_174] : memref<8x8x128xf32, #tpu.memory_space<vmem>>, vector<8x8x128xf32>
    tpu.vector_store %arg15[%c0_172, %c0_173, %c0_174], %201 {strides = array<i32>} : memref<8x8x128xf32, #tpu.memory_space<vmem>>, vector<8x8x128xf32>,
    %c0_175 = arith.constant 0 : index
    %c0_176 = arith.constant 0 : index
    %c0_177 = arith.constant 0 : index
    %203 = vector.load %arg15[%c0_175, %c0_176, %c0_177] : memref<8x8x128xf32, #tpu.memory_space<vmem>>, vector<1x8x128xf32>
    %204 = vector.shape_cast %203 : vector<1x8x128xf32> to vector<8x128xf32>
    %c1_178 = arith.constant 1 : index
    %c0_179 = arith.constant 0 : index
    %c0_180 = arith.constant 0 : index
    %205 = vector.load %arg15[%c1_178, %c0_179, %c0_180] : memref<8x8x128xf32, #tpu.memory_space<vmem>>, vector<1x8x128xf32>
    %206 = vector.shape_cast %205 : vector<1x8x128xf32> to vector<8x128xf32>
    %207 = arith.maximumf %204, %206 : vector<8x128xf32>
    %208 = vector.extract_strided_slice %207 {offsets = [0, 0], sizes = [8, 112], strides = [1, 1]} : vector<8x128xf32> to vector<8x112xf32>
    %209 = vector.extract_strided_slice %207 {offsets = [0, 16], sizes = [8, 112], strides = [1, 1]} : vector<8x128xf32> to vector<8x112xf32>
    %210 = arith.maximumf %208, %209 : vector<8x112xf32>
    %cst_181 = arith.constant 0.000000e+00 : f32
    %211 = vector.broadcast %cst_181 : f32 to vector<8x112xf32>
    %212 = arith.maximumf %210, %211 : vector<8x112xf32>
    %213 = arith.truncf %212 : vector<8x112xf32> to vector<8x112xbf16>
    %c0_182 = arith.constant 0 : index
    %c0_183 = arith.constant 0 : index
    %c0_184 = arith.constant 0 : index
    %214 = vector.load %arg6[%c0_182, %c0_183, %c0_184] : memref<4x112x128xbf16, #tpu.memory_space<vmem>>, vector<1x112x128xbf16>
    %215 = vector.shape_cast %214 : vector<1x112x128xbf16> to vector<112x128xbf16>
    %cst_185 = arith.constant dense<0.000000e+00> : vector<8x128xf32>
    %216 = tpu.matmul %213, %215, %cst_185 {dimension_numbers = #tpu.dot_dimension_numbers<[1], [0], [0], [1], [0, 0, 1, 1], [], []>} : vector<8x112xbf16>, vector<112x128xbf16>, vector<8x128xf32> -> vector<8x128xf32>
    %c2_186 = arith.constant 2 : index
    %c0_187 = arith.constant 0 : index
    %c0_188 = arith.constant 0 : index
    %217 = vector.load %arg15[%c2_186, %c0_187, %c0_188] : memref<8x8x128xf32, #tpu.memory_space<vmem>>, vector<1x8x128xf32>
    %218 = vector.shape_cast %217 : vector<1x8x128xf32> to vector<8x128xf32>
    %c3_189 = arith.constant 3 : index
    %c0_190 = arith.constant 0 : index
    %c0_191 = arith.constant 0 : index
    %219 = vector.load %arg15[%c3_189, %c0_190, %c0_191] : memref<8x8x128xf32, #tpu.memory_space<vmem>>, vector<1x8x128xf32>
    %220 = vector.shape_cast %219 : vector<1x8x128xf32> to vector<8x128xf32>
    %221 = arith.maximumf %218, %220 : vector<8x128xf32>
    %222 = vector.extract_strided_slice %221 {offsets = [0, 0], sizes = [8, 112], strides = [1, 1]} : vector<8x128xf32> to vector<8x112xf32>
    %223 = vector.extract_strided_slice %221 {offsets = [0, 16], sizes = [8, 112], strides = [1, 1]} : vector<8x128xf32> to vector<8x112xf32>
    %224 = arith.maximumf %222, %223 : vector<8x112xf32>
    %cst_192 = arith.constant 0.000000e+00 : f32
    %225 = vector.broadcast %cst_192 : f32 to vector<8x112xf32>
    %226 = arith.maximumf %224, %225 : vector<8x112xf32>
    %227 = arith.truncf %226 : vector<8x112xf32> to vector<8x112xbf16>
    %c1_193 = arith.constant 1 : index
    %c0_194 = arith.constant 0 : index
    %c0_195 = arith.constant 0 : index
    %228 = vector.load %arg6[%c1_193, %c0_194, %c0_195] : memref<4x112x128xbf16, #tpu.memory_space<vmem>>, vector<1x112x128xbf16>
    %229 = vector.shape_cast %228 : vector<1x112x128xbf16> to vector<112x128xbf16>
    %cst_196 = arith.constant dense<0.000000e+00> : vector<8x128xf32>
    %230 = tpu.matmul %227, %229, %cst_196 {dimension_numbers = #tpu.dot_dimension_numbers<[1], [0], [0], [1], [0, 0, 1, 1], [], []>} : vector<8x112xbf16>, vector<112x128xbf16>, vector<8x128xf32> -> vector<8x128xf32>
    %231 = arith.addf %216, %230 : vector<8x128xf32>
    %c4_197 = arith.constant 4 : index
    %c0_198 = arith.constant 0 : index
    %c0_199 = arith.constant 0 : index
    %232 = vector.load %arg15[%c4_197, %c0_198, %c0_199] : memref<8x8x128xf32, #tpu.memory_space<vmem>>, vector<1x8x128xf32>
    %233 = vector.shape_cast %232 : vector<1x8x128xf32> to vector<8x128xf32>
    %c5_200 = arith.constant 5 : index
    %c0_201 = arith.constant 0 : index
    %c0_202 = arith.constant 0 : index
    %234 = vector.load %arg15[%c5_200, %c0_201, %c0_202] : memref<8x8x128xf32, #tpu.memory_space<vmem>>, vector<1x8x128xf32>
    %235 = vector.shape_cast %234 : vector<1x8x128xf32> to vector<8x128xf32>
    %236 = arith.maximumf %233, %235 : vector<8x128xf32>
    %237 = vector.extract_strided_slice %236 {offsets = [0, 0], sizes = [8, 112], strides = [1, 1]} : vector<8x128xf32> to vector<8x112xf32>
    %238 = vector.extract_strided_slice %236 {offsets = [0, 16], sizes = [8, 112], strides = [1, 1]} : vector<8x128xf32> to vector<8x112xf32>
    %239 = arith.maximumf %237, %238 : vector<8x112xf32>
    %cst_203 = arith.constant 0.000000e+00 : f32
    %240 = vector.broadcast %cst_203 : f32 to vector<8x112xf32>
    %241 = arith.maximumf %239, %240 : vector<8x112xf32>
    %242 = arith.truncf %241 : vector<8x112xf32> to vector<8x112xbf16>
    %c2_204 = arith.constant 2 : index
    %c0_205 = arith.constant 0 : index
    %c0_206 = arith.constant 0 : index
    %243 = vector.load %arg6[%c2_204, %c0_205, %c0_206] : memref<4x112x128xbf16, #tpu.memory_space<vmem>>, vector<1x112x128xbf16>
    %244 = vector.shape_cast %243 : vector<1x112x128xbf16> to vector<112x128xbf16>
    %cst_207 = arith.constant dense<0.000000e+00> : vector<8x128xf32>
    %245 = tpu.matmul %242, %244, %cst_207 {dimension_numbers = #tpu.dot_dimension_numbers<[1], [0], [0], [1], [0, 0, 1, 1], [], []>} : vector<8x112xbf16>, vector<112x128xbf16>, vector<8x128xf32> -> vector<8x128xf32>
    %246 = arith.addf %231, %245 : vector<8x128xf32>
    %c6_208 = arith.constant 6 : index
    %c0_209 = arith.constant 0 : index
    %c0_210 = arith.constant 0 : index
    %247 = vector.load %arg15[%c6_208, %c0_209, %c0_210] : memref<8x8x128xf32, #tpu.memory_space<vmem>>, vector<1x8x128xf32>
    %248 = vector.shape_cast %247 : vector<1x8x128xf32> to vector<8x128xf32>
    %c7_211 = arith.constant 7 : index
    %c0_212 = arith.constant 0 : index
    %c0_213 = arith.constant 0 : index
    %249 = vector.load %arg15[%c7_211, %c0_212, %c0_213] : memref<8x8x128xf32, #tpu.memory_space<vmem>>, vector<1x8x128xf32>
    %250 = vector.shape_cast %249 : vector<1x8x128xf32> to vector<8x128xf32>
    %251 = arith.maximumf %248, %250 : vector<8x128xf32>
    %252 = vector.extract_strided_slice %251 {offsets = [0, 0], sizes = [8, 112], strides = [1, 1]} : vector<8x128xf32> to vector<8x112xf32>
    %253 = vector.extract_strided_slice %251 {offsets = [0, 16], sizes = [8, 112], strides = [1, 1]} : vector<8x128xf32> to vector<8x112xf32>
    %254 = arith.maximumf %252, %253 : vector<8x112xf32>
    %cst_214 = arith.constant 0.000000e+00 : f32
    %255 = vector.broadcast %cst_214 : f32 to vector<8x112xf32>
    %256 = arith.maximumf %254, %255 : vector<8x112xf32>
    %257 = arith.truncf %256 : vector<8x112xf32> to vector<8x112xbf16>
    %c3_215 = arith.constant 3 : index
    %c0_216 = arith.constant 0 : index
    %c0_217 = arith.constant 0 : index
    %258 = vector.load %arg6[%c3_215, %c0_216, %c0_217] : memref<4x112x128xbf16, #tpu.memory_space<vmem>>, vector<1x112x128xbf16>
    %259 = vector.shape_cast %258 : vector<1x112x128xbf16> to vector<112x128xbf16>
    %cst_218 = arith.constant dense<0.000000e+00> : vector<8x128xf32>
    %260 = tpu.matmul %257, %259, %cst_218 {dimension_numbers = #tpu.dot_dimension_numbers<[1], [0], [0], [1], [0, 0, 1, 1], [], []>} : vector<8x112xbf16>, vector<112x128xbf16>, vector<8x128xf32> -> vector<8x128xf32>
    %261 = arith.addf %246, %260 : vector<8x128xf32>
    %c0_219 = arith.constant 0 : index
    %c0_220 = arith.constant 0 : index
    %262 = vector.load %arg7[%c0_219, %c0_220] : memref<1x128xf32, #tpu.memory_space<vmem>>, vector<1x128xf32>
    %263 = vector.broadcast %262 : vector<1x128xf32> to vector<8x128xf32>
    %264 = arith.addf %261, %263 : vector<8x128xf32>
    %cst_221 = arith.constant 0.000000e+00 : f32
    %265 = vector.broadcast %cst_221 : f32 to vector<8x128xf32>
    %266 = arith.maximumf %264, %265 : vector<8x128xf32>
    %267 = arith.truncf %266 : vector<8x128xf32> to vector<8x128xbf16>
    %c0_222 = arith.constant 0 : index
    %c0_223 = arith.constant 0 : index
    %268 = vector.load %arg8[%c0_222, %c0_223] : memref<128x128xbf16, #tpu.memory_space<vmem>>, vector<128x128xbf16>
    %cst_224 = arith.constant dense<0.000000e+00> : vector<8x128xf32>
    %269 = tpu.matmul %267, %268, %cst_224 {dimension_numbers = #tpu.dot_dimension_numbers<[1], [0], [0], [1], [0, 0, 1, 1], [], []>} : vector<8x128xbf16>, vector<128x128xbf16>, vector<8x128xf32> -> vector<8x128xf32>
    %c0_225 = arith.constant 0 : index
    %c0_226 = arith.constant 0 : index
    %270 = vector.load %arg9[%c0_225, %c0_226] : memref<1x128xf32, #tpu.memory_space<vmem>>, vector<1x128xf32>
    %271 = vector.broadcast %270 : vector<1x128xf32> to vector<8x128xf32>
    %272 = arith.addf %269, %271 : vector<8x128xf32>
    %cst_227 = arith.constant 0.000000e+00 : f32
    %273 = vector.broadcast %cst_227 : f32 to vector<8x128xf32>
    %274 = arith.maximumf %272, %273 : vector<8x128xf32>
    %275 = arith.truncf %274 : vector<8x128xf32> to vector<8x128xbf16>
    %c0_228 = arith.constant 0 : index
    %c0_229 = arith.constant 0 : index
    %276 = vector.load %arg10[%c0_228, %c0_229] : memref<128x128xbf16, #tpu.memory_space<vmem>>, vector<128x128xbf16>
    %cst_230 = arith.constant dense<0.000000e+00> : vector<8x128xf32>
    %277 = tpu.matmul %275, %276, %cst_230 {dimension_numbers = #tpu.dot_dimension_numbers<[1], [0], [0], [1], [0, 0, 1, 1], [], []>} : vector<8x128xbf16>, vector<128x128xbf16>, vector<8x128xf32> -> vector<8x128xf32>
    %c0_231 = arith.constant 0 : index
    %c0_232 = arith.constant 0 : index
    %278 = vector.load %arg11[%c0_231, %c0_232] : memref<1x128xf32, #tpu.memory_space<vmem>>, vector<1x128xf32>
    %279 = vector.broadcast %278 : vector<1x128xf32> to vector<8x128xf32>
    %280 = arith.addf %277, %279 : vector<8x128xf32>
    %c0_233 = arith.constant 0 : index
    %c0_234 = arith.constant 0 : index
    %281 = vector.load %arg12[%c0_233, %c0_234] : memref<8x128xf32, #tpu.memory_space<vmem>>, vector<8x128xf32>
    tpu.vector_store %arg12[%c0_233, %c0_234], %280 {strides = array<i32>} : memref<8x128xf32, #tpu.memory_space<vmem>>, vector<8x128xf32>,
    return
  }
  func.func @transform_0(%arg0: i32) -> (i32, i32, i32) {
    %c0_i32 = arith.constant 0 : i32
    %c0_i32_0 = arith.constant 0 : i32
    %c0_i32_1 = arith.constant 0 : i32
    return %c0_i32, %arg0, %c0_i32_0 : i32, i32, i32
  }
  func.func @transform_1(%arg0: i32) -> (i32, i32, i32) {
    %c0_i32 = arith.constant 0 : i32
    %c0_i32_0 = arith.constant 0 : i32
    %c0_i32_1 = arith.constant 0 : i32
    %c0_i32_2 = arith.constant 0 : i32
    return %c0_i32, %c0_i32_0, %c0_i32_1 : i32, i32, i32
  }
  func.func @transform_2(%arg0: i32) -> (i32, i32) {
    %c0_i32 = arith.constant 0 : i32
    %c0_i32_0 = arith.constant 0 : i32
    %c0_i32_1 = arith.constant 0 : i32
    return %c0_i32, %c0_i32_0 : i32, i32
  }
  func.func @transform_3(%arg0: i32) -> (i32, i32, i32) {
    %c0_i32 = arith.constant 0 : i32
    %c0_i32_0 = arith.constant 0 : i32
    %c0_i32_1 = arith.constant 0 : i32
    %c0_i32_2 = arith.constant 0 : i32
    return %c0_i32, %c0_i32_0, %c0_i32_1 : i32, i32, i32
  }
  func.func @transform_4(%arg0: i32) -> (i32, i32) {
    %c0_i32 = arith.constant 0 : i32
    %c0_i32_0 = arith.constant 0 : i32
    %c0_i32_1 = arith.constant 0 : i32
    return %c0_i32, %c0_i32_0 : i32, i32
  }
  func.func @transform_5(%arg0: i32) -> (i32, i32, i32) {
    %c0_i32 = arith.constant 0 : i32
    %c0_i32_0 = arith.constant 0 : i32
    %c0_i32_1 = arith.constant 0 : i32
    %c0_i32_2 = arith.constant 0 : i32
    return %c0_i32, %c0_i32_0, %c0_i32_1 : i32, i32, i32
  }
  func.func @transform_6(%arg0: i32) -> (i32, i32) {
    %c0_i32 = arith.constant 0 : i32
    %c0_i32_0 = arith.constant 0 : i32
    %c0_i32_1 = arith.constant 0 : i32
    return %c0_i32, %c0_i32_0 : i32, i32
  }
  func.func @transform_7(%arg0: i32) -> (i32, i32) {
    %c0_i32 = arith.constant 0 : i32
    %c0_i32_0 = arith.constant 0 : i32
    %c0_i32_1 = arith.constant 0 : i32
    return %c0_i32, %c0_i32_0 : i32, i32
  }
  func.func @transform_8(%arg0: i32) -> (i32, i32) {
    %c0_i32 = arith.constant 0 : i32
    %c0_i32_0 = arith.constant 0 : i32
    %c0_i32_1 = arith.constant 0 : i32
    return %c0_i32, %c0_i32_0 : i32, i32
  }
  func.func @transform_9(%arg0: i32) -> (i32, i32) {
    %c0_i32 = arith.constant 0 : i32
    %c0_i32_0 = arith.constant 0 : i32
    %c0_i32_1 = arith.constant 0 : i32
    return %c0_i32, %c0_i32_0 : i32, i32
  }
  func.func @transform_10(%arg0: i32) -> (i32, i32) {
    %c0_i32 = arith.constant 0 : i32
    %c0_i32_0 = arith.constant 0 : i32
    %c0_i32_1 = arith.constant 0 : i32
    return %c0_i32, %c0_i32_0 : i32, i32
  }
  func.func @transform_11(%arg0: i32) -> (i32, i32) {
    %c0_i32 = arith.constant 0 : i32
    %c0_i32_0 = arith.constant 0 : i32
    return %arg0, %c0_i32 : i32, i32
  }
}

</mosaic_0001>

<bundles_post_ra>
// kernel: net_forward.1
= control target key start
LH: loop header
LB: loop body
LE: loop exit
PB: predicated region body
PF: predicated region fallthrough
CT: control target
= control target key end

     0   :  { %vm263_vm0 = vcmask 1041408   ;;  %v7142_v2 = vmov 0   ;;  %vm226_vm1 = vcmask 687104   ;;  %vm2687_vm2 = vcmask 1044480   ;;  %s7130_s1 = inlined_call_operand.vmem [shape: bf16[5,84,144], index: 1, kind: input, shape index: {}]   ;;  %s7131_s0 = inlined_call_operand.vmem [shape: bf16[28,8,84], index: 0, kind: input, shape index: {}]   ;;  %s7132_s3 = inlined_call_operand.vmem [shape: bf16[5,138,128], index: 3, kind: input, shape index: {}]   ;;  %s7133_s2 = inlined_call_operand.vmem [shape: f32[1,144], index: 2, kind: input, shape index: {}]   ;;  %s7134_s5 = inlined_call_operand.vmem [shape: bf16[4,112,128], index: 5, kind: input, shape index: {}]   ;;  %s7135_s4 = inlined_call_operand.vmem [shape: f32[1,128], index: 4, kind: input, shape index: {}]   ;;  %s7136_s7 = inlined_call_operand.vmem [shape: bf16[128,128], index: 7, kind: input, shape index: {}]   ;;  %s7137_s9 = inlined_call_operand.vmem [shape: bf16[128,128], index: 9, kind: input, shape index: {}]   ;;  %s7138_s6 = inlined_call_operand.vmem [shape: f32[1,128], index: 6, kind: input, shape index: {}]   ;;  %s7139_s8 = inlined_call_operand.vmem [shape: f32[1,128], index: 8, kind: input, shape index: {}]   ;;  %s7140_s10 = inlined_call_operand.vmem [shape: f32[1,128], index: 10, kind: input, shape index: {}]   ;;  %s7141_s11 = inlined_call_operand.vmem [shape: f32[8,128], index: 11, kind: output, shape index: {}]  }
   0x1   :  { %v4282_v0 = vld [vmem:[%s7130_s1 + $0xa8] sm:$0x33]  ;;  %v73_v1 = vld [vmem:[%s7130_s1 + $0x50] sm:$0x33]  ;;  %302 = vmatprep.mubr.bf16.mxu0 %v7142_v2  ;;  %612 = vmatprep.mubr.bf16.mxu1 %v7142_v2  ;;  %v5039_v7 = vld [vmem:[%s7130_s1 + $0x9c] ss:$8 sps:$4 sm:$0xff]  }
   0x2   :  { %v4306_v3 = vcombine.high %v4282_v0, %v4282_v0  ;;  %v4343_v4 = vcombine.high %v73_v1, %v73_v1  ;;  %v4305_v5 = vcombine.low %v4282_v0, %v4282_v0  ;;  %v4342_v6 = vcombine.low %v73_v1, %v73_v1  ;;  %v5041_v8 = vld [vmem:[%s7130_s1 + $0x44] ss:$8 sps:$4 sm:$0xff]   ;;  %v5043_v11 = vld [vmem:[%s7130_s1 + $0x98] ss:$8 sps:$4 sm:$0xff]   ;;  %v5047_v14 = vld [vmem:[%s7130_s1 + $0x34] ss:$8 sps:$4 sm:$0xff]  }
   0x3   :  { %v5044_v12 = vld [vmem:[%s7130_s1 + $0x40] ss:$8 sps:$4 sm:$0xff]   ;;  %v5045_v13 = vld [vmem:[%s7130_s1 + $0x8c] ss:$8 sps:$4 sm:$0xff]   ;;  %v5050_v16 = vld [vmem:[%s7130_s1 + $0x30] ss:$8 sps:$4 sm:$0xff]  }
   0x4   :  { %4307 = vmatprep.subr.msk.bf16.mxu0 %vm263_vm0, %v4306_v3  ;;  %4344 = vmatprep.subr.msk.bf16.mxu1 %vm263_vm0, %v4343_v4  ;;  %v265_v9 = vsel %vm263_vm0, %v4305_v5, 0  ;;  %v575_v10 = vsel %vm263_vm0, %v4342_v6, 0  ;;  %v5049_v15 = vld [vmem:[%s7130_s1 + $0x88] ss:$8 sps:$4 sm:$0xff]   ;;  %v5051_v17 = vld [vmem:[%s7130_s1 + $0x7c] ss:$8 sps:$4 sm:$0xff]  }
   0x5   :  { %275 = vmatpush1.bf16.msra.mxu0 %v265_v9  ;;  %585 = vmatpush1.bf16.msra.mxu1 %v575_v10  ;;  %v5053_v18 = vld [vmem:[%s7130_s1 + $0x24] ss:$8 sps:$4 sm:$0xff]   ;;  %v5055_v19 = vld [vmem:[%s7130_s1 + $0x78] ss:$8 sps:$4 sm:$0xff]   ;;  %v5059_v22 = vld [vmem:[%s7130_s1 + $0x14] ss:$8 sps:$4 sm:$0xff]  }
   0x6   :  { %276 = vmatprep.subr.bf16.mxu0 %v5039_v7  ;;  %586 = vmatprep.subr.bf16.mxu1 %v5041_v8  ;;  %v5056_v20 = vld [vmem:[%s7130_s1 + $0x20] ss:$8 sps:$4 sm:$0xff]   ;;  %v5057_v21 = vld [vmem:[%s7130_s1 + $0x6c] ss:$8 sps:$4 sm:$0xff]   ;;  %v5062_v24 = vld [vmem:[%s7130_s1 + $0x10] ss:$8 sps:$4 sm:$0xff]  }
   0x7   :  { %v5061_v23 = vld [vmem:[%s7130_s1 + $0x68] ss:$8 sps:$4 sm:$0xff]   ;;  %v5063_v25 = vld [vmem:[%s7130_s1 + $0x5c] ss:$8 sps:$4 sm:$0xff]   ;;  %v5067_v28 = vld [vmem:[%s7130_s1 + $0x58] ss:$8 sps:$4 sm:$0xff]  }
   0x8   :  { %v5065_v26 = vld [vmem:[%s7130_s1 + $0x4] ss:$8 sps:$4 sm:$0xff]   ;;  %v5068_v29 = vld [vmem:[%s7130_s1] ss:$8 sps:$4 sm:$0xff]   ;;  %v5079_v35 = vld [vmem:[%s7130_s1 + $0xf4] ss:$8 sps:$4 sm:$0xff]  }
   0x9   :  { %277 = vmatpush1.bf16.msra.mxu0 %v5043_v11  ;;  %587 = vmatpush1.bf16.msra.mxu1 %v5044_v12  ;;  %v4391_v27 = vld [vmem:[%s7130_s1 + $0x100] sm:$0x33]  ;;  %v5077_v36 = vld [vmem:[%s7130_s1 + $0xf0] ss:$8 sps:$4 sm:$0xff]   ;;  %v5074_v39 = vld [vmem:[%s7131_s0 + $0x8] sm:$0xff]   ;;  %vm2122_vm3 = vcmask 998400  }
   0xa   :  { %278 = vmatprep.subr.bf16.mxu0 %v5045_v13  ;;  %588 = vmatprep.subr.bf16.mxu1 %v5047_v14  ;;  %v4415_v30 = vcombine.high %v4391_v27, %v4391_v27  ;;  %v4414_v31 = vcombine.low %v4391_v27, %v4391_v27  ;;  %v5069_v32 = vld [vmem:[%s7131_s0 + $0x4] sm:$0xff]   ;;  %v5073_v38 = vld [vmem:[%s7131_s0 + $0xc] sm:$0xff]   ;;  %v5093_v41 = vld [vmem:[%s7130_s1 + $0xd4] ss:$8 sps:$4 sm:$0xff]   ;;  %vm2244_vm4 = vcmask 80896   ;;  %vm2309_vm5 = vcmask 1043456  }
   0xb   :  { %v5070_v33 = vld [vmem:[%s7131_s0] sm:$0xff]   ;;  %v5075_v42 = vld [vmem:[%s7131_s0 + $0x14] sm:$0xff]   ;;  %v5105_v54 = vld [vmem:[%s7130_s1 + $0x148] ss:$8 sps:$4 sm:$0xff]   ;;  %vm2310_vm6 = vcmask 80900   ;;  %vm5282_vm8 = vmmov 0  }
   0xc   :  { %v922_v34 = vsel %vm263_vm0, %v4414_v31, 0  ;;  %v5086_v37 = vld [vmem:[%s7130_s1 + $0xe4] ss:$8 sps:$4 sm:$0xff]   ;;  %v5084_v40 = vld [vmem:[%s7130_s1 + $0xe0] ss:$8 sps:$4 sm:$0xff]   ;;  %v5076_v45 = vld [vmem:[%s7131_s0 + $0x10] sm:$0xff]  }
   0xd   :  { %279 = vmatpush1.bf16.msra.mxu0 %v5049_v15  ;;  %589 = vmatpush1.bf16.msra.mxu1 %v5050_v16  ;;  %v5091_v43 = vld [vmem:[%s7130_s1 + $0xd0] ss:$8 sps:$4 sm:$0xff]   ;;  %v5100_v44 = vld [vmem:[%s7130_s1 + $0xc4] ss:$8 sps:$4 sm:$0xff]   ;;  %v5098_v47 = vld [vmem:[%s7130_s1 + $0xc0] ss:$8 sps:$4 sm:$0xff]  }
   0xe   :  { %280 = vmatprep.subr.bf16.mxu0 %v5051_v17  ;;  %590 = vmatprep.subr.bf16.mxu1 %v5053_v18  ;;  %v4463_v46 = vld [vmem:[%s7130_s1 + $0x158] sm:$0x33]  ;;  %v5107_v50 = vld [vmem:[%s7130_s1 + $0x14c] ss:$8 sps:$4 sm:$0xff]   ;;  %v5116_v60 = vld [vmem:[%s7130_s1 + $0x128] ss:$8 sps:$4 sm:$0xff]  }
   0xf   :  { %v4487_v48 = vcombine.high %v4463_v46, %v4463_v46  ;;  %v4486_v49 = vcombine.low %v4463_v46, %v4463_v46  ;;  %v5112_v52 = vld [vmem:[%s7130_s1 + $0xb4] ss:$8 sps:$4 sm:$0xff]   ;;  %v5110_v55 = vld [vmem:[%s7130_s1 + $0xb0] ss:$8 sps:$4 sm:$0xff]   ;;  %v5082_v61 = vld [vmem:[%s7131_s0 + $0x24] sm:$0xff]   ;;  %vm3654_vm9 = vcmask 916480  }
  0x10   :  { %v5080_v53 = vld [vmem:[%s7131_s0 + $0x1c] sm:$0xff]   ;;  %v5118_v59 = vld [vmem:[%s7130_s1 + $0x12c] ss:$8 sps:$4 sm:$0xff]   ;;  %v5124_v7 = vld [vmem:[%s7130_s1 + $0x108] ss:$8 sps:$4 sm:$0xff]  }
  0x11   :  { %281 = vmatpush1.bf16.msra.mxu0 %v5055_v19  ;;  %591 = vmatpush1.bf16.msra.mxu1 %v5056_v20  ;;  %v1317_v51 = vsel %vm263_vm0, %v4486_v49, 0  ;;  %v5115_v56 = vld [vmem:[%s7130_s1 + $0x13c] ss:$8 sps:$4 sm:$0xff]   ;;  %v5113_v58 = vld [vmem:[%s7130_s1 + $0x138] ss:$8 sps:$4 sm:$0xff]   ;;  %v5087_v8 = vld [vmem:[%s7131_s0 + $0x2c] sm:$0xff]  }
  0x12   :  { %282 = vmatprep.subr.bf16.mxu0 %v5057_v21  ;;  %592 = vmatprep.subr.bf16.mxu1 %v5059_v22  ;;  %v5081_v57 = vld [vmem:[%s7131_s0 + $0x18] sm:$0xff]   ;;  %v4535_v62 = vld [vmem:[%s7130_s1 + $0x1b0] sm:$0x33]  ;;  %v5083_v3 = vld [vmem:[%s7131_s0 + $0x20] sm:$0xff]  }
  0x13   :  { %v5123_v63 = vld [vmem:[%s7130_s1 + $0x11c] ss:$8 sps:$4 sm:$0xff]   ;;  %v4559_v0 = vcombine.high %v4535_v62, %v4535_v62  ;;  %v4558_v1 = vcombine.low %v4535_v62, %v4535_v62  ;;  %v5121_v5 = vld [vmem:[%s7130_s1 + $0x118] ss:$8 sps:$4 sm:$0xff]   ;;  %v5126_v6 = vld [vmem:[%s7130_s1 + $0x10c] ss:$8 sps:$4 sm:$0xff]  }
  0x14   :  { %v5088_v9 = vld [vmem:[%s7131_s0 + $0x28] sm:$0xff]   ;;  %v5089_v10 = vld [vmem:[%s7131_s0 + $0x34] sm:$0xff]   ;;  %v5094_v12 = vld [vmem:[%s7131_s0 + $0x3c] sm:$0xff]  }
  0x15   :  { %283 = vmatpush1.bf16.msra.mxu0 %v5061_v23  ;;  %593 = vmatpush1.bf16.msra.mxu1 %v5062_v24  ;;  %v1712_v4 = vsel %vm263_vm0, %v4558_v1, 0  ;;  %v5090_v11 = vld [vmem:[%s7131_s0 + $0x30] sm:$0xff]   ;;  %v5095_v13 = vld [vmem:[%s7131_s0 + $0x38] sm:$0xff]   ;;  %v5096_v14 = vld [vmem:[%s7131_s0 + $0x44] sm:$0xff]  }
  0x16   :  { %284 = vmatprep.subr.bf16.mxu0 %v5063_v25  ;;  %594 = vmatprep.subr.bf16.mxu1 %v5065_v26  ;;  %v5097_v15 = vld [vmem:[%s7131_s0 + $0x40] sm:$0xff]   ;;  %v5101_v16 = vld [vmem:[%s7131_s0 + $0x4c] sm:$0xff]   ;;  %v5108_v18 = vld [vmem:[%s7131_s0 + $0x54] sm:$0xff]  }
  0x17   :  { %v5102_v17 = vld [vmem:[%s7131_s0 + $0x48] sm:$0xff]   ;;  %v5109_v19 = vld [vmem:[%s7131_s0 + $0x50] sm:$0xff]   ;;  %v5119_v20 = vld [vmem:[%s7131_s0 + $0x5c] sm:$0xff]  }
  0x18   :  { %v5120_v21 = vld [vmem:[%s7131_s0 + $0x58] sm:$0xff]   ;;  %v5127_v22 = vld [vmem:[%s7131_s0 + $0x8] sm:$0xff]   ;;  %v5131_v27 = vld [vmem:[%s7131_s0 + $0x10] sm:$0xff]  }
  0x19   :  { %285 = vmatpush1.bf16.msra.mxu0 %v5067_v28  ;;  %595 = vmatpush1.bf16.msra.mxu1 %v5068_v29  ;;  %v5130_v23 = vld [vmem:[%s7131_s0 + $0xc] sm:$0xff]   ;;  %v5134_v25 = vld [vmem:[%s7130_s1 + $0x1a0] ss:$8 sps:$4 sm:$0xff]   ;;  %v5143_v26 = vld [vmem:[%s7130_s1 + $0x194] ss:$8 sps:$4 sm:$0xff]  }
  0x1a   :  { %4416 = vmatprep.subr.msk.bf16.mxu0 %vm263_vm0, %v4415_v30  ;;  %4488 = vmatprep.subr.msk.bf16.mxu1 %vm263_vm0, %v4487_v48  ;;  %v5136_v24 = vld [vmem:[%s7130_s1 + $0x1a4] ss:$8 sps:$4 sm:$0xff]   ;;  %v5132_v28 = vld [vmem:[%s7131_s0 + $0x14] sm:$0xff]   ;;  %v5148_v31 = vld [vmem:[%s7130_s1 + $0x180] ss:$8 sps:$4 sm:$0xff]  }
  0x1b   :  { %v5141_v29 = vld [vmem:[%s7130_s1 + $0x190] ss:$8 sps:$4 sm:$0xff]   ;;  %v5150_v30 = vld [vmem:[%s7130_s1 + $0x184] ss:$8 sps:$4 sm:$0xff]   ;;  %vm6592_vm7 = vmor %vm2310_vm6, %vm2309_vm5 }
  0x1c   :  { %4308 = vmatmul.mubr.msk.bf16.vlgmr.msra.gmra.mxu0 %vm226_vm1, %v5069_v32  ;;  %4345 = vmatmul.mubr.msk.bf16.vlgmr.msra.gmra.mxu1 %vm226_vm1, %v5070_v33  ;;  %v5157_v32 = vld [vmem:[%s7130_s1 + $0x174] ss:$8 sps:$4 sm:$0xff]   ;;  %v5152_v46 = vld [vmem:[%s7131_s0 + $0x40] sm:$0xff]   ;;  %v5154_v48 = vld [vmem:[%s7131_s0 + $0x48] sm:$0xff]  }
  0x1d   :  { %932 = vmatpush1.bf16.msra.mxu0 %v922_v34  ;;  %312 = vmatprep.mubr.bf16.mxu0 %v7142_v2  ;;  %v5133_v33 = vld [vmem:[%s7131_s0 + $0x18] sm:$0xff]   ;;  %v5158_v49 = vld [vmem:[%s7131_s0 + $0x4c] sm:$0xff]  }
  0x1e   :  { %622 = vmatprep.mubr.bf16.mxu1 %v7142_v2  ;;  %933 = vmatprep.subr.bf16.mxu0 %v5079_v35  ;;  %v5137_v34 = vld [vmem:[%s7131_s0 + $0x1c] sm:$0xff]   ;;  %v5155_v35 = vld [vmem:[%s7130_s1 + $0x170] ss:$8 sps:$4 sm:$0xff]  }
  0x1f   :  { %1327 = vmatpush1.bf16.msra.mxu1 %v1317_v51  ;;  %v5160_v51 = vld [vmem:[%s7131_s0 + $0x54] sm:$0xff]  }
  0x20   :  { %1328 = vmatprep.subr.bf16.mxu1 %v5107_v50  ;;  %v5159_v50 = vld [vmem:[%s7131_s0 + $0x50] sm:$0xff]   ;;  %v5169_v1 = vld [vmem:[%s7131_s0 + $0x18] sm:$0xff]  }
  0x21   :  { %934 = vmatpush1.bf16.msra.mxu0 %v5077_v36  ;;  %v5164_v36 = vld [vmem:[%s7130_s1 + $0x164] ss:$8 sps:$4 sm:$0xff]  }
  0x22   :  { %935 = vmatprep.subr.bf16.mxu0 %v5086_v37  ;;  %v5162_v37 = vld [vmem:[%s7130_s1 + $0x160] ss:$8 sps:$4 sm:$0xff]  }
  0x23   :  { %1329 = vmatpush1.bf16.msra.mxu1 %v5105_v54  ;;  %v5166_v54 = vld [vmem:[%s7131_s0 + $0x60] sm:$0xff]  }
  0x24   :  { %4309 = vmatmul.mubr.msk.bf16.gmra.mxu0 %vm226_vm1, %v5073_v38  ;;  %4346 = vmatmul.mubr.msk.bf16.gmra.mxu1 %vm226_vm1, %v5074_v39  ;;  %v5138_v38 = vld [vmem:[%s7131_s0 + $0x20] sm:$0xff]  }
  0x25   :  { %322 = vmatprep.mubr.bf16.mxu0 %v7142_v2  ;;  %632 = vmatprep.mubr.bf16.mxu1 %v7142_v2  ;;  %v5139_v39 = vld [vmem:[%s7131_s0 + $0x24] sm:$0xff]  }
  0x26   :  { %936 = vmatpush1.bf16.msra.mxu0 %v5084_v40  ;;  %1330 = vmatprep.subr.bf16.mxu1 %v5115_v56  ;;  %v5140_v40 = vld [vmem:[%s7131_s0 + $0x28] sm:$0xff]   ;;  %v5168_v56 = vld [vmem:[%s7131_s0 + $0x10] sm:$0xff]  }
  0x27   :  { %937 = vmatprep.subr.bf16.mxu0 %v5093_v41  ;;  %1331 = vmatpush1.bf16.msra.mxu1 %v5113_v58  ;;  %v5144_v41 = vld [vmem:[%s7131_s0 + $0x2c] sm:$0xff]  }
  0x28   :  { %1332 = vmatprep.subr.bf16.mxu1 %v5118_v59 }
  0x2a   :  { %938 = vmatpush1.bf16.msra.mxu0 %v5091_v43  ;;  %v5146_v43 = vld [vmem:[%s7131_s0 + $0x34] sm:$0xff]  }
  0x2b   :  { %939 = vmatprep.subr.bf16.mxu0 %v5100_v44  ;;  %1333 = vmatpush1.bf16.msra.mxu1 %v5116_v60  ;;  %v5147_v44 = vld [vmem:[%s7131_s0 + $0x38] sm:$0xff]  }
  0x2c   :  { %4310 = vmatmul.mubr.msk.bf16.gmra.mxu0 %vm226_vm1, %v5075_v42  ;;  %4347 = vmatmul.mubr.msk.bf16.gmra.mxu1 %vm226_vm1, %v5076_v45  ;;  %v5145_v42 = vld [vmem:[%s7131_s0 + $0x30] sm:$0xff]   ;;  %v5151_v45 = vld [vmem:[%s7131_s0 + $0x3c] sm:$0xff]  }
  0x2d   :  { %332 = vmatprep.mubr.bf16.mxu0 %v7142_v2  ;;  %642 = vmatprep.mubr.bf16.mxu1 %v7142_v2 }
  0x2e   :  { %940 = vmatpush1.bf16.msra.mxu0 %v5098_v47  ;;  %1334 = vmatprep.subr.bf16.mxu1 %v5123_v63  ;;  %v5153_v47 = vld [vmem:[%s7131_s0 + $0x44] sm:$0xff]  }
  0x2f   :  { %941 = vmatprep.subr.bf16.mxu0 %v5112_v52  ;;  %1335 = vmatpush1.bf16.msra.mxu1 %v5121_v5  ;;  %v5161_v52 = vld [vmem:[%s7131_s0 + $0x58] sm:$0xff]  }
  0x30   :  { %1336 = vmatprep.subr.bf16.mxu1 %v5126_v6 }
  0x32   :  { %942 = vmatpush1.bf16.msra.mxu0 %v5110_v55  ;;  %v5167_v55 = vld [vmem:[%s7131_s0 + $0x64] sm:$0xff]  }
  0x33   :  { %4560 = vmatprep.subr.msk.bf16.mxu0 %vm263_vm0, %v4559_v0  ;;  %1337 = vmatpush1.bf16.msra.mxu1 %v5124_v7 }
  0x34   :  { %4311 = vmatmul.mubr.msk.bf16.gmra.mxu0 %vm226_vm1, %v5080_v53  ;;  %4348 = vmatmul.mubr.msk.bf16.gmra.mxu1 %vm226_vm1, %v5081_v57  ;;  %v5165_v53 = vld [vmem:[%s7131_s0 + $0x5c] sm:$0xff]  }
  0x35   :  { %342 = vmatprep.mubr.bf16.mxu0 %v7142_v2  ;;  %652 = vmatprep.mubr.bf16.mxu1 %v7142_v2 }
  0x36   :  { %2691 = vmatprep.subr.bf16.mxu1 %v7142_v2 }
  0x3c   :  { %4312 = vmatmul.mubr.msk.bf16.gmra.mxu0 %vm226_vm1, %v5082_v61  ;;  %4349 = vmatmul.mubr.msk.bf16.gmra.mxu1 %vm226_vm1, %v5083_v3 }
  0x3d   :  { %352 = vmatprep.mubr.bf16.mxu0 %v7142_v2  ;;  %662 = vmatprep.mubr.bf16.mxu1 %v7142_v2 }
  0x44   :  { %4313 = vmatmul.mubr.msk.bf16.gmra.mxu0 %vm226_vm1, %v5087_v8  ;;  %4350 = vmatmul.mubr.msk.bf16.gmra.mxu1 %vm226_vm1, %v5088_v9 }
  0x45   :  { %362 = vmatprep.mubr.bf16.mxu0 %v7142_v2  ;;  %672 = vmatprep.mubr.bf16.mxu1 %v7142_v2 }
  0x4c   :  { %4314 = vmatmul.mubr.msk.bf16.gmra.mxu0 %vm226_vm1, %v5089_v10  ;;  %4351 = vmatmul.mubr.msk.bf16.gmra.mxu1 %vm226_vm1, %v5090_v11 }
  0x4d   :  { %372 = vmatprep.mubr.bf16.mxu0 %v7142_v2  ;;  %682 = vmatprep.mubr.bf16.mxu1 %v7142_v2 }
  0x54   :  { %4315 = vmatmul.mubr.msk.bf16.gmra.mxu0 %vm226_vm1, %v5094_v12  ;;  %4352 = vmatmul.mubr.msk.bf16.gmra.mxu1 %vm226_vm1, %v5095_v13 }
  0x55   :  { %382 = vmatprep.mubr.bf16.mxu0 %v7142_v2  ;;  %692 = vmatprep.mubr.bf16.mxu1 %v7142_v2 }
  0x5c   :  { %4316 = vmatmul.mubr.msk.bf16.gmra.mxu0 %vm226_vm1, %v5096_v14  ;;  %4353 = vmatmul.mubr.msk.bf16.gmra.mxu1 %vm226_vm1, %v5097_v15  ;;  %v5170_v14 = vld [vmem:[%s7131_s0 + $0x20] sm:$0xff]  }
  0x5d   :  { %392 = vmatprep.mubr.bf16.mxu0 %v7142_v2  ;;  %702 = vmatprep.mubr.bf16.mxu1 %v7142_v2 }
  0x64   :  { %4317 = vmatmul.mubr.msk.bf16.gmra.mxu0 %vm226_vm1, %v5101_v16  ;;  %4354 = vmatmul.mubr.msk.bf16.gmra.mxu1 %vm226_vm1, %v5102_v17 }
  0x65   :  { %402 = vmatprep.mubr.bf16.mxu0 %v7142_v2  ;;  %712 = vmatprep.mubr.bf16.mxu1 %v7142_v2 }
  0x6c   :  { %4318 = vmatmul.mubr.msk.bf16.gmra.mxu0 %vm226_vm1, %v5108_v18  ;;  %4355 = vmatmul.mubr.msk.bf16.gmra.mxu1 %vm226_vm1, %v5109_v19 }
  0x6d   :  { %412 = vmatprep.mubr.bf16.mxu0 %v7142_v2  ;;  %722 = vmatprep.mubr.bf16.mxu1 %v7142_v2 }
  0x74   :  { %4319 = vmatmul.mubr.msk.bf16.gmra.mxu0 %vm226_vm1, %v5119_v20  ;;  %4356 = vmatmul.mubr.msk.bf16.gmra.mxu1 %vm226_vm1, %v5120_v21 }
  0x75   :  { %959 = vmatprep.mubr.bf16.mxu0 %v7142_v2  ;;  %1354 = vmatprep.mubr.bf16.mxu1 %v7142_v2 }
  0x7c   :  { %4417 = vmatmul.mubr.msk.bf16.vlgmr.msra.gmra.mxu0 %vm226_vm1, %v5127_v22  ;;  %4489 = vmatmul.mubr.msk.bf16.vlgmr.msra.gmra.mxu1 %vm226_vm1, %v5130_v23 }
  0x7d   :  { %1722 = vmatpush1.bf16.msra.mxu0 %v1712_v4  ;;  %969 = vmatprep.mubr.bf16.mxu0 %v7142_v2 }
  0x7e   :  { %1364 = vmatprep.mubr.bf16.mxu1 %v7142_v2  ;;  %1723 = vmatprep.subr.bf16.mxu0 %v5136_v24 }
  0x81   :  { %1724 = vmatpush1.bf16.msra.mxu0 %v5134_v25 }
  0x82   :  { %1725 = vmatprep.subr.bf16.mxu0 %v5143_v26  ;;  %v5171_v26 = vld [vmem:[%s7131_s0 + $0x28] sm:$0xff]  }
  0x84   :  { %4418 = vmatmul.mubr.msk.bf16.gmra.mxu0 %vm226_vm1, %v5131_v27  ;;  %4490 = vmatmul.mubr.msk.bf16.gmra.mxu1 %vm226_vm1, %v5132_v28 }
  0x85   :  { %979 = vmatprep.mubr.bf16.mxu0 %v7142_v2  ;;  %1374 = vmatprep.mubr.bf16.mxu1 %v7142_v2 }
  0x86   :  { %1726 = vmatpush1.bf16.msra.mxu0 %v5141_v29 }
  0x87   :  { %1727 = vmatprep.subr.bf16.mxu0 %v5150_v30 }
  0x8a   :  { %1728 = vmatpush1.bf16.msra.mxu0 %v5148_v31 }
  0x8b   :  { %1729 = vmatprep.subr.bf16.mxu0 %v5157_v32 }
  0x8c   :  { %4419 = vmatmul.mubr.msk.bf16.gmra.mxu0 %vm226_vm1, %v5133_v33  ;;  %4491 = vmatmul.mubr.msk.bf16.gmra.mxu1 %vm226_vm1, %v5137_v34 }
  0x8d   :  { %989 = vmatprep.mubr.bf16.mxu0 %v7142_v2  ;;  %1384 = vmatprep.mubr.bf16.mxu1 %v7142_v2 }
  0x8e   :  { %1730 = vmatpush1.bf16.msra.mxu0 %v5155_v35 }
  0x8f   :  { %1731 = vmatprep.subr.bf16.mxu0 %v5164_v36 }
  0x92   :  { %1732 = vmatpush1.bf16.msra.mxu0 %v5162_v37 }
  0x93   :  { %3260 = vmatprep.subr.bf16.mxu0 %v7142_v2 }
  0x94   :  { %4420 = vmatmul.mubr.msk.bf16.gmra.mxu0 %vm226_vm1, %v5138_v38  ;;  %4492 = vmatmul.mubr.msk.bf16.gmra.mxu1 %vm226_vm1, %v5139_v39  ;;  %v5172_v38 = vld [vmem:[%s7131_s0 + $0x30] sm:$0xff]  }
  0x95   :  { %999 = vmatprep.mubr.bf16.mxu0 %v7142_v2  ;;  %1394 = vmatprep.mubr.bf16.mxu1 %v7142_v2 }
  0x9c   :  { %4421 = vmatmul.mubr.msk.bf16.gmra.mxu0 %vm226_vm1, %v5140_v40  ;;  %4493 = vmatmul.mubr.msk.bf16.gmra.mxu1 %vm226_vm1, %v5144_v41 }
  0x9d   :  { %1009 = vmatprep.mubr.bf16.mxu0 %v7142_v2  ;;  %1404 = vmatprep.mubr.bf16.mxu1 %v7142_v2 }
  0xa4   :  { %4422 = vmatmul.mubr.msk.bf16.gmra.mxu0 %vm226_vm1, %v5145_v42  ;;  %4494 = vmatmul.mubr.msk.bf16.gmra.mxu1 %vm226_vm1, %v5146_v43 }
  0xa5   :  { %1019 = vmatprep.mubr.bf16.mxu0 %v7142_v2  ;;  %1414 = vmatprep.mubr.bf16.mxu1 %v7142_v2 }
  0xac   :  { %4423 = vmatmul.mubr.msk.bf16.gmra.mxu0 %vm226_vm1, %v5147_v44  ;;  %4495 = vmatmul.mubr.msk.bf16.gmra.mxu1 %vm226_vm1, %v5151_v45 }
  0xad   :  { %1029 = vmatprep.mubr.bf16.mxu0 %v7142_v2  ;;  %1424 = vmatprep.mubr.bf16.mxu1 %v7142_v2 }
  0xb4   :  { %4424 = vmatmul.mubr.msk.bf16.gmra.mxu0 %vm226_vm1, %v5152_v46  ;;  %4496 = vmatmul.mubr.msk.bf16.gmra.mxu1 %vm226_vm1, %v5153_v47 }
  0xb5   :  { %1039 = vmatprep.mubr.bf16.mxu0 %v7142_v2  ;;  %1434 = vmatprep.mubr.bf16.mxu1 %v7142_v2 }
  0xbc   :  { %4425 = vmatmul.mubr.msk.bf16.gmra.mxu0 %vm226_vm1, %v5154_v48  ;;  %4497 = vmatmul.mubr.msk.bf16.gmra.mxu1 %vm226_vm1, %v5158_v49 }
  0xbd   :  { %1049 = vmatprep.mubr.bf16.mxu0 %v7142_v2  ;;  %1444 = vmatprep.mubr.bf16.mxu1 %v7142_v2 }
  0xc4   :  { %4426 = vmatmul.mubr.msk.bf16.gmra.mxu0 %vm226_vm1, %v5159_v50  ;;  %4498 = vmatmul.mubr.msk.bf16.gmra.mxu1 %vm226_vm1, %v5160_v51  ;;  %v5173_v50 = vld [vmem:[%s7131_s0 + $0x38] sm:$0xff]  }
  0xc5   :  { %1059 = vmatprep.mubr.bf16.mxu0 %v7142_v2  ;;  %1454 = vmatprep.mubr.bf16.mxu1 %v7142_v2 }
  0xcc   :  { %4427 = vmatmul.mubr.msk.bf16.gmra.mxu0 %vm226_vm1, %v5161_v52  ;;  %4499 = vmatmul.mubr.msk.bf16.gmra.mxu1 %vm226_vm1, %v5165_v53 }
  0xcd   :  { %1069 = vmatprep.mubr.bf16.mxu0 %v7142_v2  ;;  %1464 = vmatprep.mubr.bf16.mxu1 %v7142_v2 }
  0xd4   :  { %4428 = vmatmul.mubr.msk.bf16.gmra.mxu0 %vm226_vm1, %v5166_v54  ;;  %4500 = vmatmul.mubr.msk.bf16.gmra.mxu1 %vm226_vm1, %v5167_v55 }
  0xd5   :  { %1749 = vmatprep.mubr.bf16.mxu0 %v7142_v2 }
  0xdc   :  { %v304_v57 = vpop.f32.mrf.mxu0  ;;  %v614_v58 = vpop.f32.mrf.mxu1  ;;  %4561 = vmatmul.mubr.msk.bf16.vlgmr.msra.gmra.mxu0 %vm226_vm1, %v5168_v56 }
  0xdd   :  { %v5766_v59 = vadd.f32 %v614_v58, %v304_v57  ;;  %1759 = vmatprep.mubr.bf16.mxu0 %v7142_v2 }
  0xde   :  { %v306_v60 = vpop.f32.mrf.mxu0  ;;  %v616_v61 = vpop.f32.mrf.mxu1 }
  0xdf   :  { %v5769_v62 = vadd.f32 %v616_v61, %v306_v60 }
  0xe0   :  { %v308_v63 = vpop.f32.mrf.mxu0  ;;  %v618_v0 = vpop.f32.mrf.mxu1 }
  0xe1   :  { %v5774_v3 = vadd.f32 %v618_v0, %v308_v63  ;;  %v5174_v0 = vld [vmem:[%s7131_s0 + $0x40] sm:$0xff]  }
  0xe2   :  { %v5776_v4 = vpop.f32.mrf.mxu0  ;;  %v5778_v5 = vpop.f32.mrf.mxu1 }
  0xe4   :  { %v314_v6 = vpop.f32.mrf.mxu0  ;;  %v624_v7 = vpop.f32.mrf.mxu1  ;;  %4562 = vmatmul.mubr.msk.bf16.gmra.mxu0 %vm226_vm1, %v5169_v1 }
  0xe5   :  { %v5781_v8 = vadd.f32 %v624_v7, %v314_v6  ;;  %1769 = vmatprep.mubr.bf16.mxu0 %v7142_v2 }
  0xe6   :  { %v316_v9 = vpop.f32.mrf.mxu0  ;;  %v626_v10 = vpop.f32.mrf.mxu1 }
  0xe7   :  { %v5784_v11 = vadd.f32 %v626_v10, %v316_v9 }
  0xe8   :  { %v318_v12 = vpop.f32.mrf.mxu0  ;;  %v628_v13 = vpop.f32.mrf.mxu1 }
  0xe9   :  { %v5789_v15 = vadd.f32 %v628_v13, %v318_v12 }
  0xea   :  { %v5791_v16 = vpop.f32.mrf.mxu0  ;;  %v5793_v17 = vpop.f32.mrf.mxu1 }
  0xeb   :  { %7147 = vst [vmem:[#allocation5_spill] sm:$0xff] %v5793_v17 }
  0xec   :  { %v324_v18 = vpop.f32.mrf.mxu0  ;;  %v634_v19 = vpop.f32.mrf.mxu1  ;;  %4563 = vmatmul.mubr.msk.bf16.gmra.mxu0 %vm226_vm1, %v5170_v14 }
  0xed   :  { %v5796_v20 = vadd.f32 %v634_v19, %v324_v18  ;;  %1779 = vmatprep.mubr.bf16.mxu0 %v7142_v2 }
  0xee   :  { %v326_v21 = vpop.f32.mrf.mxu0  ;;  %v636_v22 = vpop.f32.mrf.mxu1 }
  0xef   :  { %v5799_v23 = vadd.f32 %v636_v22, %v326_v21  ;;  %v5175_v22 = vld [vmem:[%s7131_s0 + $0x48] sm:$0xff]  }
  0xf0   :  { %v328_v24 = vpop.f32.mrf.mxu0  ;;  %v638_v25 = vpop.f32.mrf.mxu1 }
  0xf1   :  { %v5804_v27 = vadd.f32 %v638_v25, %v328_v24 }
  0xf2   :  { %v5806_v28 = vpop.f32.mrf.mxu0  ;;  %v5808_v29 = vpop.f32.mrf.mxu1 }
  0xf3   :  { %7148 = vst [vmem:[#allocation6_spill] sm:$0xff] %v5806_v28  ;;  %7149 = vst [vmem:[#allocation7_spill] sm:$0xff] %v5808_v29 }
  0xf4   :  { %v334_v30 = vpop.f32.mrf.mxu0  ;;  %v644_v31 = vpop.f32.mrf.mxu1  ;;  %4564 = vmatmul.mubr.msk.bf16.gmra.mxu0 %vm226_vm1, %v5171_v26 }
  0xf5   :  { %v5811_v32 = vadd.f32 %v644_v31, %v334_v30  ;;  %1789 = vmatprep.mubr.bf16.mxu0 %v7142_v2 }
  0xf6   :  { %v336_v33 = vpop.f32.mrf.mxu0  ;;  %v646_v34 = vpop.f32.mrf.mxu1 }
  0xf7   :  { %v5814_v35 = vadd.f32 %v646_v34, %v336_v33 }
  0xf8   :  { %v338_v36 = vpop.f32.mrf.mxu0  ;;  %v648_v37 = vpop.f32.mrf.mxu1 }
  0xf9   :  { %v5819_v39 = vadd.f32 %v648_v37, %v338_v36 }
  0xfa   :  { %v5821_v40 = vpop.f32.mrf.mxu0  ;;  %v5823_v41 = vpop.f32.mrf.mxu1 }
  0xfc   :  { %v344_v42 = vpop.f32.mrf.mxu0  ;;  %v654_v43 = vpop.f32.mrf.mxu1  ;;  %4565 = vmatmul.mubr.msk.bf16.gmra.mxu0 %vm226_vm1, %v5172_v38 }
  0xfd   :  { %v5826_v44 = vadd.f32 %v654_v43, %v344_v42  ;;  %1799 = vmatprep.mubr.bf16.mxu0 %v7142_v2  ;;  %v5176_v43 = vld [vmem:[%s7131_s0 + $0x50] sm:$0xff]  }
  0xfe   :  { %v346_v45 = vpop.f32.mrf.mxu0  ;;  %v656_v46 = vpop.f32.mrf.mxu1 }
  0xff   :  { %v5829_v47 = vadd.f32 %v656_v46, %v346_v45 }
 0x100   :  { %v348_v48 = vpop.f32.mrf.mxu0  ;;  %v658_v49 = vpop.f32.mrf.mxu1 }
 0x101   :  { %v5834_v51 = vadd.f32 %v658_v49, %v348_v48 }
 0x102   :  { %v5836_v52 = vpop.f32.mrf.mxu0  ;;  %v5838_v53 = vpop.f32.mrf.mxu1 }
 0x104   :  { %v354_v54 = vpop.f32.mrf.mxu0  ;;  %v664_v55 = vpop.f32.mrf.mxu1  ;;  %4566 = vmatmul.mubr.msk.bf16.gmra.mxu0 %vm226_vm1, %v5173_v50 }
 0x105   :  { %v5841_v56 = vadd.f32 %v664_v55, %v354_v54  ;;  %1809 = vmatprep.mubr.bf16.mxu0 %v7142_v2 }
 0x106   :  { %v356_v57 = vpop.f32.mrf.mxu0  ;;  %v666_v58 = vpop.f32.mrf.mxu1 }
 0x107   :  { %v5844_v60 = vadd.f32 %v666_v58, %v356_v57 }
 0x108   :  { %v358_v61 = vpop.f32.mrf.mxu0  ;;  %v668_v63 = vpop.f32.mrf.mxu1 }
 0x109   :  { %v5849_v1 = vadd.f32 %v668_v63, %v358_v61 }
 0x10a   :  { %v5851_v6 = vpop.f32.mrf.mxu0  ;;  %v5853_v7 = vpop.f32.mrf.mxu1 }
 0x10c   :  { %v364_v9 = vpop.f32.mrf.mxu0  ;;  %v674_v10 = vpop.f32.mrf.mxu1  ;;  %4567 = vmatmul.mubr.msk.bf16.gmra.mxu0 %vm226_vm1, %v5174_v0  ;;  %v5177_v0 = vld [vmem:[%s7131_s0 + $0x58] sm:$0xff]  }
 0x10d   :  { %v5856_v12 = vadd.f32 %v674_v10, %v364_v9  ;;  %1819 = vmatprep.mubr.bf16.mxu0 %v7142_v2 }
 0x10e   :  { %v366_v13 = vpop.f32.mrf.mxu0  ;;  %v676_v14 = vpop.f32.mrf.mxu1 }
 0x10f   :  { %v5859_v18 = vadd.f32 %v676_v14, %v366_v13 }
 0x110   :  { %v368_v19 = vpop.f32.mrf.mxu0  ;;  %v678_v21 = vpop.f32.mrf.mxu1 }
 0x111   :  { %v5864_v24 = vadd.f32 %v678_v21, %v368_v19 }
 0x112   :  { %v5866_v25 = vpop.f32.mrf.mxu0  ;;  %v5868_v26 = vpop.f32.mrf.mxu1 }
 0x114   :  { %v374_v30 = vpop.f32.mrf.mxu0  ;;  %v684_v31 = vpop.f32.mrf.mxu1  ;;  %4568 = vmatmul.mubr.msk.bf16.gmra.mxu0 %vm226_vm1, %v5175_v22 }
 0x115   :  { %v5871_v33 = vadd.f32 %v684_v31, %v374_v30  ;;  %1829 = vmatprep.mubr.bf16.mxu0 %v7142_v2 }
 0x116   :  { %v376_v34 = vpop.f32.mrf.mxu0  ;;  %v686_v36 = vpop.f32.mrf.mxu1 }
 0x117   :  { %v5874_v37 = vadd.f32 %v686_v36, %v376_v34 }
 0x118   :  { %v378_v38 = vpop.f32.mrf.mxu0  ;;  %v688_v42 = vpop.f32.mrf.mxu1 }
 0x119   :  { %v5879_v45 = vadd.f32 %v688_v42, %v378_v38  ;;  %v5178_v38 = vld [vmem:[%s7131_s0 + $0x60] sm:$0xff]  }
 0x11a   :  { %v5881_v46 = vpop.f32.mrf.mxu0  ;;  %v5883_v48 = vpop.f32.mrf.mxu1 }
 0x11c   :  { %v384_v49 = vpop.f32.mrf.mxu0  ;;  %v694_v50 = vpop.f32.mrf.mxu1  ;;  %4569 = vmatmul.mubr.msk.bf16.gmra.mxu0 %vm226_vm1, %v5176_v43 }
 0x11d   :  { %v5886_v54 = vadd.f32 %v694_v50, %v384_v49  ;;  %1839 = vmatprep.mubr.bf16.mxu0 %v7142_v2 }
 0x11e   :  { %v386_v55 = vpop.f32.mrf.mxu0  ;;  %v696_v57 = vpop.f32.mrf.mxu1 }
 0x11f   :  { %v5889_v58 = vadd.f32 %v696_v57, %v386_v55 }
 0x120   :  { %v388_v61 = vpop.f32.mrf.mxu0  ;;  %v698_v63 = vpop.f32.mrf.mxu1 }
 0x121   :  { %v5894_v9 = vadd.f32 %v698_v63, %v388_v61 }
 0x122   :  { %v5896_v10 = vpop.f32.mrf.mxu0  ;;  %v5898_v13 = vpop.f32.mrf.mxu1 }
 0x123   :  { %7150 = vst [vmem:[#allocation8_spill] sm:$0xff] %v5896_v10  ;;  %7151 = vst [vmem:[#allocation9_spill] sm:$0xff] %v5898_v13 }
 0x124   :  { %v394_v14 = vpop.f32.mrf.mxu0  ;;  %v704_v19 = vpop.f32.mrf.mxu1  ;;  %4570 = vmatmul.mubr.msk.bf16.gmra.mxu0 %vm226_vm1, %v5177_v0 }
 0x125   :  { %v5901_v21 = vadd.f32 %v704_v19, %v394_v14  ;;  %1849 = vmatprep.mubr.bf16.mxu0 %v7142_v2 }
 0x126   :  { %v396_v22 = vpop.f32.mrf.mxu0  ;;  %v706_v30 = vpop.f32.mrf.mxu1 }
 0x127   :  { %v5904_v31 = vadd.f32 %v706_v30, %v396_v22  ;;  %v5179_v22 = vld [vmem:[%s7131_s0 + $0x68] sm:$0xff]  }
 0x128   :  { %v398_v34 = vpop.f32.mrf.mxu0  ;;  %v708_v36 = vpop.f32.mrf.mxu1 }
 0x129   :  { %v5909_v42 = vadd.f32 %v708_v36, %v398_v34 }
 0x12a   :  { %v5911_v43 = vpop.f32.mrf.mxu0  ;;  %v5913_v49 = vpop.f32.mrf.mxu1 }
 0x12b   :  { %7152 = vst [vmem:[#allocation10_spill] sm:$0xff] %v5911_v43  ;;  %7153 = vst [vmem:[#allocation11_spill] sm:$0xff] %v5913_v49 }
 0x12c   :  { %v404_v50 = vpop.f32.mrf.mxu0  ;;  %v714_v55 = vpop.f32.mrf.mxu1  ;;  %4571 = vmatmul.mubr.msk.bf16.gmra.mxu0 %vm226_vm1, %v5178_v38 }
 0x12d   :  { %v5916_v57 = vadd.f32 %v714_v55, %v404_v50  ;;  %1859 = vmatprep.mubr.bf16.mxu0 %v7142_v2 }
 0x12e   :  { %v406_v61 = vpop.f32.mrf.mxu0  ;;  %v716_v63 = vpop.f32.mrf.mxu1 }
 0x12f   :  { %v5919_v0 = vadd.f32 %v716_v63, %v406_v61 }
 0x130   :  { %v408_v14 = vpop.f32.mrf.mxu0  ;;  %v718_v19 = vpop.f32.mrf.mxu1 }
 0x131   :  { %v5924_v30 = vadd.f32 %v718_v19, %v408_v14 }
 0x132   :  { %v5926_v34 = vpop.f32.mrf.mxu0  ;;  %v5928_v36 = vpop.f32.mrf.mxu1 }
 0x133   :  { %7154 = vst [vmem:[#allocation12_spill] sm:$0xff] %v5926_v34  ;;  %7155 = vst [vmem:[#allocation13_spill] sm:$0xff] %v5928_v36 }
 0x134   :  { %v414_v38 = vpop.f32.mrf.mxu0  ;;  %v724_v50 = vpop.f32.mrf.mxu1  ;;  %4572 = vmatmul.mubr.msk.bf16.gmra.mxu0 %vm226_vm1, %v5179_v22 }
 0x135   :  { %v5931_v55 = vadd.f32 %v724_v50, %v414_v38 }
 0x136   :  { %v416_v61 = vpop.f32.mrf.mxu0  ;;  %v726_v63 = vpop.f32.mrf.mxu1 }
 0x137   :  { %v5933_v2 = vadd.f32 %v726_v63, %v416_v61 }
 0x138   :  { %v418_v49 = vpop.f32.mrf.mxu0  ;;  %v728_v43 = vpop.f32.mrf.mxu1 }
 0x139   :  { %v5935_v13 = vadd.f32 %v728_v43, %v418_v49 }
 0x13a   :  { %v5937_v14 = vpop.f32.mrf.mxu0  ;;  %v5939_v19 = vpop.f32.mrf.mxu1 }
 0x13b   :  { %7156 = vst [vmem:[#allocation14_spill] sm:$0xff] %v5937_v14  ;;  %7157 = vst [vmem:[#allocation15_spill] sm:$0xff] %v5939_v19 }
 0x13c   :  { %v961_v34 = vpop.f32.mrf.mxu0  ;;  %v1356_v36 = vpop.f32.mrf.mxu1 }
 0x13d   :  { %v1080_v10 = vadd.f32 %v961_v34, %v5766_v59 }
 0x13e   :  { %v963_v29 = vpop.f32.mrf.mxu0  ;;  %v1358_v22 = vpop.f32.mrf.mxu1 }
 0x13f   :  { %v1081_v38 = vadd.f32 %v963_v29, %v5769_v62  ;;  %v5943_v50 = vadd.f32 %v1356_v36, %v1080_v10 }
 0x140   :  { %v965_v61 = vpop.f32.mrf.mxu0  ;;  %v1360_v63 = vpop.f32.mrf.mxu1 }
 0x141   :  { %v1082_v28 = vadd.f32 %v965_v61, %v5774_v3  ;;  %v5946_v43 = vadd.f32 %v1358_v22, %v1081_v38 }
 0x142   :  { %v5948_v49 = vpop.f32.mrf.mxu0 }
 0x143   :  { %v5950_v14 = vadd.f32 %v1360_v63, %v1082_v28  ;;  %v5966_v28 = vpop.f32.mrf.mxu1 }
 0x144   :  { %v971_v19 = vpop.f32.mrf.mxu0 }
 0x145   :  { %v5953_v17 = vadd.f32 %v971_v19, %v5781_v8  ;;  %v5974_v38 = vpop.f32.mrf.mxu1 }
 0x146   :  { %v973_v59 = vpop.f32.mrf.mxu0 }
 0x147   :  { %v5956_v34 = vadd.f32 %v973_v59, %v5784_v11 }
 0x148   :  { %v975_v62 = vpop.f32.mrf.mxu0 }
 0x149   :  { %v5959_v29 = vadd.f32 %v975_v62, %v5789_v15 }
 0x14a   :  { %v5961_v10 = vpop.f32.mrf.mxu0 }
 0x14c   :  { %v981_v3 = vpop.f32.mrf.mxu0 }
 0x14d   :  { %v5964_v36 = vadd.f32 %v981_v3, %v5796_v20  ;;  %v5981_v20 = vpop.f32.mrf.mxu1  ;;  %v651_v3 = vadd.f32 %v5823_v41, %v5821_v40 }
 0x14e   :  { %v983_v22 = vpop.f32.mrf.mxu0 }
 0x14f   :  { %v5969_v8 = vadd.f32 %v983_v22, %v5799_v23  ;;  %v5991_v22 = vpop.f32.mrf.mxu1 }
 0x150   :  { %v985_v19 = vpop.f32.mrf.mxu0 }
 0x151   :  { %v5972_v11 = vadd.f32 %v985_v19, %v5804_v27 }
 0x152   :  { %v5976_v15 = vpop.f32.mrf.mxu0 }
 0x153   :  { %7158 = vst [vmem:[#allocation16_spill] sm:$0xff] %v5972_v11 }
 0x154   :  { %v991_v61 = vpop.f32.mrf.mxu0 }
 0x155   :  { %v5979_v63 = vadd.f32 %v991_v61, %v5811_v32 }
 0x156   :  { %v993_v59 = vpop.f32.mrf.mxu0 }
 0x157   :  { %7159 = vst [vmem:[#allocation17_spill] sm:$0xff] %v5979_v63  ;;  %v5984_v62 = vadd.f32 %v993_v59, %v5814_v35  ;;  %v5998_v63 = vpop.f32.mrf.mxu1 }
 0x158   :  { %v995_v23 = vpop.f32.mrf.mxu0 }
 0x159   :  { %7160 = vst [vmem:[#allocation18_spill] sm:$0xff] %v5984_v62  ;;  %v5989_v27 = vadd.f32 %v995_v23, %v5819_v39  ;;  %v661_v39 = vadd.f32 %v5838_v53, %v5836_v52  ;;  %v6008_v41 = vpop.f32.mrf.mxu1 }
 0x15a   :  { %v997_v19 = vpop.f32.mrf.mxu0 }
 0x15b   :  { %v5993_v11 = vadd.f32 %v997_v19, %v651_v3 }
 0x15c   :  { %v1001_v32 = vpop.f32.mrf.mxu0 }
 0x15d   :  { %v5996_v61 = vadd.f32 %v1001_v32, %v5826_v44  ;;  %v6015_v32 = vpop.f32.mrf.mxu1 }
 0x15e   :  { %v1003_v35 = vpop.f32.mrf.mxu0 }
 0x15f   :  { %v6001_v59 = vadd.f32 %v1003_v35, %v5829_v47  ;;  %v6025_v53 = vpop.f32.mrf.mxu1 }
 0x160   :  { %v1005_v62 = vpop.f32.mrf.mxu0 }
 0x161   :  { %7161 = vst [vmem:[#allocation19_spill] sm:$0xff] %v6001_v59  ;;  %v6006_v40 = vadd.f32 %v1005_v62, %v5834_v51  ;;  %v671_v51 = vadd.f32 %v5853_v7, %v5851_v6 }
 0x162   :  { %v1007_v23 = vpop.f32.mrf.mxu0 }
 0x163   :  { %v6010_v3 = vadd.f32 %v1007_v23, %v661_v39 }
 0x164   :  { %v1011_v44 = vpop.f32.mrf.mxu0 }
 0x165   :  { %v6013_v19 = vadd.f32 %v1011_v44, %v5841_v56  ;;  %v6032_v44 = vpop.f32.mrf.mxu1 }
 0x166   :  { %v1013_v47 = vpop.f32.mrf.mxu0 }
 0x167   :  { %v6018_v35 = vadd.f32 %v1013_v47, %v5844_v60  ;;  %v6042_v7 = vpop.f32.mrf.mxu1 }
 0x168   :  { %v1015_v59 = vpop.f32.mrf.mxu0 }
 0x169   :  { %7162 = vst [vmem:[#allocation20_spill] sm:$0xff] %v6018_v35  ;;  %v6023_v52 = vadd.f32 %v1015_v59, %v5849_v1  ;;  %v681_v1 = vadd.f32 %v5868_v26, %v5866_v25 }
 0x16a   :  { %v1017_v62 = vpop.f32.mrf.mxu0 }
 0x16b   :  { %v6027_v39 = vadd.f32 %v1017_v62, %v671_v51 }
 0x16c   :  { %v1021_v56 = vpop.f32.mrf.mxu0 }
 0x16d   :  { %v6030_v23 = vadd.f32 %v1021_v56, %v5856_v12  ;;  %v6049_v56 = vpop.f32.mrf.mxu1 }
 0x16e   :  { %v1023_v60 = vpop.f32.mrf.mxu0 }
 0x16f   :  { %v6035_v47 = vadd.f32 %v1023_v60, %v5859_v18  ;;  %v6059_v26 = vpop.f32.mrf.mxu1 }
 0x170   :  { %v1025_v35 = vpop.f32.mrf.mxu0 }
 0x171   :  { %7163 = vst [vmem:[#allocation21_spill] sm:$0xff] %v6035_v47  ;;  %v6040_v6 = vadd.f32 %v1025_v35, %v5864_v24  ;;  %v691_v24 = vadd.f32 %v5883_v48, %v5881_v46 }
 0x172   :  { %v1027_v59 = vpop.f32.mrf.mxu0 }
 0x173   :  { %v6044_v51 = vadd.f32 %v1027_v59, %v681_v1 }
 0x174   :  { %v1031_v12 = vpop.f32.mrf.mxu0 }
 0x175   :  { %v6047_v62 = vadd.f32 %v1031_v12, %v5871_v33  ;;  %v6066_v12 = vpop.f32.mrf.mxu1 }
 0x176   :  { %v1033_v18 = vpop.f32.mrf.mxu0 }
 0x177   :  { %v6052_v60 = vadd.f32 %v1033_v18, %v5874_v37  ;;  %v5180_v18 = vld [vmem:[%s7132_s3 + $0x80] sm:$0xff]  }
 0x178   :  { %v1035_v47 = vpop.f32.mrf.mxu0  ;;  %2692 = vmatpush1.bf16.msra.mxu1 %v5180_v18 }
 0x179   :  { %v6057_v25 = vadd.f32 %v1035_v47, %v5879_v45  ;;  %v7166_v47 = vmov 0  }
 0x17a   :  { %v1037_v35 = vpop.f32.mrf.mxu0  ;;  %2693 = vmatprep.subr.bf16.mxu1 %v7166_v47 }
 0x17b   :  { %v6061_v1 = vadd.f32 %v1037_v35, %v691_v24  ;;  %v6078_v24 = vpop.f32.mrf.mxu1 }
 0x17c   :  { %v1041_v33 = vpop.f32.mrf.mxu0 }
 0x17d   :  { %v6064_v59 = vadd.f32 %v1041_v33, %v5886_v54 }
 0x17e   :  { %v1043_v37 = vpop.f32.mrf.mxu0 }
 0x17f   :  { %v6072_v46 = vadd.f32 %v1043_v37, %v5889_v58  ;;  %v5181_v58 = vld [vmem:[%s7132_s3 + $0x78] sm:$0xff]   ;;  %v6088_v37 = vpop.f32.mrf.mxu1 }
 0x180   :  { %v1045_v45 = vpop.f32.mrf.mxu0  ;;  %2694 = vmatpush1.bf16.msra.mxu1 %v5181_v58 }
 0x181   :  { %7164 = vst [vmem:[#allocation22_spill] sm:$0xff] %v6072_v46  ;;  %v6075_v48 = vadd.f32 %v1045_v45, %v5894_v9  ;;  %2695 = vmatprep.subr.bf16.mxu1 %v7166_v47 }
 0x182   :  { %v6080_v54 = vpop.f32.mrf.mxu0 }
 0x183   :  { %7165 = vst [vmem:[#allocation23_spill] sm:$0xff] %v6075_v48  ;;  %7167 = vst [vmem:[#allocation24_spill] sm:$0xff] %v6080_v54 }
 0x184   :  { %v1051_v35 = vpop.f32.mrf.mxu0 }
 0x185   :  { %v6083_v33 = vadd.f32 %v1051_v35, %v5901_v21  ;;  %v5182_v21 = vld [vmem:[%s7132_s3 + $0x70] sm:$0xff]   ;;  %v6100_v35 = vpop.f32.mrf.mxu1 }
 0x186   :  { %v1053_v18 = vpop.f32.mrf.mxu0  ;;  %2696 = vmatpush1.bf16.msra.mxu1 %v5182_v21 }
 0x187   :  { %7168 = vst [vmem:[#allocation25_spill] sm:$0xff] %v6083_v33  ;;  %v6091_v9 = vadd.f32 %v1053_v18, %v5904_v31  ;;  %2697 = vmatprep.subr.bf16.mxu1 %v7166_v47  ;;  %v6108_v58 = vpop.f32.mrf.mxu1 }
 0x188   :  { %v1055_v45 = vpop.f32.mrf.mxu0 }
 0x189   :  { %7169 = vst [vmem:[#allocation26_spill] sm:$0xff] %v6091_v9  ;;  %v6095_v48 = vadd.f32 %v1055_v45, %v5909_v42  ;;  %v6116_v9 = vpop.f32.mrf.mxu1 }
 0x18a   :  { %v6102_v33 = vpop.f32.mrf.mxu0 }
 0x18b   :  { %7170 = vst [vmem:[#allocation27_spill] sm:$0xff] %v6095_v48  ;;  %7171 = vst [vmem:[#allocation28_spill] sm:$0xff] %v6102_v33 }
 0x18c   :  { %v1061_v54 = vpop.f32.mrf.mxu0 }
 0x18d   :  { %v6106_v31 = vadd.f32 %v1061_v54, %v5916_v57  ;;  %v6123_v57 = vpop.f32.mrf.mxu1 }
 0x18e   :  { %v1063_v18 = vpop.f32.mrf.mxu0 }
 0x18f   :  { %7172 = vst [vmem:[#allocation29_spill] sm:$0xff] %v6106_v31  ;;  %v6111_v42 = vadd.f32 %v1063_v18, %v5919_v0  ;;  %v1920_v0 = vlaneseq }
 0x190   :  { %v1065_v45 = vpop.f32.mrf.mxu0 }
 0x191   :  { %7173 = vst [vmem:[#allocation30_spill] sm:$0xff] %v6111_v42  ;;  %v6114_v48 = vadd.f32 %v1065_v45, %v5924_v30  ;;  %v6131_v30 = vpop.f32.mrf.mxu1 }
 0x192   :  { %v6118_v33 = vpop.f32.mrf.mxu0 }
 0x193   :  { %7174 = vst [vmem:[#allocation31_spill] sm:$0xff] %v6114_v48  ;;  %7175 = vst [vmem:[#allocation32_spill] sm:$0xff] %v6118_v33  ;;  %v621_v48 = vadd.f32 %v5778_v5, %v5776_v4 }
 0x194   :  { %v1071_v21 = vpop.f32.mrf.mxu0 }
 0x195   :  { %v6121_v46 = vadd.f32 %v1071_v21, %v5931_v55  ;;  %v1921_v55 = vshrl.u32 %v1920_v0, 7  ;;  %v5183_v21 = vld [vmem:[%s7132_s3 + $0x68] sm:$0xff]  }
 0x196   :  { %v1073_v54 = vpop.f32.mrf.mxu0  ;;  %2698 = vmatpush1.bf16.msra.mxu1 %v5183_v21  ;;  %v7182_v21 = vld [vmem:[#allocation5_spill] sm:$0xff] }
 0x197   :  { %7176 = vst [vmem:[#allocation33_spill] sm:$0xff] %v6121_v46  ;;  %v6126_v31 = vadd.f32 %v1073_v54, %v5933_v2  ;;  %v1083_v2 = vadd.f32 %v5948_v49, %v621_v48  ;;  %2699 = vmatprep.subr.bf16.mxu1 %v7166_v47  ;;  %v1922_v4 = vsub.s32 0, %v1921_v55  ;;  %v1918_v49 = vld [vmem:[%s7133_s2] sm:$0x3]  ;;  %s5280_s2 = smov 122  }
 0x198   :  { %v1075_v18 = vpop.f32.mrf.mxu0 }
 0x199   :  { %7177 = vst [vmem:[#allocation34_spill] sm:$0xff] %v6126_v31  ;;  %v6129_v42 = vadd.f32 %v1075_v18, %v5935_v13  ;;  %v6144_v13 = vpop.f32.mrf.mxu1  ;;  %v1478_v0 = vadd.f32 %v5966_v28, %v1083_v2  ;;  %v6165_v31 = vrot.slane %v1918_v49, %v1922_v4  ;;  %v1480_v2 = vadd.f32 %v5981_v20, %v5956_v34  ;;  %v7184_v20 = vld [vmem:[#allocation7_spill] sm:$0xff] }
 0x19a   :  { %v6133_v45 = vpop.f32.mrf.mxu0 }
 0x19b   :  { %7178 = vst [vmem:[#allocation35_spill] sm:$0xff] %v6129_v42  ;;  %7179 = vst [vmem:[#allocation36_spill] sm:$0xff] %v6133_v45  ;;  %v631_v45 = vadd.f32 %v7182_v21, %v5791_v16  ;;  %v1481_v16 = vadd.f32 %v5991_v22, %v5959_v29  ;;  %v1483_v22 = vadd.f32 %v6008_v41, %v5964_v36 }
 0x19c   :  { %v1751_v46 = vpop.f32.mrf.mxu0 }
 0x19d   :  { %v6142_v54 = vadd.f32 %v1751_v46, %v5943_v50  ;;  %v6157_v46 = vpop.f32.mrf.mxu1 }
 0x19e   :  { %v1753_v18 = vpop.f32.mrf.mxu0 }
 0x19f   :  { %v6148_v42 = vadd.f32 %v1753_v18, %v5946_v43  ;;  %v1479_v43 = vadd.f32 %v5974_v38, %v5953_v17 }
 0x1a0   :  { %v1755_v5 = vpop.f32.mrf.mxu0 }
 0x1a1   :  { %7180 = vst [vmem:[#allocation37_spill] sm:$0xff] %v6148_v42  ;;  %v6155_v50 = vadd.f32 %v1755_v5, %v5950_v14  ;;  %v1087_v14 = vadd.f32 %v5961_v10, %v631_v45  ;;  %v1926_v5 = vsub.s32 1, %v1921_v55  ;;  %v7183_v10 = vld [vmem:[#allocation6_spill] sm:$0xff] }
 0x1a2   :  { %v1757_v48 = vpop.f32.mrf.mxu0  ;;  %v641_v45 = vadd.f32 %v7184_v20, %v7183_v10  ;;  %v7186_v10 = vld [vmem:[#allocation17_spill] sm:$0xff] }
 0x1a3   :  { %7181 = vst [vmem:[#allocation38_spill] sm:$0xff] %v6155_v50  ;;  %v6163_v18 = vadd.f32 %v1757_v48, %v1478_v0  ;;  %v6170_v50 = vpop.f32.mrf.mxu1  ;;  %v1482_v4 = vadd.f32 %v5998_v63, %v1087_v14  ;;  %v6178_v0 = vrot.slane %v1918_v49, %v1926_v5  ;;  %v1484_v48 = vadd.f32 %v6015_v32, %v5969_v8 }
 0x1a4   :  { %v1761_v28 = vpop.f32.mrf.mxu0 }
 0x1a5   :  { %v1874_v33 = vadd.f32 %v1761_v28, %v1479_v43  ;;  %v6184_v55 = vpop.f32.mrf.mxu1  ;;  %v1091_v43 = vadd.f32 %v5976_v15, %v641_v45 }
 0x1a6   :  { %v1763_v42 = vpop.f32.mrf.mxu0 }
 0x1a7   :  { %v1875_v21 = vadd.f32 %v1763_v42, %v1480_v2  ;;  %v6175_v17 = vadd.f32 %v6165_v31, %v1874_v33  ;;  %v6201_v36 = vpop.f32.mrf.mxu1  ;;  %v7185_v2 = vld [vmem:[#allocation16_spill] sm:$0xff] }
 0x1a8   :  { %v1765_v38 = vpop.f32.mrf.mxu0  ;;  %v1485_v14 = vadd.f32 %v6025_v53, %v7185_v2 }
 0x1a9   :  { %v1876_v34 = vadd.f32 %v1765_v38, %v1481_v16  ;;  %2034 = vrot.lane.b32.xlu0 %v6175_v17, %s5280_s2  ;;  %v6189_v33 = vadd.f32 %v6178_v0, %v1875_v21  ;;  %v1486_v16 = vadd.f32 %v6032_v44, %v1091_v43  ;;  %v6216_v38 = vpop.f32.mrf.mxu1  ;;  %v1487_v44 = vadd.f32 %v6042_v7, %v7186_v10 }
 0x1aa   :  { %v1767_v29 = vpop.f32.mrf.mxu0 }
 0x1ab   :  { %v1877_v63 = vadd.f32 %v1767_v29, %v1482_v4  ;;  %v6192_v42 = vadd.f32 %v6165_v31, %v1876_v34  ;;  %v5184_v4 = vld [vmem:[%s7132_s3 + $0x60] sm:$0xff]   ;;  %v5186_v34 = vld [vmem:[%s7132_s3 + $0x110] sm:$0xff]   ;;  %v6238_v7 = vpop.f32.mrf.mxu1 }
 0x1ac   :  { %v1771_v49 = vpop.f32.mrf.mxu0  ;;  %2700 = vmatpush1.bf16.msra.mxu1 %v5184_v4  ;;  %3261 = vmatpush1.bf16.msra.mxu0 %v5186_v34 }
 0x1ad   :  { %v1878_v28 = vadd.f32 %v1771_v49, %v1483_v22  ;;  %2038 = vrot.lane.b32.xlu1 %v6192_v42, %s5280_s2  ;;  %2036 = vrot.lane.b32.xlu0 %v6189_v33, %s5280_s2  ;;  %v6206_v5 = vadd.f32 %v6178_v0, %v1877_v63  ;;  %v7187_v63 = vld [vmem:[#allocation18_spill] sm:$0xff] }
 0x1ae   :  { %v1773_v41 = vpop.f32.mrf.mxu0  ;;  %v1488_v49 = vadd.f32 %v6049_v56, %v7187_v63  ;;  %2701 = vmatprep.subr.bf16.mxu1 %v7166_v47  ;;  %3262 = vmatprep.subr.bf16.mxu0 %v7166_v47  ;;  %v5187_v56 = vld [vmem:[%s7132_s3 + $0x108] sm:$0xff]  }
 0x1af   :  { %v6209_v8 = vadd.f32 %v6165_v31, %v1878_v28  ;;  %v1879_v15 = vadd.f32 %v1773_v41, %v1484_v48  ;;  %v5185_v28 = vld [vmem:[%s7132_s3 + $0x58] sm:$0xff]   ;;  %v1489_v41 = vadd.f32 %v6059_v26, %v5989_v27  ;;  %v6262_v27 = vpop.f32.mrf.mxu1 }
 0x1b0   :  { %v1775_v32 = vpop.f32.mrf.mxu0  ;;  %2702 = vmatpush1.bf16.msra.mxu1 %v5185_v28  ;;  %3263 = vmatpush1.bf16.msra.mxu0 %v5187_v56 }
 0x1b1   :  { %v1880_v21 = vadd.f32 %v1775_v32, %v1485_v14  ;;  %2040 = vrot.lane.b32.xlu1 %v6206_v5, %s5280_s2  ;;  %2042 = vrot.lane.b32.xlu0 %v6209_v8, %s5280_s2  ;;  %v6227_v20 = vadd.f32 %v6178_v0, %v1879_v15 }
 0x1b2   :  { %v1777_v53 = vpop.f32.mrf.mxu0  ;;  %2703 = vmatprep.subr.bf16.mxu1 %v7166_v47  ;;  %3264 = vmatprep.subr.bf16.mxu0 %v7166_v47 }
 0x1b3   :  { %v6230_v45 = vadd.f32 %v6165_v31, %v1880_v21  ;;  %v1881_v29 = vadd.f32 %v1777_v53, %v1486_v16  ;;  %v1490_v16 = vadd.f32 %v6066_v12, %v5993_v11  ;;  %v5188_v53 = vld [vmem:[%s7132_s3 + $0x50] sm:$0xff]   ;;  %v5189_v11 = vld [vmem:[%s7132_s3 + $0x100] sm:$0xff]   ;;  %v1491_v12 = vadd.f32 %v6078_v24, %v5996_v61  ;;  %v6286_v61 = vpop.f32.mrf.mxu1 }
 0x1b4   :  { %v1781_v22 = vpop.f32.mrf.mxu0  ;;  %2704 = vmatpush1.bf16.msra.mxu1 %v5188_v53  ;;  %3265 = vmatpush1.bf16.msra.mxu0 %v5189_v11  ;;  %v7189_v11 = vld [vmem:[#allocation20_spill] sm:$0xff] }
 0x1b5   :  { %v1882_v48 = vadd.f32 %v1781_v22, %v1487_v44  ;;  %2044 = vrot.lane.b32.xlu1 %v6227_v20, %s5280_s2  ;;  %2046 = vrot.lane.b32.xlu0 %v6230_v45, %s5280_s2  ;;  %v6251_v2 = vadd.f32 %v6178_v0, %v1881_v29  ;;  %v7188_v29 = vld [vmem:[#allocation19_spill] sm:$0xff] }
 0x1b6   :  { %v1783_v43 = vpop.f32.mrf.mxu0  ;;  %v1492_v22 = vadd.f32 %v6088_v37, %v7188_v29  ;;  %2705 = vmatprep.subr.bf16.mxu1 %v7166_v47  ;;  %3266 = vmatprep.subr.bf16.mxu0 %v7166_v47  ;;  %v5191_v37 = vld [vmem:[%s7132_s3 + $0xf8] sm:$0xff]  }
 0x1b7   :  { %v6254_v14 = vadd.f32 %v6165_v31, %v1882_v48  ;;  %v1883_v15 = vadd.f32 %v1783_v43, %v1488_v49  ;;  %v5190_v49 = vld [vmem:[%s7132_s3 + $0x48] sm:$0xff]   ;;  %v1493_v48 = vadd.f32 %v6100_v35, %v6006_v40  ;;  %v1495_v35 = vadd.f32 %v6116_v9, %v6013_v19 }
 0x1b8   :  { %v1785_v32 = vpop.f32.mrf.mxu0  ;;  %2706 = vmatpush1.bf16.msra.mxu1 %v5190_v49  ;;  %3267 = vmatpush1.bf16.msra.mxu0 %v5191_v37  ;;  %v5192_v40 = vld [vmem:[%s7132_s3 + $0x88] sm:$0x1f]  }
 0x1b9   :  { %v1884_v21 = vadd.f32 %v1785_v32, %v1489_v41  ;;  %2048 = vrot.lane.b32.xlu1 %v6251_v2, %s5280_s2  ;;  %2050 = vrot.lane.b32.xlu0 %v6254_v14, %s5280_s2  ;;  %v6275_v4 = vadd.f32 %v6178_v0, %v1883_v15  ;;  %v1494_v15 = vadd.f32 %v6108_v58, %v6010_v3  ;;  %v5193_v3 = vld [vmem:[%s7132_s3 + $0xf0] sm:$0xff]   ;;  %v2689_v19 = vsel %vm2687_vm2, %v5192_v40, 0 }
 0x1ba   :  { %v1787_v26 = vpop.f32.mrf.mxu0  ;;  %2721 = vmatprep.subr.bf16.mxu1 %v7166_v47  ;;  %3268 = vmatprep.subr.bf16.mxu0 %v7166_v47 }
 0x1bb   :  { %v6278_v34 = vadd.f32 %v6165_v31, %v1884_v21  ;;  %v1885_v10 = vadd.f32 %v1787_v26, %v1490_v16  ;;  %v6315_v16 = vpop.f32.mrf.mxu1 }
 0x1bc   :  { %v1791_v44 = vpop.f32.mrf.mxu0  ;;  %2722 = vmatpush2.bf16.msra.mxu1 %v2689_v19  ;;  %3269 = vmatpush1.bf16.msra.mxu0 %v5193_v3  ;;  %v1501_v19 = vadd.f32 %v6184_v55, %v6040_v6  ;;  %v5199_v6 = vld [vmem:[%s7132_s3 + $0x118] sm:$0x1f]   ;;  %v1503_v55 = vadd.f32 %v6216_v38, %v6047_v62 }
 0x1bd   :  { %v1886_v63 = vadd.f32 %v1791_v44, %v1491_v12  ;;  %2052 = vrot.lane.b32.xlu1 %v6275_v4, %s5280_s2  ;;  %2054 = vrot.lane.b32.xlu0 %v6278_v34, %s5280_s2  ;;  %v6299_v43 = vadd.f32 %v6178_v0, %v1885_v10  ;;  %v1496_v12 = vadd.f32 %v6123_v57, %v7189_v11  ;;  %v6335_v44 = vpop.f32.mrf.mxu1 }
 0x1be   :  { %v1793_v24 = vpop.f32.mrf.mxu0  ;;  %3270 = vmatprep.subr.bf16.mxu0 %v7166_v47  ;;  %2860 = vmatprep.subr.bf16.mxu1 %v7166_v47  ;;  %v1497_v57 = vadd.f32 %v6131_v30, %v6023_v52 }
 0x1bf   :  { %v6302_v28 = vadd.f32 %v6165_v31, %v1886_v63  ;;  %v1887_v56 = vadd.f32 %v1793_v24, %v1492_v22  ;;  %v5196_v22 = vld [vmem:[%s7132_s3 + $0xe8] sm:$0xff]   ;;  %v6356_v52 = vpop.f32.mrf.mxu1 }
 0x1c0   :  { %v1795_v41 = vpop.f32.mrf.mxu0  ;;  %3271 = vmatpush1.bf16.msra.mxu0 %v5196_v22 }
 0x1c1   :  { %v1888_v32 = vadd.f32 %v1795_v41, %v1493_v48  ;;  %2056 = vrot.lane.b32.xlu1 %v6299_v43, %s5280_s2  ;;  %2058 = vrot.lane.b32.xlu0 %v6302_v28, %s5280_s2  ;;  %v6323_v58 = vadd.f32 %v6178_v0, %v1887_v56  ;;  %v1498_v48 = vadd.f32 %v6144_v13, %v6027_v39  ;;  %v5197_v41 = vld [vmem:[%s7132_s3 + $0xe0] sm:$0xff]  }
 0x1c2   :  { %v1797_v21 = vpop.f32.mrf.mxu0  ;;  %3272 = vmatprep.subr.bf16.mxu0 %v7166_v47 }
 0x1c3   :  { %v6326_v26 = vadd.f32 %v6165_v31, %v1888_v32  ;;  %v1889_v53 = vadd.f32 %v1797_v21, %v1494_v15  ;;  %v1499_v15 = vadd.f32 %v6157_v46, %v6030_v23  ;;  %v1442_v23 = vpop.f32.mrf.mxu1 }
 0x1c4   :  { %v1801_v9 = vpop.f32.mrf.mxu0  ;;  %3273 = vmatpush1.bf16.msra.mxu0 %v5197_v41  ;;  %v1505_v41 = vadd.f32 %v6262_v27, %v6057_v25  ;;  %v7192_v25 = vld [vmem:[#allocation9_spill] sm:$0xff] }
 0x1c5   :  { %v1890_v10 = vadd.f32 %v1801_v9, %v1495_v35  ;;  %2060 = vrot.lane.b32.xlu1 %v6323_v58, %s5280_s2  ;;  %2062 = vrot.lane.b32.xlu0 %v6326_v26, %s5280_s2  ;;  %v6345_v63 = vadd.f32 %v6178_v0, %v1889_v53  ;;  %v7190_v35 = vld [vmem:[#allocation21_spill] sm:$0xff]  ;;  %v5198_v53 = vld [vmem:[%s7132_s3 + $0xd8] sm:$0xff]   ;;  %v1446_v22 = vpop.f32.mrf.mxu1 }
 0x1c6   :  { %v1803_v29 = vpop.f32.mrf.mxu0  ;;  %v1500_v21 = vadd.f32 %v6170_v50, %v7190_v35  ;;  %3274 = vmatprep.subr.bf16.mxu0 %v7166_v47 }
 0x1c7   :  { %v6348_v24 = vadd.f32 %v6165_v31, %v1890_v10  ;;  %v1891_v49 = vadd.f32 %v1803_v29, %v1496_v12  ;;  %v1502_v10 = vadd.f32 %v6201_v36, %v6044_v51  ;;  %v1448_v62 = vpop.f32.mrf.mxu1 }
 0x1c8   :  { %v1805_v37 = vpop.f32.mrf.mxu0  ;;  %3275 = vmatpush1.bf16.msra.mxu0 %v5198_v53  ;;  %v1507_v53 = vadd.f32 %v6315_v16, %v6064_v59 }
 0x1c9   :  { %v1892_v56 = vadd.f32 %v1805_v37, %v1497_v57  ;;  %2064 = vrot.lane.b32.xlu1 %v6345_v63, %s5280_s2  ;;  %2066 = vrot.lane.b32.xlu0 %v6348_v24, %s5280_s2  ;;  %v6365_v39 = vadd.f32 %v6178_v0, %v1891_v49  ;;  %v3258_v37 = vsel %vm2687_vm2, %v5199_v6, 0 }
 0x1ca   :  { %v1807_v30 = vpop.f32.mrf.mxu0  ;;  %3290 = vmatprep.subr.bf16.mxu0 %v7166_v47 }
 0x1cb   :  { %v6368_v13 = vadd.f32 %v6165_v31, %v1892_v56  ;;  %v1893_v32 = vadd.f32 %v1807_v30, %v1498_v48  ;;  %v1504_v56 = vadd.f32 %v6238_v7, %v6052_v60  ;;  %v1506_v7 = vadd.f32 %v6286_v61, %v6061_v1 }
 0x1cc   :  { %v1811_v40 = vpop.f32.mrf.mxu0  ;;  %3291 = vmatpush2.bf16.msra.mxu0 %v3258_v37 }
 0x1cd   :  { %v1894_v3 = vadd.f32 %v1811_v40, %v1499_v15  ;;  %2068 = vrot.lane.b32.xlu1 %v6365_v39, %s5280_s2  ;;  %2070 = vrot.lane.b32.xlu0 %v6368_v13, %s5280_s2  ;;  %v6383_v50 = vadd.f32 %v6178_v0, %v1893_v32 }
 0x1ce   :  { %v1813_v46 = vpop.f32.mrf.mxu0 }
 0x1cf   :  { %v6386_v9 = vadd.f32 %v6165_v31, %v1894_v3  ;;  %v1895_v11 = vadd.f32 %v1813_v46, %v1500_v21  ;;  %v7191_v21 = vld [vmem:[#allocation8_spill] sm:$0xff]  ;;  %v1450_v3 = vpop.f32.mrf.mxu1 }
 0x1d0   :  { %v1815_v12 = vpop.f32.mrf.mxu0  ;;  %v701_v27 = vadd.f32 %v7192_v25, %v7191_v21  ;;  %v6468_v25 = vadd.f32 %v6165_v31, %v6142_v54 }
 0x1d1   :  { %v1896_v29 = vadd.f32 %v1815_v12, %v1501_v19  ;;  %2072 = vrot.lane.b32.xlu1 %v6383_v50, %s5280_s2  ;;  %2074 = vrot.lane.b32.xlu0 %v6386_v9, %s5280_s2  ;;  %v6401_v51 = vadd.f32 %v6178_v0, %v1895_v11  ;;  %v7193_v12 = vld [vmem:[#allocation22_spill] sm:$0xff]  ;;  %v1452_v59 = vpop.f32.mrf.mxu1 }
 0x1d2   :  { %v1817_v57 = vpop.f32.mrf.mxu0 }
 0x1d3   :  { %v6404_v36 = vadd.f32 %v6165_v31, %v1896_v29  ;;  %v1897_v49 = vadd.f32 %v1817_v57, %v1502_v10  ;;  %v1508_v10 = vadd.f32 %v6335_v44, %v7193_v12  ;;  %v7194_v29 = vld [vmem:[#allocation24_spill] sm:$0xff]  ;;  %v7195_v57 = vld [vmem:[#allocation23_spill] sm:$0xff] }
 0x1d4   :  { %v1821_v48 = vpop.f32.mrf.mxu0  ;;  %v1115_v6 = vadd.f32 %v7194_v29, %v701_v27  ;;  %v7198_v29 = vld [vmem:[#allocation11_spill] sm:$0xff] }
 0x1d5   :  { %v1898_v30 = vadd.f32 %v1821_v48, %v1503_v55  ;;  %2076 = vrot.lane.b32.xlu1 %v6401_v51, %s5280_s2  ;;  %2078 = vrot.lane.b32.xlu0 %v6404_v36, %s5280_s2  ;;  %v6416_v15 = vadd.f32 %v6178_v0, %v1897_v49  ;;  %v1509_v49 = vadd.f32 %v6356_v52, %v7195_v57 }
 0x1d6   :  { %v1823_v38 = vpop.f32.mrf.mxu0 }
 0x1d7   :  { %v6419_v32 = vadd.f32 %v6165_v31, %v1898_v30  ;;  %v1899_v40 = vadd.f32 %v1823_v38, %v1504_v56  ;;  %v1510_v30 = vadd.f32 %v1442_v23, %v1115_v6 }
 0x1d8   :  { %v1825_v60 = vpop.f32.mrf.mxu0 }
 0x1d9   :  { %v1900_v35 = vadd.f32 %v1825_v60, %v1505_v41  ;;  %2080 = vrot.lane.b32.xlu1 %v6416_v15, %s5280_s2  ;;  %2082 = vrot.lane.b32.xlu0 %v6419_v32, %s5280_s2  ;;  %v6432_v19 = vadd.f32 %v6178_v0, %v1899_v40  ;;  %v1456_v41 = vpop.f32.mrf.mxu1 }
 0x1da   :  { %v1827_v46 = vpop.f32.mrf.mxu0 }
 0x1db   :  { %v6435_v1 = vadd.f32 %v6165_v31, %v1900_v35  ;;  %v1901_v61 = vadd.f32 %v1827_v46, %v1506_v7  ;;  %v1458_v23 = vpop.f32.mrf.mxu1 }
 0x1dc   :  { %v1831_v11 = vpop.f32.mrf.mxu0 }
 0x1dd   :  { %v1902_v55 = vadd.f32 %v1831_v11, %v1507_v53  ;;  %2084 = vrot.lane.b32.xlu1 %v6432_v19, %s5280_s2  ;;  %2086 = vrot.lane.b32.xlu0 %v6435_v1, %s5280_s2  ;;  %v6447_v37 = vadd.f32 %v6178_v0, %v1901_v61  ;;  %v7196_v53 = vld [vmem:[#allocation25_spill] sm:$0xff]  ;;  %v1460_v11 = vpop.f32.mrf.mxu1 }
 0x1de   :  { %v1833_v16 = vpop.f32.mrf.mxu0  ;;  %v1511_v61 = vadd.f32 %v1446_v22, %v7196_v53 }
 0x1df   :  { %v6450_v48 = vadd.f32 %v6165_v31, %v1902_v55  ;;  %v1903_v44 = vadd.f32 %v1833_v16, %v1508_v10  ;;  %v7197_v10 = vld [vmem:[#allocation10_spill] sm:$0xff]  ;;  %v7199_v55 = vld [vmem:[#allocation37_spill] sm:$0xff]  ;;  %v1462_v53 = vpop.f32.mrf.mxu1 }
 0x1e0   :  { %v1835_v56 = vpop.f32.mrf.mxu0  ;;  %v711_v6 = vadd.f32 %v7198_v29, %v7197_v10  ;;  %v6482_v54 = vadd.f32 %v6178_v0, %v7199_v55  ;;  %v7200_v16 = vld [vmem:[#allocation38_spill] sm:$0xff]  ;;  %v6497_v29 = vadd.f32 %v6178_v0, %v6163_v18 }
 0x1e1   :  { %v1904_v38 = vadd.f32 %v1835_v56, %v1509_v49  ;;  %2088 = vrot.lane.b32.xlu1 %v6447_v37, %s5280_s2  ;;  %2090 = vrot.lane.b32.xlu0 %v6450_v48, %s5280_s2  ;;  %v6457_v52 = vadd.f32 %v6178_v0, %v1903_v44  ;;  %v6486_v57 = vadd.f32 %v6165_v31, %v7200_v16  ;;  %v7202_v44 = vld [vmem:[#allocation26_spill] sm:$0xff]  ;;  %v1466_v18 = vpop.f32.mrf.mxu1 }
 0x1e2   :  { %v1837_v40 = vpop.f32.mrf.mxu0  ;;  %v1512_v56 = vadd.f32 %v1448_v62, %v7202_v44  ;;  %7205 = vst [vmem:[#allocation6_spill] sm:$0xff] %v6497_v29  ;;  %v7208_v44 = vld [vmem:[#allocation12_spill] sm:$0xff] }
 0x1e3   :  { %v6460_v60 = vadd.f32 %v6165_v31, %v1904_v38  ;;  %v1905_v7 = vadd.f32 %v1837_v40, %v1510_v30  ;;  %7201 = vst [vmem:[#allocation5_spill] sm:$0xff] %v6486_v57  ;;  %v7203_v30 = vld [vmem:[#allocation28_spill] sm:$0xff]  ;;  %v7204_v40 = vld [vmem:[#allocation27_spill] sm:$0xff] }
 0x1e4   :  { %v1841_v35 = vpop.f32.mrf.mxu0  ;;  %v1119_v38 = vadd.f32 %v7203_v30, %v711_v6  ;;  %v7209_v30 = vld [vmem:[#allocation13_spill] sm:$0xff] }
 0x1e5   :  { %2092 = vrot.lane.b32.xlu1 %v6457_v52, %s5280_s2  ;;  %2094 = vrot.lane.b32.xlu0 %v6460_v60, %s5280_s2  ;;  %v6471_v27 = vadd.f32 %v6178_v0, %v1905_v7  ;;  %v1906_v22 = vadd.f32 %v1841_v35, %v1511_v61  ;;  %v1513_v7 = vadd.f32 %v1450_v3, %v7204_v40  ;;  %v7207_v3 = vld [vmem:[#allocation29_spill] sm:$0xff] }
 0x1e6   :  { %v1843_v21 = vpop.f32.mrf.mxu0  ;;  %v1514_v55 = vadd.f32 %v1452_v59, %v1119_v38  ;;  %v1515_v16 = vadd.f32 %v1456_v41, %v7207_v3  ;;  %v721_v40 = vadd.f32 %v7209_v30, %v7208_v44 }
 0x1e7   :  { %v6500_v35 = vadd.f32 %v6165_v31, %v1906_v22  ;;  %v1907_v62 = vadd.f32 %v1843_v21, %v1512_v56  ;;  %v7210_v56 = vld [vmem:[#allocation30_spill] sm:$0xff] }
 0x1e8   :  { %v1845_v46 = vpop.f32.mrf.mxu0  ;;  %v1516_v38 = vadd.f32 %v1458_v23, %v7210_v56 }
 0x1e9   :  { %2096 = vrot.lane.b32.xlu1 %v6471_v27, %s5280_s2  ;;  %2026 = vrot.lane.b32.xlu0 %v6468_v25, %s5280_s2  ;;  %7206 = vst [vmem:[#allocation7_spill] sm:$0xff] %v6500_v35  ;;  %v1908_v61 = vadd.f32 %v1845_v46, %v1513_v7  ;;  %v6510_v22 = vadd.f32 %v6178_v0, %v1907_v62  ;;  %v7211_v7 = vld [vmem:[#allocation32_spill] sm:$0xff]  ;;  %v1468_v62 = vpop.f32.mrf.mxu1 }
 0x1ea   :  { %v1847_v12 = vpop.f32.mrf.mxu0  ;;  %v1123_v3 = vadd.f32 %v7211_v7, %v721_v40 }
 0x1eb   :  { %v6513_v21 = vadd.f32 %v6165_v31, %v1908_v61  ;;  %v1909_v59 = vadd.f32 %v1847_v12, %v1514_v55 }
 0x1ec   :  { %v1851_v49 = vpop.f32.mrf.mxu0  ;;  %v1518_v55 = vadd.f32 %v1462_v53, %v1123_v3  ;;  %v7218_v3 = vld [vmem:[#allocation35_spill] sm:$0xff] }
 0x1ed   :  { %2028 = vrot.lane.b32.xlu1 %v6482_v54, %s5280_s2  ;;  %2030 = vrot.lane.b32.xlu0 %v6486_v57, %s5280_s2  ;;  %v1910_v46 = vadd.f32 %v1851_v49, %v1515_v16  ;;  %v6523_v44 = vadd.f32 %v6178_v0, %v1909_v59  ;;  %v7213_v16 = vld [vmem:[#allocation33_spill] sm:$0xff]  ;;  %v1470_v59 = vpop.f32.mrf.mxu1 }
 0x1ee   :  { %v1853_v10 = vpop.f32.mrf.mxu0  ;;  %v1519_v30 = vadd.f32 %v1466_v18, %v7213_v16  ;;  %v7216_v18 = vld [vmem:[#allocation34_spill] sm:$0xff]  ;;  %v1521_v16 = vadd.f32 %v1470_v59, %v7218_v3 }
 0x1ef   :  { %v6526_v12 = vadd.f32 %v6165_v31, %v1910_v46  ;;  %v1911_v49 = vadd.f32 %v1853_v10, %v1516_v38  ;;  %v1520_v46 = vadd.f32 %v1468_v62, %v7216_v18  ;;  %v7217_v38 = vld [vmem:[#allocation36_spill] sm:$0xff] }
 0x1f0   :  { %v1855_v6 = vpop.f32.mrf.mxu0 }
 0x1f1   :  { %2032 = vrot.lane.b32.xlu1 %v6497_v29, %s5280_s2  ;;  %2098 = vrot.lane.b32.xlu0 %v6500_v35, %s5280_s2  ;;  %v7212_v29 = vld [vmem:[#allocation31_spill] sm:$0xff]  ;;  %v6536_v56 = vadd.f32 %v6178_v0, %v1911_v49  ;;  %v1472_v49 = vpop.f32.mrf.mxu1 }
 0x1f2   :  { %v1857_v57 = vpop.f32.mrf.mxu0  ;;  %v1517_v35 = vadd.f32 %v1460_v11, %v7212_v29  ;;  %v7214_v11 = vld [vmem:[#allocation14_spill] sm:$0xff]  ;;  %v7215_v29 = vld [vmem:[#allocation15_spill] sm:$0xff] }
 0x1f3   :  { %v731_v40 = vadd.f32 %v7215_v29, %v7214_v11 }
 0x1f4   :  { %v1861_v41 = vpop.f32.mrf.mxu0  ;;  %v1912_v61 = vadd.f32 %v1855_v6, %v1517_v35  ;;  %v1913_v35 = vadd.f32 %v1857_v57, %v1518_v55 }
 0x1f5   :  { %2100 = vrot.lane.b32.xlu1 %v6510_v22, %s5280_s2  ;;  %2102 = vrot.lane.b32.xlu0 %v6513_v21, %s5280_s2  ;;  %v1914_v53 = vadd.f32 %v1861_v41, %v1519_v30  ;;  %v1127_v7 = vadd.f32 %v7217_v38, %v731_v40 }
 0x1f6   :  { %v1863_v23 = vpop.f32.mrf.mxu0  ;;  %v6539_v10 = vadd.f32 %v6165_v31, %v1912_v61  ;;  %v6549_v11 = vadd.f32 %v6178_v0, %v1913_v35 }
 0x1f7   :  { %v6552_v57 = vadd.f32 %v6165_v31, %v1914_v53  ;;  %v1915_v41 = vadd.f32 %v1863_v23, %v1520_v46  ;;  %v1522_v55 = vadd.f32 %v1472_v49, %v1127_v7 }
 0x1f8   :  { %v1865_v6 = vpop.f32.mrf.mxu0 }
 0x1f9   :  { %2104 = vrot.lane.b32.xlu1 %v6523_v44, %s5280_s2  ;;  %2106 = vrot.lane.b32.xlu0 %v6526_v12, %s5280_s2  ;;  %v1916_v61 = vadd.f32 %v1865_v6, %v1521_v16  ;;  %v6559_v30 = vadd.f32 %v6178_v0, %v1915_v41 }
 0x1fa   :  { %v1867_v62 = vpop.f32.mrf.mxu0 }
 0x1fb   :  { %v6562_v29 = vadd.f32 %v6165_v31, %v1916_v61  ;;  %v1917_v40 = vadd.f32 %v1867_v62, %v1522_v55 }
 0x1fd   :  { %2108 = vrot.lane.b32.xlu1 %v6536_v56, %s5280_s2  ;;  %2110 = vrot.lane.b32.xlu0 %v6539_v10, %s5280_s2  ;;  %v6569_v23 = vadd.f32 %v6178_v0, %v1917_v40 }
 0x201   :  { %2112 = vrot.lane.b32.xlu1 %v6549_v11, %s5280_s2  ;;  %2114 = vrot.lane.b32.xlu0 %v6552_v57, %s5280_s2 }
 0x205   :  { %2116 = vrot.lane.b32.xlu1 %v6559_v30, %s5280_s2  ;;  %2118 = vrot.lane.b32.xlu0 %v6562_v29, %s5280_s2 }
 0x209   :  { %2120 = vrot.lane.b32.xlu1 %v6569_v23, %s5280_s2 }
 0x21b   :  { %v2035_v59 = vpop.permute.xlu0 %2034 }
 0x21f   :  { %v2039_v35 = vpop.permute.xlu1 %2038  ;;  %v2037_v53 = vpop.permute.xlu0 %2036 }
 0x220   :  { %v2125_v31 = vsel %vm2122_vm3, %v2035_v59, %v2037_v53  ;;  %v2200_v6 = vmax.f32 %v6189_v33, %v2037_v53 }
 0x221   :  { %v2199_v18 = vmax.f32 %v6175_v17, %v2125_v31 }
 0x222   :  { %2249 = vst.msk [vmem:[#allocation2 + $0x28] sm:$0xff] %vm2244_vm4, %v2200_v6 }
 0x223   :  { %v2041_v46 = vpop.permute.xlu1 %2040  ;;  %v2043_v38 = vpop.permute.xlu0 %2042 }
 0x224   :  { %v2126_v0 = vsel %vm2122_vm3, %v2039_v35, %v2041_v46  ;;  %v2202_v7 = vmax.f32 %v6206_v5, %v2041_v46 }
 0x225   :  { %v2201_v3 = vmax.f32 %v6192_v42, %v2126_v0 }
 0x226   :  { %2251 = vst.msk [vmem:[#allocation2 + $0x38] sm:$0xff] %vm2244_vm4, %v2202_v7 }
 0x227   :  { %v2045_v16 = vpop.permute.xlu1 %2044  ;;  %v2047_v49 = vpop.permute.xlu0 %2046  ;;  %v2319_v55 = vmax.f32 %v2199_v18, %v2201_v3 }
 0x228   :  { %v2127_v41 = vsel %vm2122_vm3, %v2043_v38, %v2045_v16  ;;  %v2204_v33 = vmax.f32 %v6227_v20, %v2045_v16 }
 0x229   :  { %v2203_v17 = vmax.f32 %v6209_v8, %v2127_v41  ;;  %v2315_v42 = vld [vmem:[#allocation2 + $0x28] sm:$0xff]  ;;  %v2321_v31 = vmax.f32 %v2319_v55, 0.0 }
 0x22a   :  { %2253 = vst.msk [vmem:[#allocation2 + $0x48] sm:$0xff] %vm2244_vm4, %v2204_v33 }
 0x22b   :  { %v2049_v61 = vpop.permute.xlu1 %2048  ;;  %v2051_v62 = vpop.permute.xlu0 %2050 }
 0x22c   :  { %v2128_v40 = vsel %vm2122_vm3, %v2047_v49, %v2049_v61  ;;  %v2206_v5 = vmax.f32 %v6251_v2, %v2049_v61 }
 0x22d   :  { %v2318_v59 = vld [vmem:[#allocation2 + $0x38] sm:$0xff]  ;;  %v2205_v35 = vmax.f32 %v6230_v45, %v2128_v40 }
 0x22e   :  { %v2320_v53 = vmax.f32 %v2315_v42, %v2318_v59  ;;  %2255 = vst.msk [vmem:[#allocation2 + $0x58] sm:$0xff] %vm2244_vm4, %v2206_v5 }
 0x22f   :  { %v2053_v20 = vpop.permute.xlu1 %2052  ;;  %v2055_v8 = vpop.permute.xlu0 %2054  ;;  %v2339_v3 = vmax.f32 %v2203_v17, %v2205_v35 }
 0x230   :  { %v2322_v6 = vmax.f32 %v2320_v53, 0.0  ;;  %v2129_v46 = vsel %vm2122_vm3, %v2051_v62, %v2053_v20  ;;  %v2208_v18 = vmax.f32 %v6275_v4, %v2053_v20 }
 0x231   :  { %v2207_v38 = vmax.f32 %v6254_v14, %v2129_v46  ;;  %v2335_v4 = vld [vmem:[#allocation2 + $0x48] sm:$0xff]  ;;  %v2341_v55 = vmax.f32 %v2339_v3, 0.0 }
 0x232   :  { %v4857_v45 = vpack.c.bf16 %v2322_v6, %v2321_v31  ;;  %2257 = vst.msk [vmem:[#allocation2 + $0x68] sm:$0xff] %vm2244_vm4, %v2208_v18 }
 0x233   :  { %v2057_v0 = vpop.permute.xlu1 %2056  ;;  %v2059_v7 = vpop.permute.xlu0 %2058 }
 0x234   :  { %v2130_v16 = vsel %vm2122_vm3, %v2055_v8, %v2057_v0  ;;  %v2210_v49 = vmax.f32 %v6299_v43, %v2057_v0  ;;  %2332 = vst.msk [vmem:[#allocation3 + $0x8] sm:$0xff] %vm6592_vm7, %v4857_v45 }
 0x235   :  { %v2338_v41 = vld [vmem:[#allocation2 + $0x58] sm:$0xff]  ;;  %v2209_v14 = vmax.f32 %v6278_v34, %v2130_v16 }
 0x236   :  { %v2340_v33 = vmax.f32 %v2335_v4, %v2338_v41  ;;  %2259 = vst.msk [vmem:[#allocation2 + $0x78] sm:$0xff] %vm2244_vm4, %v2210_v49 }
 0x237   :  { %v2061_v61 = vpop.permute.xlu1 %2060  ;;  %v2063_v62 = vpop.permute.xlu0 %2062  ;;  %v2359_v53 = vmax.f32 %v2207_v38, %v2209_v14 }
 0x238   :  { %v2342_v40 = vmax.f32 %v2340_v33, 0.0  ;;  %v2131_v17 = vsel %vm2122_vm3, %v2059_v7, %v2061_v61  ;;  %v2212_v5 = vmax.f32 %v6323_v58, %v2061_v61 }
 0x239   :  { %v2211_v43 = vmax.f32 %v6302_v28, %v2131_v17  ;;  %v2355_v8 = vld [vmem:[#allocation2 + $0x68] sm:$0xff]  ;;  %v2361_v18 = vmax.f32 %v2359_v53, 0.0 }
 0x23a   :  { %v4858_v42 = vpack.c.bf16 %v2342_v40, %v2341_v55  ;;  %2261 = vst.msk [vmem:[#allocation2 + $0x88] sm:$0xff] %vm2244_vm4, %v2212_v5 }
 0x23b   :  { %v2065_v59 = vpop.permute.xlu1 %2064  ;;  %v2067_v35 = vpop.permute.xlu0 %2066 }
 0x23c   :  { %v2132_v34 = vsel %vm2122_vm3, %v2063_v62, %v2065_v59  ;;  %v2214_v20 = vmax.f32 %v6345_v63, %v2065_v59  ;;  %2352 = vst.msk [vmem:[#allocation3 + $0x10] sm:$0xff] %vm6592_vm7, %v4858_v42 }
 0x23d   :  { %v2358_v31 = vld [vmem:[#allocation2 + $0x78] sm:$0xff]  ;;  %v2213_v6 = vmax.f32 %v6326_v26, %v2132_v34  ;;  %v6617_v26 = vld [vmem:[#allocation3 + $0x8] sm:$0xff] }
 0x23e   :  { %v2360_v58 = vmax.f32 %v2355_v8, %v2358_v31  ;;  %2263 = vst.msk [vmem:[#allocation2 + $0x98] sm:$0xff] %vm2244_vm4, %v2214_v20 }
 0x23f   :  { %v2069_v28 = vpop.permute.xlu1 %2068  ;;  %v2071_v46 = vpop.permute.xlu0 %2070  ;;  %v2379_v3 = vmax.f32 %v2211_v43, %v2213_v6 }
 0x240   :  { %v2362_v45 = vmax.f32 %v2360_v58, 0.0  ;;  %v2133_v38 = vsel %vm2122_vm3, %v2067_v35, %v2069_v28  ;;  %v2216_v0 = vmax.f32 %v6365_v39, %v2069_v28  ;;  %v5202_v39 = vld [vmem:[%s7132_s3 + $0x38] sm:$0xff]   ;;  %v5203_v35 = vld [vmem:[%s7132_s3 + $0x30] sm:$0xff]  }
 0x241   :  { %v2215_v63 = vmax.f32 %v6348_v24, %v2133_v38  ;;  %v2375_v61 = vld [vmem:[#allocation2 + $0x88] sm:$0xff]  ;;  %v2381_v5 = vmax.f32 %v2379_v3, 0.0 }
 0x242   :  { %v4859_v7 = vpack.c.bf16 %v2362_v45, %v2361_v18  ;;  %2265 = vst.msk [vmem:[#allocation2 + $0xa8] sm:$0xff] %vm2244_vm4, %v2216_v0 }
 0x243   :  { %v2073_v16 = vpop.permute.xlu1 %2072  ;;  %v2075_v49 = vpop.permute.xlu0 %2074  ;;  %v6619_v4 = vld [vmem:[#allocation3 + $0x10] sm:$0xff] }
 0x244   :  { %v2134_v41 = vsel %vm2122_vm3, %v2071_v46, %v2073_v16  ;;  %v2218_v14 = vmax.f32 %v6383_v50, %v2073_v16  ;;  %v4603_v33 = vcombine.low %v6617_v26, %v6619_v4  ;;  %v4604_v24 = vcombine.high %v6617_v26, %v6619_v4  ;;  %2372 = vst.msk [vmem:[#allocation3 + $0x18] sm:$0xff] %vm6592_vm7, %v4859_v7  ;;  %v5206_v7 = vld [vmem:[%s7132_s3 + $0x20] sm:$0xff]  }
 0x245   :  { %v2378_v62 = vld [vmem:[#allocation2 + $0x98] sm:$0xff]  ;;  %v2217_v55 = vmax.f32 %v6368_v13, %v2134_v41 }
 0x246   :  { %v2380_v40 = vmax.f32 %v2375_v61, %v2378_v62  ;;  %2267 = vst.msk [vmem:[#allocation2 + $0xb8] sm:$0xff] %vm2244_vm4, %v2218_v14  ;;  %4620 = vmatprep.mubr.msk.bf16.mxu1 %vm2244_vm4, %v4604_v24  ;;  %v5207_v61 = vld [vmem:[%s7132_s3 + $0x18] sm:$0xff]  }
 0x247   :  { %v2077_v50 = vpop.permute.xlu1 %2076  ;;  %v2079_v17 = vpop.permute.xlu0 %2078  ;;  %2724 = vmatmul.mubr.bf16.vlgmr.msra.gmra.mxu1 %v4603_v33  ;;  %v2399_v8 = vmax.f32 %v2215_v63, %v2217_v55 }
 0x248   :  { %v2382_v43 = vmax.f32 %v2380_v40, 0.0  ;;  %v2135_v42 = vsel %vm2122_vm3, %v2075_v49, %v2077_v50  ;;  %v2220_v59 = vmax.f32 %v6401_v51, %v2077_v50  ;;  %2861 = vmatpush1.bf16.msra.mxu1 %v5202_v39 }
 0x249   :  { %v2219_v13 = vmax.f32 %v6386_v9, %v2135_v42  ;;  %2862 = vmatprep.subr.bf16.mxu1 %v7166_v47  ;;  %v5204_v9 = vld [vmem:[%s7132_s3 + $0x28] sm:$0xff]   ;;  %v2401_v38 = vmax.f32 %v2399_v8, 0.0 }
 0x24a   :  { %v4860_v53 = vpack.c.bf16 %v2382_v43, %v2381_v5  ;;  %2269 = vst.msk [vmem:[#allocation2 + $0xc8] sm:$0xff] %vm2244_vm4, %v2220_v59  ;;  %v2395_v6 = vld [vmem:[#allocation2 + $0xa8] sm:$0xff] }
 0x24b   :  { %v2081_v34 = vpop.permute.xlu1 %2080  ;;  %v2083_v20 = vpop.permute.xlu0 %2082  ;;  %v6661_v14 = vld [vmem:[#allocation3 + $0x18] sm:$0xff] }
 0x24c   :  { %2392 = vst.msk [vmem:[#allocation3 + $0x20] sm:$0xff] %vm6592_vm7, %v4860_v53  ;;  %v2136_v51 = vsel %vm2122_vm3, %v2079_v17, %v2081_v34  ;;  %v2222_v31 = vmax.f32 %v6416_v15, %v2081_v34  ;;  %2863 = vmatpush1.bf16.msra.mxu1 %v5203_v35 }
 0x24d   :  { %v2398_v58 = vld [vmem:[#allocation2 + $0xb8] sm:$0xff]  ;;  %v2221_v28 = vmax.f32 %v6404_v36, %v2136_v51  ;;  %2864 = vmatprep.subr.bf16.mxu1 %v7166_v47 }
 0x24e   :  { %v2400_v46 = vmax.f32 %v2395_v6, %v2398_v58  ;;  %2271 = vst.msk [vmem:[#allocation2 + $0xd8] sm:$0xff] %vm2244_vm4, %v2222_v31 }
 0x24f   :  { %v2085_v18 = vpop.permute.xlu1 %2084  ;;  %v2087_v45 = vpop.permute.xlu0 %2086  ;;  %v2419_v16 = vmax.f32 %v2219_v13, %v2221_v28 }
 0x250   :  { %v2402_v0 = vmax.f32 %v2400_v46, 0.0  ;;  %v2137_v15 = vsel %vm2122_vm3, %v2083_v20, %v2085_v18  ;;  %v2224_v63 = vmax.f32 %v6432_v19, %v2085_v18  ;;  %2865 = vmatpush1.bf16.msra.mxu1 %v5204_v9 }
 0x251   :  { %v2223_v36 = vmax.f32 %v6419_v32, %v2137_v15  ;;  %2866 = vmatprep.subr.bf16.mxu1 %v7166_v47  ;;  %v2415_v62 = vld [vmem:[#allocation2 + $0xc8] sm:$0xff]  ;;  %v2421_v5 = vmax.f32 %v2419_v16, 0.0 }
 0x252   :  { %v4861_v3 = vpack.c.bf16 %v2402_v0, %v2401_v38  ;;  %2273 = vst.msk [vmem:[#allocation2 + $0xe8] sm:$0xff] %vm2244_vm4, %v2224_v63  ;;  %v5211_v38 = vld [vmem:[%s7132_s3] sm:$0xff]   ;;  %v7221_v16 = vld [vmem:[#allocation6_spill] sm:$0xff] }
 0x253   :  { %v2089_v49 = vpop.permute.xlu1 %2088  ;;  %v2091_v41 = vpop.permute.xlu0 %2090  ;;  %v6663_v33 = vld [vmem:[#allocation3 + $0x20] sm:$0xff] }
 0x254   :  { %2412 = vst.msk [vmem:[#allocation3 + $0x28] sm:$0xff] %vm6592_vm7, %v4861_v3  ;;  %v2138_v19 = vsel %vm2122_vm3, %v2087_v45, %v2089_v49  ;;  %v2226_v24 = vmax.f32 %v6447_v37, %v2089_v49  ;;  %v4606_v32 = vcombine.high %v6661_v14, %v6663_v33  ;;  %v4702_v39 = vcombine.low %v6661_v14, %v6663_v33  ;;  %v5212_v0 = vld [vmem:[%s7132_s3 + $0x40] sm:$0x1f]  }
 0x255   :  { %2867 = vmatpush1.bf16.msra.mxu1 %v5206_v7  ;;  %v2418_v55 = vld [vmem:[#allocation2 + $0xd8] sm:$0xff]  ;;  %v2225_v40 = vmax.f32 %v6435_v1, %v2138_v19  ;;  %v5208_v1 = vld [vmem:[%s7132_s3 + $0x10] sm:$0xff]  }
 0x256   :  { %2868 = vmatprep.subr.bf16.mxu1 %v7166_v47  ;;  %v2420_v50 = vmax.f32 %v2415_v62, %v2418_v55  ;;  %2275 = vst.msk [vmem:[#allocation2 + $0xf8] sm:$0xff] %vm2244_vm4, %v2226_v24  ;;  %4621 = vmatprep.mubr.msk.bf16.mxu1 %vm2244_vm4, %v4606_v32  ;;  %v2858_v62 = vsel %vm2687_vm2, %v5212_v0, 0 }
 0x257   :  { %4719 = vmatprep.mubr.msk.bf16.mxu0 %vm2244_vm4, %v4606_v32  ;;  %v2093_v37 = vpop.permute.xlu1 %2092  ;;  %v2095_v17 = vpop.permute.xlu0 %2094  ;;  %2732 = vmatmul.mubr.bf16.gmra.mxu1 %v4702_v39  ;;  %v2439_v20 = vmax.f32 %v2223_v36, %v2225_v40 }
 0x258   :  { %3293 = vmatmul.mubr.bf16.vlgmr.msra.gmra.mxu0 %v4702_v39  ;;  %v2422_v43 = vmax.f32 %v2420_v50, 0.0  ;;  %v2139_v42 = vsel %vm2122_vm3, %v2091_v41, %v2093_v37  ;;  %v2228_v59 = vmax.f32 %v6457_v52, %v2093_v37  ;;  %v7222_v39 = vld [vmem:[#allocation5_spill] sm:$0xff] }
 0x259   :  { %2869 = vmatpush1.bf16.msra.mxu1 %v5207_v61  ;;  %v2227_v35 = vmax.f32 %v6450_v48, %v2139_v42  ;;  %v5209_v48 = vld [vmem:[%s7132_s3 + $0x8] sm:$0xff]   ;;  %v2441_v46 = vmax.f32 %v2439_v20, 0.0  ;;  %v7223_v42 = vld [vmem:[#allocation7_spill] sm:$0xff] }
 0x25a   :  { %2870 = vmatprep.subr.bf16.mxu1 %v7166_v47  ;;  %v4862_v13 = vpack.c.bf16 %v2422_v43, %v2421_v5  ;;  %2277 = vst.msk [vmem:[#allocation2 + $0x108] sm:$0xff] %vm2244_vm4, %v2228_v59  ;;  %v2435_v51 = vld [vmem:[#allocation2 + $0xe8] sm:$0xff] }
 0x25b   :  { %v2097_v53 = vpop.permute.xlu1 %2096  ;;  %v2027_v34 = vpop.permute.xlu0 %2026 }
 0x25c   :  { %2432 = vst.msk [vmem:[#allocation3 + $0x30] sm:$0xff] %vm6592_vm7, %v4862_v13  ;;  %v2140_v52 = vsel %vm2122_vm3, %v2095_v17, %v2097_v53  ;;  %v2230_v8 = vmax.f32 %v6471_v27, %v2097_v53 }
 0x25d   :  { %2871 = vmatpush1.bf16.msra.mxu1 %v5208_v1  ;;  %v2438_v31 = vld [vmem:[#allocation2 + $0xf8] sm:$0xff]  ;;  %v2229_v9 = vmax.f32 %v6460_v60, %v2140_v52 }
 0x25e   :  { %2872 = vmatprep.subr.bf16.mxu1 %v7166_v47  ;;  %v2440_v6 = vmax.f32 %v2435_v51, %v2438_v31  ;;  %2279 = vst.msk [vmem:[#allocation2 + $0x118] sm:$0xff] %vm2244_vm4, %v2230_v8 }
 0x25f   :  { %v2029_v58 = vpop.permute.xlu1 %2028  ;;  %v2031_v28 = vpop.permute.xlu0 %2030  ;;  %v2459_v63 = vmax.f32 %v2227_v35, %v2229_v9 }
 0x260   :  { %v2442_v18 = vmax.f32 %v2440_v6, 0.0  ;;  %v2123_v27 = vsel %vm2122_vm3, %v2027_v34, %v2029_v58  ;;  %v2196_v45 = vmax.f32 %v6482_v54, %v2029_v58  ;;  %v6710_v54 = vld [vmem:[#allocation3 + $0x28] sm:$0xff] }
 0x261   :  { %2873 = vmatpush1.bf16.msra.mxu1 %v5209_v48  ;;  %v2195_v60 = vmax.f32 %v6468_v25, %v2123_v27  ;;  %v2455_v24 = vld [vmem:[#allocation2 + $0x108] sm:$0xff]  ;;  %v2461_v37 = vmax.f32 %v2459_v63, 0.0 }
 0x262   :  { %2874 = vmatprep.subr.bf16.mxu1 %v7166_v47  ;;  %v4863_v15 = vpack.c.bf16 %v2442_v18, %v2441_v46  ;;  %2245 = vst.msk [vmem:[#allocation2 + $0x8] sm:$0xff] %vm2244_vm4, %v2196_v45 }
 0x263   :  { %v2033_v7 = vpop.permute.xlu1 %2032  ;;  %v2099_v36 = vpop.permute.xlu0 %2098  ;;  %v6712_v3 = vld [vmem:[#allocation3 + $0x30] sm:$0xff] }
 0x264   :  { %2452 = vst.msk [vmem:[#allocation3 + $0x38] sm:$0xff] %vm6592_vm7, %v4863_v15  ;;  %v2124_v25 = vsel %vm2122_vm3, %v2031_v28, %v2033_v7  ;;  %v2198_v49 = vmax.f32 %v7221_v16, %v2033_v7  ;;  %v4608_v41 = vcombine.high %v6710_v54, %v6712_v3  ;;  %v4607_v19 = vcombine.low %v6710_v54, %v6712_v3 }
 0x265   :  { %2875 = vmatpush1.bf16.msra.mxu1 %v5211_v38  ;;  %v2458_v32 = vld [vmem:[#allocation2 + $0x118] sm:$0xff]  ;;  %v2197_v61 = vmax.f32 %v7222_v39, %v2124_v25 }
 0x266   :  { %2890 = vmatprep.subr.bf16.mxu1 %v7166_v47  ;;  %v2460_v55 = vmax.f32 %v2455_v24, %v2458_v32  ;;  %2247 = vst.msk [vmem:[#allocation2 + $0x18] sm:$0xff] %vm2244_vm4, %v2198_v49  ;;  %4622 = vmatprep.mubr.msk.bf16.mxu1 %vm2244_vm4, %v4608_v41 }
 0x267   :  { %4720 = vmatprep.mubr.msk.bf16.mxu0 %vm2244_vm4, %v4608_v41  ;;  %v2101_v40 = vpop.permute.xlu1 %2100  ;;  %v2103_v50 = vpop.permute.xlu0 %2102  ;;  %2740 = vmatmul.mubr.bf16.gmra.mxu1 %v4607_v19  ;;  %v2297_v53 = vmax.f32 %v2195_v60, %v2197_v61 }
 0x268   :  { %3301 = vmatmul.mubr.bf16.gmra.mxu0 %v4607_v19  ;;  %v2462_v17 = vmax.f32 %v2460_v55, 0.0  ;;  %v2141_v5 = vsel %vm2122_vm3, %v2099_v36, %v2101_v40  ;;  %v2232_v43 = vmax.f32 %v6510_v22, %v2101_v40 }
 0x269   :  { %2891 = vmatpush2.bf16.msra.mxu1 %v2858_v62  ;;  %v2231_v59 = vmax.f32 %v7223_v42, %v2141_v5  ;;  %v2293_v52 = vld [vmem:[#allocation2 + $0x8] sm:$0xff]  ;;  %v2299_v9 = vmax.f32 %v2297_v53, 0.0  ;;  %v4626_v53 = vcombine.low %v6619_v4, %v6661_v14 }
 0x26a   :  { %3056 = vmatprep.subr.bf16.mxu1 %v7166_v47  ;;  %v4864_v1 = vpack.c.bf16 %v2462_v17, %v2461_v37  ;;  %2281 = vst.msk [vmem:[#allocation2 + $0x128] sm:$0xff] %vm2244_vm4, %v2232_v43 }
 0x26b   :  { %v2105_v35 = vpop.permute.xlu1 %2104  ;;  %v2107_v13 = vpop.permute.xlu0 %2106  ;;  %v6743_v45 = vld [vmem:[#allocation3 + $0x38] sm:$0xff] }
 0x26c   :  { %2472 = vst.msk [vmem:[#allocation3 + $0x40] sm:$0xff] %vm6592_vm7, %v4864_v1  ;;  %v2142_v34 = vsel %vm2122_vm3, %v2103_v50, %v2105_v35  ;;  %v2234_v20 = vmax.f32 %v6523_v44, %v2105_v35  ;;  %v5215_v1 = vld [vmem:[%s7132_s3 + $0xb8] sm:$0xff]   ;;  %v4631_v2 = vcombine.high %v6712_v3, %v6743_v45 }
 0x26d   :  { %v2296_v22 = vld [vmem:[#allocation2 + $0x18] sm:$0xff]  ;;  %v2233_v8 = vmax.f32 %v6513_v21, %v2142_v34 }
 0x26e   :  { %v2298_v48 = vmax.f32 %v2293_v52, %v2296_v22  ;;  %2283 = vst.msk [vmem:[#allocation2 + $0x138] sm:$0xff] %vm2244_vm4, %v2234_v20  ;;  %v6792_v20 = vcombine.high %v6663_v33, %v6710_v54 }
 0x26f   :  { %v2109_v51 = vpop.permute.xlu1 %2108  ;;  %v2111_v31 = vpop.permute.xlu0 %2110  ;;  %v2479_v44 = vmax.f32 %v2231_v59, %v2233_v8  ;;  %v5216_v8 = vld [vmem:[%s7132_s3 + $0xb0] sm:$0xff]  }
 0x270   :  { %v2300_v6 = vmax.f32 %v2298_v48, 0.0  ;;  %v2143_v58 = vsel %vm2122_vm3, %v2107_v13, %v2109_v51  ;;  %v2236_v28 = vmax.f32 %v6536_v56, %v2109_v51 }
 0x271   :  { %v2235_v46 = vmax.f32 %v6526_v12, %v2143_v58  ;;  %v2475_v0 = vld [vmem:[#allocation2 + $0x128] sm:$0xff]  ;;  %v5220_v58 = vld [vmem:[%s7132_s3 + $0xa0] sm:$0xff]  }
 0x272   :  { %v4856_v18 = vpack.c.bf16 %v2300_v6, %v2299_v9  ;;  %2285 = vst.msk [vmem:[#allocation2 + $0x148] sm:$0xff] %vm2244_vm4, %v2236_v28  ;;  %v4628_v6 = vcombine.low %v6663_v33, %v6710_v54  ;;  %v5221_v33 = vld [vmem:[%s7132_s3 + $0x98] sm:$0xff]   ;;  %v4630_v54 = vcombine.low %v6712_v3, %v6743_v45  ;;  %v5222_v28 = vld [vmem:[%s7132_s3 + $0x90] sm:$0xff]  }
 0x273   :  { %v2113_v27 = vpop.permute.xlu1 %2112  ;;  %v6745_v21 = vld [vmem:[#allocation3 + $0x40] sm:$0xff]  ;;  %v2115_v7 = vpop.permute.xlu0 %2114  ;;  %v5224_v3 = vld [vmem:[%s7132_s3 + $0x158] sm:$0xff]  }
 0x274   :  { %2312 = vst.msk [vmem:[#allocation3] sm:$0xff] %vm6592_vm7, %v4856_v18  ;;  %v2144_v38 = vsel %vm2122_vm3, %v2111_v31, %v2113_v27  ;;  %v2238_v60 = vmax.f32 %v6549_v11, %v2113_v27  ;;  %v4610_v56 = vcombine.high %v6743_v45, %v6745_v21  ;;  %v4609_v12 = vcombine.low %v6743_v45, %v6745_v21  ;;  %v5218_v31 = vld [vmem:[%s7132_s3 + $0xa8] sm:$0xff]   ;;  %v5227_v45 = vld [vmem:[%s7132_s3 + $0x140] sm:$0xff]  }
 0x275   :  { %v2478_v15 = vld [vmem:[#allocation2 + $0x138] sm:$0xff]  ;;  %v2237_v63 = vmax.f32 %v6539_v10, %v2144_v38  ;;  %v2481_v11 = vmax.f32 %v2479_v44, 0.0  ;;  %v5225_v44 = vld [vmem:[%s7132_s3 + $0x150] sm:$0xff]   ;;  %v5226_v27 = vld [vmem:[%s7132_s3 + $0x148] sm:$0xff]  }
 0x276   :  { %v2480_v36 = vmax.f32 %v2475_v0, %v2478_v15  ;;  %2287 = vst.msk [vmem:[#allocation2 + $0x158] sm:$0xff] %vm2244_vm4, %v2238_v60  ;;  %4623 = vmatprep.mubr.msk.bf16.mxu1 %vm2244_vm4, %v4610_v56  ;;  %4721 = vmatprep.mubr.msk.bf16.mxu0 %vm2244_vm4, %v4610_v56  ;;  %v5228_v38 = vld [vmem:[%s7132_s3 + $0x138] sm:$0xff]   ;;  %v5229_v56 = vld [vmem:[%s7132_s3 + $0x130] sm:$0xff]   ;;  %v5231_v15 = vld [vmem:[%s7132_s3 + $0x120] sm:$0xff]  }
 0x277   :  { %v2117_v25 = vpop.permute.xlu1 %2116  ;;  %2748 = vmatmul.mubr.bf16.gmra.mxu1 %v4609_v12  ;;  %3309 = vmatmul.mubr.bf16.gmra.mxu0 %v4609_v12  ;;  %v2499_v24 = vmax.f32 %v2235_v46, %v2237_v63  ;;  %v2119_v32 = vpop.permute.xlu0 %2118  ;;  %v5223_v46 = vld [vmem:[%s7132_s3 + $0xd0] sm:$0x1f]   ;;  %v5230_v12 = vld [vmem:[%s7132_s3 + $0x128] sm:$0xff]   ;;  %v5232_v63 = vld [vmem:[%s7132_s3 + $0x160] sm:$0x1f]  }
 0x278   :  { %v2482_v16 = vmax.f32 %v2480_v36, 0.0  ;;  %v2145_v49 = vsel %vm2122_vm3, %v2115_v7, %v2117_v25  ;;  %v2240_v41 = vmax.f32 %v6559_v30, %v2117_v25  ;;  %v3054_v18 = vsel %vm2687_vm2, %v5223_v46, 0 }
 0x279   :  { %v2239_v19 = vmax.f32 %v6552_v57, %v2145_v49  ;;  %v5213_v57 = vld [vmem:[%s7132_s3 + $0xc8] sm:$0xff]   ;;  %v2501_v43 = vmax.f32 %v2499_v24, 0.0 }
 0x27a   :  { %v4865_v10 = vpack.c.bf16 %v2482_v16, %v2481_v11  ;;  %2289 = vst.msk [vmem:[#allocation2 + $0x168] sm:$0xff] %vm2244_vm4, %v2240_v41  ;;  %v2495_v50 = vld [vmem:[#allocation2 + $0x148] sm:$0xff] }
 0x27b   :  { %v2121_v39 = vpop.permute.xlu1 %2120  ;;  %v2533_v61 = vld [vmem:[#allocation3] sm:$0xff] }
 0x27c   :  { %2492 = vst.msk [vmem:[#allocation3 + $0x48] sm:$0xff] %vm6592_vm7, %v4865_v10  ;;  %v2146_v62 = vsel %vm2122_vm3, %v2119_v32, %v2121_v39  ;;  %v2242_v55 = vmax.f32 %v6569_v23, %v2121_v39  ;;  %v4624_v40 = vcombine.low %v2533_v61, %v6617_v26  ;;  %v4625_v30 = vcombine.high %v2533_v61, %v6617_v26  ;;  %v5214_v26 = vld [vmem:[%s7132_s3 + $0xc0] sm:$0xff]  }
 0x27d   :  { %v2498_v37 = vld [vmem:[#allocation2 + $0x158] sm:$0xff]  ;;  %v2241_v17 = vmax.f32 %v6562_v29, %v2146_v62  ;;  %v4627_v23 = vcombine.high %v6619_v4, %v6661_v14 }
 0x27e   :  { %v2500_v5 = vmax.f32 %v2495_v50, %v2498_v37  ;;  %2291 = vst.msk [vmem:[#allocation2 + $0x178] sm:$0xff] %vm2244_vm4, %v2242_v55  ;;  %4641 = vmatprep.mubr.msk.bf16.mxu1 %vm2244_vm4, %v4625_v30 }
 0x27f   :  { %2893 = vmatmul.mubr.bf16.vlgmr.msra.gmra.mxu1 %v4624_v40  ;;  %v2519_v59 = vmax.f32 %v2239_v19, %v2241_v17  ;;  %v5281_v17 = vmov 0.0  }
 0x280   :  { %v2502_v42 = vmax.f32 %v2500_v5, 0.0  ;;  %3057 = vmatpush1.bf16.msra.mxu1 %v5213_v57  ;;  %4642 = vmatprep.mubr.msk.bf16.mxu1 %vm2244_vm4, %v4627_v23  ;;  %v5235_v5 = vld [vmem:[%s7134_s5 + $0x30] sm:$0xff]  }
 0x281   :  { %3058 = vmatprep.subr.bf16.mxu1 %v7166_v47  ;;  %v2515_v35 = vld [vmem:[#allocation2 + $0x168] sm:$0xff]  ;;  %v2521_v52 = vmax.f32 %v2519_v59, 0.0  ;;  %4918 = vmatprep.subr.bf16.mxu0 %v5281_v17  ;;  %v5238_v59 = vld [vmem:[%s7134_s5 + $0x20] sm:$0xff]  }
 0x282   :  { %v4866_v29 = vpack.c.bf16 %v2502_v42, %v2501_v43 }
 0x283   :  { %v3135_v4 = vld [vmem:[#allocation3 + $0x48] sm:$0xff] }
 0x284   :  { %2512 = vst.msk [vmem:[#allocation3 + $0x50] sm:$0xff] %vm6592_vm7, %v4866_v29  ;;  %3059 = vmatpush1.bf16.msra.mxu1 %v5214_v26  ;;  %v4670_v60 = vcombine.high %v6745_v21, %v3135_v4  ;;  %v4669_v0 = vcombine.low %v6745_v21, %v3135_v4  ;;  %v3462_v21 = vsel %vm2687_vm2, %v5232_v63, 0  ;;  %v5237_v26 = vld [vmem:[%s7134_s5 + $0x68] sm:$0xff]   ;;  %v5239_v29 = vld [vmem:[%s7134_s5 + $0x60] sm:$0xff]  }
 0x285   :  { %v2518_v13 = vld [vmem:[#allocation2 + $0x178] sm:$0xff]  ;;  %3060 = vmatprep.subr.bf16.mxu1 %v7166_v47  ;;  %4919 = vmatpush3.bf16.msra.mxu0 %v5237_v26 }
 0x286   :  { %v2520_v34 = vmax.f32 %v2515_v35, %v2518_v13  ;;  %4920 = vmatprep.subr.bf16.mxu0 %v5281_v17  ;;  %v5240_v35 = vld [vmem:[%s7134_s5 + $0x18] sm:$0xff]   ;;  %v5243_v13 = vld [vmem:[%s7134_s5 + $0x50] sm:$0xff]  }
 0x287   :  { %2901 = vmatmul.mubr.bf16.gmra.mxu1 %v4626_v53 }
 0x288   :  { %v2522_v22 = vmax.f32 %v2520_v34, 0.0  ;;  %3061 = vmatpush1.bf16.msra.mxu1 %v5215_v1  ;;  %4643 = vmatprep.mubr.msk.bf16.mxu1 %vm2244_vm4, %v6792_v20  ;;  %v5241_v1 = vld [vmem:[%s7134_s5 + $0x58] sm:$0xff]  }
 0x289   :  { %3062 = vmatprep.subr.bf16.mxu1 %v7166_v47  ;;  %4921 = vmatpush3.bf16.msra.mxu0 %v5239_v29 }
 0x28a   :  { %v4867_v48 = vpack.c.bf16 %v2522_v22, %v2521_v52  ;;  %4922 = vmatprep.subr.bf16.mxu0 %v5281_v17 }
 0x28b   :  { %v6800_v14 = vld [vmem:[#allocation3 + $0x50] sm:$0xff] }
 0x28c   :  { %2532 = vst.msk [vmem:[#allocation3 + $0x58] sm:$0xff] %vm6592_vm7, %v4867_v48  ;;  %3063 = vmatpush1.bf16.msra.mxu1 %v5216_v8  ;;  %v4709_v51 = vcombine.high %v3135_v4, %v6800_v14  ;;  %v4708_v9 = vcombine.low %v3135_v4, %v6800_v14  ;;  %v5244_v4 = vld [vmem:[%s7134_s5 + $0x8] sm:$0xff]  }
 0x28d   :  { %3064 = vmatprep.subr.bf16.mxu1 %v7166_v47  ;;  %4923 = vmatpush3.bf16.msra.mxu0 %v5241_v1 }
 0x28e   :  { %4722 = vmatprep.mubr.msk.bf16.mxu0 %vm2244_vm4, %v4709_v51  ;;  %4924 = vmatprep.subr.bf16.mxu0 %v5281_v17 }
 0x28f   :  { %2909 = vmatmul.mubr.bf16.gmra.mxu1 %v4628_v6  ;;  %3317 = vmatmul.mubr.bf16.gmra.mxu0 %v4708_v9 }
 0x290   :  { %3065 = vmatpush1.bf16.msra.mxu1 %v5218_v31  ;;  %4644 = vmatprep.mubr.msk.bf16.mxu1 %vm2244_vm4, %v4631_v2 }
 0x291   :  { %3066 = vmatprep.subr.bf16.mxu1 %v7166_v47  ;;  %4925 = vmatpush3.bf16.msra.mxu0 %v5243_v13 }
 0x292   :  { %4926 = vmatprep.subr.bf16.mxu0 %v5281_v17  ;;  %4932 = vmatprep.mubr.msk.bf16.mxu0 %vm5282_vm8, %v5281_v17 }
 0x293   :  { %v3340_v7 = vld [vmem:[#allocation3 + $0x58] sm:$0xff] }
 0x294   :  { %3067 = vmatpush1.bf16.msra.mxu1 %v5220_v58  ;;  %v4748_v36 = vcombine.high %v6800_v14, %v3340_v7  ;;  %v4747_v25 = vcombine.low %v6800_v14, %v3340_v7 }
 0x295   :  { %3068 = vmatprep.subr.bf16.mxu1 %v7166_v47 }
 0x297   :  { %2917 = vmatmul.mubr.bf16.gmra.mxu1 %v4630_v54 }
 0x298   :  { %3069 = vmatpush1.bf16.msra.mxu1 %v5221_v33  ;;  %4680 = vmatprep.mubr.msk.bf16.mxu1 %vm2244_vm4, %v4627_v23  ;;  %v5236_v23 = vld [vmem:[%s7134_s5 + $0x28] sm:$0xff]  }
 0x299   :  { %3070 = vmatprep.subr.bf16.mxu1 %v7166_v47 }
 0x29c   :  { %3071 = vmatpush1.bf16.msra.mxu1 %v5222_v28 }
 0x29d   :  { %3086 = vmatprep.subr.bf16.mxu1 %v7166_v47 }
 0x2a0   :  { %3087 = vmatpush2.bf16.msra.mxu1 %v3054_v18 }
 0x2a1   :  { %3464 = vmatprep.subr.bf16.mxu1 %v7166_v47 }
 0x2a3   :  { %3089 = vmatmul.mubr.bf16.vlgmr.msra.gmra.mxu1 %v4626_v53 }
 0x2a4   :  { %4681 = vmatprep.mubr.msk.bf16.mxu1 %vm2244_vm4, %v6792_v20  ;;  %3465 = vmatpush1.bf16.msra.mxu1 %v5224_v3 }
 0x2a5   :  { %3466 = vmatprep.subr.bf16.mxu1 %v7166_v47 }
 0x2a8   :  { %3467 = vmatpush1.bf16.msra.mxu1 %v5225_v44 }
 0x2a9   :  { %3468 = vmatprep.subr.bf16.mxu1 %v7166_v47 }
 0x2ab   :  { %3097 = vmatmul.mubr.bf16.gmra.mxu1 %v4628_v6 }
 0x2ac   :  { %4682 = vmatprep.mubr.msk.bf16.mxu1 %vm2244_vm4, %v4631_v2  ;;  %3469 = vmatpush1.bf16.msra.mxu1 %v5226_v27 }
 0x2ad   :  { %3470 = vmatprep.subr.bf16.mxu1 %v7166_v47 }
 0x2b0   :  { %3471 = vmatpush1.bf16.msra.mxu1 %v5227_v45 }
 0x2b1   :  { %3472 = vmatprep.subr.bf16.mxu1 %v7166_v47 }
 0x2b3   :  { %3105 = vmatmul.mubr.bf16.gmra.mxu1 %v4630_v54 }
 0x2b4   :  { %4683 = vmatprep.mubr.msk.bf16.mxu1 %vm2244_vm4, %v4670_v60  ;;  %3473 = vmatpush1.bf16.msra.mxu1 %v5228_v38 }
 0x2b5   :  { %3474 = vmatprep.subr.bf16.mxu1 %v7166_v47 }
 0x2b8   :  { %3475 = vmatpush1.bf16.msra.mxu1 %v5229_v56 }
 0x2b9   :  { %3476 = vmatprep.subr.bf16.mxu1 %v7166_v47 }
 0x2bb   :  { %3113 = vmatmul.mubr.bf16.gmra.mxu1 %v4669_v0 }
 0x2bc   :  { %3477 = vmatpush1.bf16.msra.mxu1 %v5230_v12  ;;  %4758 = vmatprep.mubr.msk.bf16.mxu1 %vm2244_vm4, %v6792_v20  ;;  %v5242_v20 = vld [vmem:[%s7134_s5 + $0x10] sm:$0xff]  }
 0x2bd   :  { %3478 = vmatprep.subr.bf16.mxu1 %v7166_v47 }
 0x2c0   :  { %3479 = vmatpush1.bf16.msra.mxu1 %v5231_v15 }
 0x2c1   :  { %3494 = vmatprep.subr.bf16.mxu1 %v7166_v47 }
 0x2c4   :  { %3495 = vmatpush2.bf16.msra.mxu1 %v3462_v21 }
 0x2c5   :  { %4936 = vmatprep.subr.bf16.mxu1 %v5281_v17 }
 0x2c7   :  { %3497 = vmatmul.mubr.bf16.vlgmr.msra.gmra.mxu1 %v4628_v6 }
 0x2c8   :  { %4759 = vmatprep.mubr.msk.bf16.mxu1 %vm2244_vm4, %v4631_v2  ;;  %4937 = vmatpush3.bf16.msra.mxu1 %v5235_v5 }
 0x2c9   :  { %4938 = vmatprep.subr.bf16.mxu1 %v5281_v17 }
 0x2cc   :  { %4939 = vmatpush3.bf16.msra.mxu1 %v5236_v23 }
 0x2cd   :  { %4940 = vmatprep.subr.bf16.mxu1 %v5281_v17 }
 0x2cf   :  { %3505 = vmatmul.mubr.bf16.gmra.mxu1 %v4630_v54 }
 0x2d0   :  { %4760 = vmatprep.mubr.msk.bf16.mxu1 %vm2244_vm4, %v4670_v60  ;;  %4941 = vmatpush3.bf16.msra.mxu1 %v5238_v59 }
 0x2d1   :  { %4942 = vmatprep.subr.bf16.mxu1 %v5281_v17 }
 0x2d4   :  { %4943 = vmatpush3.bf16.msra.mxu1 %v5240_v35 }
 0x2d5   :  { %4944 = vmatprep.subr.bf16.mxu1 %v5281_v17 }
 0x2d7   :  { %3513 = vmatmul.mubr.bf16.gmra.mxu1 %v4669_v0 }
 0x2d8   :  { %4761 = vmatprep.mubr.msk.bf16.mxu1 %vm2244_vm4, %v4748_v36  ;;  %4945 = vmatpush3.bf16.msra.mxu1 %v5242_v20 }
 0x2d9   :  { %4946 = vmatprep.subr.bf16.mxu1 %v5281_v17 }
 0x2dc   :  { %4947 = vmatpush3.bf16.msra.mxu1 %v5244_v4 }
 0x2dd   :  { %4948 = vmatprep.subr.bf16.mxu1 %v5281_v17 }
 0x2df   :  { %3521 = vmatmul.mubr.bf16.gmra.mxu1 %v4747_v25 }
 0x2e0   :  { %4950 = vmatprep.mubr.msk.bf16.mxu1 %vm5282_vm8, %v5281_v17 }
 0x307   :  { %v2725_v11 = vpop.f32.mrf.mxu1 }
 0x309   :  { %v2727_v47 = vpop.f32.mrf.mxu1 }
 0x30b   :  { %v6886_v16 = vpop.f32.mrf.mxu1 }
 0x30d   :  { %v2730_v49 = vpop.f32.mrf.mxu1 }
 0x317   :  { %v6888_v41 = vpop.f32.mrf.mxu1 }
 0x318   :  { %v6890_v19 = vpop.f32.mrf.mxu0 }
 0x319   :  { %v2735_v10 = vpop.f32.mrf.mxu1 }
 0x31a   :  { %v3296_v24 = vpop.f32.mrf.mxu0 }
 0x31b   :  { %v6892_v32 = vpop.f32.mrf.mxu1 }
 0x31c   :  { %v6894_v39 = vpop.f32.mrf.mxu0 }
 0x31d   :  { %v2738_v61 = vpop.f32.mrf.mxu1 }
 0x31e   :  { %v3299_v62 = vpop.f32.mrf.mxu0 }
 0x327   :  { %v6896_v55 = vpop.f32.mrf.mxu1 }
 0x328   :  { %v6898_v40 = vpop.f32.mrf.mxu0 }
 0x329   :  { %v2743_v30 = vpop.f32.mrf.mxu1 }
 0x32a   :  { %v3304_v57 = vpop.f32.mrf.mxu0 }
 0x32b   :  { %v6900_v50 = vpop.f32.mrf.mxu1 }
 0x32c   :  { %v6902_v37 = vpop.f32.mrf.mxu0 }
 0x32d   :  { %v2746_v43 = vpop.f32.mrf.mxu1 }
 0x32e   :  { %v3307_v42 = vpop.f32.mrf.mxu0 }
 0x337   :  { %v2749_v53 = vpop.f32.mrf.mxu1  ;;  %v3310_v34 = vpop.f32.mrf.mxu0 }
 0x339   :  { %v2751_v52 = vpop.f32.mrf.mxu1  ;;  %v3312_v22 = vpop.f32.mrf.mxu0 }
 0x33b   :  { %v2752_v8 = vpop.f32.mrf.mxu1  ;;  %v3313_v48 = vpop.f32.mrf.mxu0 }
 0x33d   :  { %v2754_v14 = vpop.f32.mrf.mxu1  ;;  %v3315_v51 = vpop.f32.mrf.mxu0 }
 0x33f   :  { %v2894_v31 = vpop.f32.mrf.mxu1 }
 0x340   :  { %v2895_v9 = vadd.f32 %v2894_v31, %v2725_v11  ;;  %v5247_v31 = vld [vmem:[%s7134_s5 + $0x40] sm:$0xff]  }
 0x341   :  { %v2896_v6 = vpop.f32.mrf.mxu1 }
 0x343   :  { %v2897_v2 = vpop.f32.mrf.mxu1 }
 0x344   :  { %v2898_v58 = vadd.f32 %v2897_v2, %v6886_v16 }
 0x345   :  { %v2899_v33 = vpop.f32.mrf.mxu1 }
 0x347   :  { %v2902_v54 = vpop.f32.mrf.mxu1 }
 0x348   :  { %v6948_v28 = vadd.f32 %v2902_v54, %v6888_v41 }
 0x349   :  { %v2904_v46 = vpop.f32.mrf.mxu1 }
 0x34b   :  { %v2905_v18 = vpop.f32.mrf.mxu1 }
 0x34c   :  { %v6951_v3 = vadd.f32 %v2905_v18, %v6892_v32 }
 0x34d   :  { %v2907_v44 = vpop.f32.mrf.mxu1 }
 0x34e   :  { %v5249_v44 = vld [vmem:[%s7134_s5 + $0x38] sm:$0xff]  }
 0x34f   :  { %v2910_v27 = vpop.f32.mrf.mxu1  ;;  %v3318_v45 = vpop.f32.mrf.mxu0 }
 0x350   :  { %v2911_v38 = vadd.f32 %v2910_v27, %v6896_v55 }
 0x351   :  { %v2912_v60 = vpop.f32.mrf.mxu1  ;;  %v3320_v56 = vpop.f32.mrf.mxu0 }
 0x353   :  { %v2913_v12 = vpop.f32.mrf.mxu1  ;;  %v3321_v0 = vpop.f32.mrf.mxu0 }
 0x354   :  { %v2914_v15 = vadd.f32 %v2913_v12, %v6900_v50 }
 0x355   :  { %v2915_v63 = vpop.f32.mrf.mxu1  ;;  %v3323_v21 = vpop.f32.mrf.mxu0 }
 0x357   :  { %v2918_v7 = vpop.f32.mrf.mxu1 }
 0x358   :  { %v2919_v36 = vadd.f32 %v2918_v7, %v2749_v53 }
 0x359   :  { %v2920_v25 = vpop.f32.mrf.mxu1 }
 0x35b   :  { %v2921_v11 = vpop.f32.mrf.mxu1 }
 0x35c   :  { %v2922_v47 = vadd.f32 %v2921_v11, %v2752_v8  ;;  %v5245_v8 = vld [vmem:[%s7134_s5 + $0x48] sm:$0xff]  }
 0x35d   :  { %v2923_v16 = vpop.f32.mrf.mxu1  ;;  %4927 = vmatpush3.bf16.msra.mxu0 %v5245_v8  ;;  %v5256_v8 = vld [vmem:[%s7134_s5 + $0xb8] sm:$0xff]  }
 0x35e   :  { %4928 = vmatprep.subr.bf16.mxu0 %v5281_v17 }
 0x361   :  { %4929 = vmatpush3.bf16.msra.mxu0 %v5247_v31  ;;  %v5260_v31 = vld [vmem:[%s7134_s5 + $0xa8] sm:$0xff]  }
 0x362   :  { %4930 = vmatprep.subr.bf16.mxu0 %v5281_v17 }
 0x363   :  { %v3090_v49 = vpop.f32.mrf.mxu1 }
 0x364   :  { %v3121_v22 = vadd.f32 %v3090_v49, %v2895_v9 }
 0x365   :  { %v3092_v41 = vpop.f32.mrf.mxu1  ;;  %4931 = vmatpush3.bf16.msra.mxu0 %v5249_v44  ;;  %v5265_v44 = vld [vmem:[%s7136_s7 + $0x28] sm:$0xff]  }
 0x366   :  { %4954 = vmatprep.subr.bf16.mxu0 %v5281_v17 }
 0x367   :  { %v3093_v10 = vpop.f32.mrf.mxu1 }
 0x368   :  { %v3122_v4 = vadd.f32 %v3093_v10, %v2898_v58 }
 0x369   :  { %v3095_v24 = vpop.f32.mrf.mxu1 }
 0x36a   :  { %v3326_v6 = vadd.f32 %v6894_v39, %v3122_v4  ;;  %v5257_v4 = vld [vmem:[%s7134_s5 + $0x88] sm:$0xff]  }
 0x36b   :  { %v3098_v32 = vpop.f32.mrf.mxu1 }
 0x36c   :  { %v3123_v58 = vadd.f32 %v3098_v32, %v6948_v28 }
 0x36d   :  { %v3100_v61 = vpop.f32.mrf.mxu1 }
 0x36f   :  { %v3101_v62 = vpop.f32.mrf.mxu1 }
 0x370   :  { %v3124_v39 = vadd.f32 %v3101_v62, %v6951_v3 }
 0x371   :  { %v3103_v55 = vpop.f32.mrf.mxu1 }
 0x372   :  { %v3328_v56 = vadd.f32 %v6902_v37, %v3124_v39 }
 0x373   :  { %v3106_v30 = vpop.f32.mrf.mxu1 }
 0x374   :  { %v3125_v57 = vadd.f32 %v3106_v30, %v2911_v38 }
 0x375   :  { %v3108_v5 = vpop.f32.mrf.mxu1 }
 0x376   :  { %v3329_v50 = vadd.f32 %v3310_v34, %v3125_v57  ;;  %v5246_v34 = vld [vmem:[%s7134_s5] sm:$0xff]  }
 0x377   :  { %v3109_v23 = vpop.f32.mrf.mxu1  ;;  %4949 = vmatpush3.bf16.msra.mxu1 %v5246_v34 }
 0x378   :  { %v3126_v43 = vadd.f32 %v3109_v23, %v2914_v15  ;;  %4972 = vmatprep.subr.bf16.mxu1 %v5281_v17 }
 0x379   :  { %v3111_v42 = vpop.f32.mrf.mxu1 }
 0x37a   :  { %v3330_v26 = vadd.f32 %v3313_v48, %v3126_v43  ;;  %v3325_v48 = vadd.f32 %v6890_v19, %v3121_v22  ;;  %v4762_v19 = vld [vmem:[%s7135_s4] ss:$0 sm:$0xff]  ;;  %s5283_s4 = smov 112   ;;  %v5248_v43 = vld [vmem:[%s7134_s5 + $0xd8] sm:$0xff]   ;;  %v5255_v22 = vld [vmem:[%s7134_s5 + $0x90] sm:$0xff]  }
 0x37b   :  { %v3114_v29 = vpop.f32.mrf.mxu1 }
 0x37c   :  { %v3127_v59 = vadd.f32 %v3114_v29, %v2919_v36  ;;  %v5250_v29 = vld [vmem:[%s7134_s5 + $0xd0] sm:$0xff]  }
 0x37d   :  { %v3116_v1 = vpop.f32.mrf.mxu1 }
 0x37e   :  { %v3331_v35 = vadd.f32 %v3318_v45, %v3127_v59  ;;  %v3327_v45 = vadd.f32 %v6898_v40, %v3123_v58 }
 0x37f   :  { %v3117_v13 = vpop.f32.mrf.mxu1 }
 0x380   :  { %v3128_v53 = vadd.f32 %v3117_v13, %v2922_v47  ;;  %v5252_v13 = vld [vmem:[%s7134_s5 + $0xc8] sm:$0xff]  }
 0x381   :  { %v3119_v20 = vpop.f32.mrf.mxu1 }
 0x382   :  { %v3332_v52 = vadd.f32 %v3321_v0, %v3128_v53  ;;  %v5253_v20 = vld [vmem:[%s7134_s5 + $0x98] sm:$0xff]  }
 0x387   :  { %v3498_v14 = vpop.f32.mrf.mxu1 }
 0x388   :  { %v3529_v9 = vadd.f32 %v3498_v14, %v3325_v48  ;;  %v5258_v14 = vld [vmem:[%s7134_s5 + $0xb0] sm:$0xff]  }
 0x389   :  { %v3500_v51 = vpop.f32.mrf.mxu1 }
 0x38a   :  { %v3544_v46 = vadd.f32 %v4762_v19, %v3529_v9  ;;  %v5259_v51 = vld [vmem:[%s7134_s5 + $0x80] sm:$0xff]  }
 0x38b   :  { %v3501_v2 = vpop.f32.mrf.mxu1 }
 0x38c   :  { %v3530_v33 = vadd.f32 %v3501_v2, %v3326_v6 }
 0x38d   :  { %v3503_v54 = vpop.f32.mrf.mxu1 }
 0x38e   :  { %v3545_v18 = vadd.f32 %v4762_v19, %v3530_v33  ;;  %v5262_v33 = vld [vmem:[%s7134_s5 + $0x70] sm:$0xff]  }
 0x38f   :  { %v3506_v27 = vpop.f32.mrf.mxu1 }
 0x390   :  { %v3563_v38 = vmax.f32 %v3544_v46, %v3545_v18  ;;  %v3531_v28 = vadd.f32 %v3506_v27, %v3327_v45  ;;  %v5263_v46 = vld [vmem:[%s7136_s7 + $0x38] sm:$0xff]   ;;  %v5264_v18 = vld [vmem:[%s7136_s7 + $0x30] sm:$0xff]   ;;  %v5266_v27 = vld [vmem:[%s7136_s7 + $0x20] sm:$0xff]  }
 0x391   :  { %v3508_v60 = vpop.f32.mrf.mxu1  ;;  %v5267_v45 = vld [vmem:[%s7136_s7 + $0x18] sm:$0xff]  }
 0x392   :  { %3565 = vrot.lane.b32.xlu1 %v3563_v38, %s5283_s4  ;;  %v3546_v15 = vadd.f32 %v4762_v19, %v3531_v28  ;;  %v5269_v60 = vld [vmem:[%s7136_s7 + $0x8] sm:$0xff]   ;;  %v5270_v28 = vld [vmem:[%s7136_s7] sm:$0xff]  }
 0x393   :  { %v3509_v3 = vpop.f32.mrf.mxu1 }
 0x394   :  { %v3532_v12 = vadd.f32 %v3509_v3, %v3328_v56  ;;  %v5271_v56 = vld [vmem:[%s7137_s9 + $0x38] sm:$0xff]   ;;  %v5272_v3 = vld [vmem:[%s7137_s9 + $0x30] sm:$0xff]  }
 0x395   :  { %v3511_v0 = vpop.f32.mrf.mxu1 }
 0x396   :  { %v3547_v63 = vadd.f32 %v4762_v19, %v3532_v12  ;;  %v5273_v12 = vld [vmem:[%s7137_s9 + $0x28] sm:$0xff]   ;;  %v5274_v0 = vld [vmem:[%s7137_s9 + $0x20] sm:$0xff]  }
 0x397   :  { %v3514_v21 = vpop.f32.mrf.mxu1 }
 0x398   :  { %v3589_v7 = vmax.f32 %v3546_v15, %v3547_v63  ;;  %v3533_v25 = vadd.f32 %v3514_v21, %v3329_v50  ;;  %v5275_v15 = vld [vmem:[%s7137_s9 + $0x18] sm:$0xff]   ;;  %v5276_v63 = vld [vmem:[%s7137_s9 + $0x10] sm:$0xff]  }
 0x399   :  { %v3516_v36 = vpop.f32.mrf.mxu1 }
 0x39a   :  { %3591 = vrot.lane.b32.xlu0 %v3589_v7, %s5283_s4  ;;  %v3548_v16 = vadd.f32 %v4762_v19, %v3533_v25 }
 0x39b   :  { %v3517_v40 = vpop.f32.mrf.mxu1 }
 0x39c   :  { %v3534_v11 = vadd.f32 %v3517_v40, %v3330_v26 }
 0x39d   :  { %v3519_v47 = vpop.f32.mrf.mxu1 }
 0x39e   :  { %v3549_v49 = vadd.f32 %v4762_v19, %v3534_v11 }
 0x39f   :  { %v3522_v41 = vpop.f32.mrf.mxu1 }
 0x3a0   :  { %v6984_v10 = vmax.f32 %v3548_v16, %v3549_v49  ;;  %v3535_v37 = vadd.f32 %v3522_v41, %v3331_v35  ;;  %v5251_v35 = vld [vmem:[%s7134_s5 + $0xa0] sm:$0xff]  }
 0x3a1   :  { %v3524_v24 = vpop.f32.mrf.mxu1 }
 0x3a2   :  { %3789 = vrot.lane.b32.xlu0 %v6984_v10, %s5283_s4  ;;  %v3550_v55 = vadd.f32 %v4762_v19, %v3535_v37 }
 0x3a3   :  { %v3525_v32 = vpop.f32.mrf.mxu1 }
 0x3a4   :  { %v3536_v61 = vadd.f32 %v3525_v32, %v3332_v52  ;;  %v5254_v52 = vld [vmem:[%s7134_s5 + $0xc0] sm:$0xff]  }
 0x3a5   :  { %v3527_v62 = vpop.f32.mrf.mxu1 }
 0x3a6   :  { %v3551_v30 = vadd.f32 %v4762_v19, %v3536_v61  ;;  %v5261_v19 = vld [vmem:[%s7134_s5 + $0x78] sm:$0xff]   ;;  %v4837_v62 = vld [vmem:[%s7138_s6] ss:$0 sm:$0xff] }
 0x3a8   :  { %v3900_v57 = vmax.f32 %v3550_v55, %v3551_v30 }
 0x3aa   :  { %3902 = vrot.lane.b32.xlu1 %v3900_v57, %s5283_s4 }
 0x404   :  { %v3566_v5 = vpop.permute.xlu1 %3565 }
 0x405   :  { %v3568_v50 = vmax.f32 %v3563_v38, %v3566_v5  ;;  %v5268_v38 = vld [vmem:[%s7136_s7 + $0x10] sm:$0xff]  }
 0x407   :  { %v3569_v23 = vmax.f32 %v3568_v50, 0.0 }
 0x409   :  { %v3570_v42 = vpack.c.bf16 %v3569_v23, %v3569_v23 }
 0x40b   :  { %4951 = vmatmul.mubr.msk.bf16.vlgmr.msra.gmra.mxu1 %vm3654_vm9, %v3570_v42  ;;  %v5277_v42 = vld [vmem:[%s7137_s9 + $0x8] sm:$0xff]  }
 0x40c   :  { %4973 = vmatpush3.bf16.msra.mxu1 %v5248_v43  ;;  %v3592_v26 = vpop.permute.xlu0 %3591  ;;  %4986 = vmatprep.mubr.msk.bf16.mxu1 %vm5282_vm8, %v5281_v17 }
 0x40d   :  { %v3594_v59 = vmax.f32 %v3589_v7, %v3592_v26  ;;  %4974 = vmatprep.subr.bf16.mxu1 %v5281_v17  ;;  %v5278_v26 = vld [vmem:[%s7137_s9] sm:$0xff]  }
 0x40f   :  { %v3595_v1 = vmax.f32 %v3594_v59, 0.0 }
 0x410   :  { %4975 = vmatpush3.bf16.msra.mxu1 %v5250_v29  ;;  %v4838_v29 = vld [vmem:[%s7139_s8] ss:$0 sm:$0xff] }
 0x411   :  { %v3596_v53 = vpack.c.bf16 %v3595_v1, %v3595_v1  ;;  %4976 = vmatprep.subr.bf16.mxu1 %v5281_v17 }
 0x413   :  { %4933 = vmatmul.mubr.msk.bf16.vlgmr.msra.gmra.mxu0 %vm3654_vm9, %v3596_v53 }
 0x414   :  { %4955 = vmatpush3.bf16.msra.mxu0 %v5251_v35  ;;  %4977 = vmatpush3.bf16.msra.mxu1 %v5252_v13  ;;  %v3790_v6 = vpop.permute.xlu0 %3789 }
 0x415   :  { %4956 = vmatprep.subr.bf16.mxu0 %v5281_v17  ;;  %4978 = vmatprep.subr.bf16.mxu1 %v5281_v17  ;;  %v3792_v2 = vmax.f32 %v6984_v10, %v3790_v6 }
 0x416   :  { %4968 = vmatprep.mubr.msk.bf16.mxu0 %vm5282_vm8, %v5281_v17 }
 0x417   :  { %v3793_v54 = vmax.f32 %v3792_v2, 0.0 }
 0x418   :  { %4957 = vmatpush3.bf16.msra.mxu0 %v5253_v20  ;;  %4979 = vmatpush3.bf16.msra.mxu1 %v5254_v52 }
 0x419   :  { %4958 = vmatprep.subr.bf16.mxu0 %v5281_v17  ;;  %4980 = vmatprep.subr.bf16.mxu1 %v5281_v17  ;;  %v3794_v39 = vpack.c.bf16 %v3793_v54, %v3793_v54 }
 0x41c   :  { %4959 = vmatpush3.bf16.msra.mxu0 %v5255_v22  ;;  %4981 = vmatpush3.bf16.msra.mxu1 %v5256_v8  ;;  %v3903_v34 = vpop.permute.xlu1 %3902 }
 0x41d   :  { %v3905_v48 = vmax.f32 %v3900_v57, %v3903_v34  ;;  %4960 = vmatprep.subr.bf16.mxu0 %v5281_v17  ;;  %4982 = vmatprep.subr.bf16.mxu1 %v5281_v17 }
 0x41f   :  { %v3906_v9 = vmax.f32 %v3905_v48, 0.0 }
 0x420   :  { %4961 = vmatpush3.bf16.msra.mxu0 %v5257_v4  ;;  %4983 = vmatpush3.bf16.msra.mxu1 %v5258_v14 }
 0x421   :  { %4962 = vmatprep.subr.bf16.mxu0 %v5281_v17  ;;  %4984 = vmatprep.subr.bf16.mxu1 %v5281_v17  ;;  %v3907_v58 = vpack.c.bf16 %v3906_v9, %v3906_v9 }
 0x424   :  { %4963 = vmatpush3.bf16.msra.mxu0 %v5259_v51  ;;  %4985 = vmatpush3.bf16.msra.mxu1 %v5260_v31 }
 0x425   :  { %4964 = vmatprep.subr.bf16.mxu0 %v5281_v17  ;;  %5010 = vmatprep.subr.bf16.mxu1 %v5281_v17 }
 0x427   :  { %4987 = vmatmul.mubr.msk.bf16.vlgmr.msra.gmra.mxu1 %vm3654_vm9, %v3907_v58 }
 0x428   :  { %4965 = vmatpush3.bf16.msra.mxu0 %v5261_v19  ;;  %5026 = vmatprep.mubr.msk.bf16.mxu1 %vm5282_vm8, %v5281_v17 }
 0x429   :  { %4966 = vmatprep.subr.bf16.mxu0 %v5281_v17  ;;  %5011 = vmatpush3.bf16.msra.mxu1 %v5271_v56 }
 0x42a   :  { %5012 = vmatprep.subr.bf16.mxu1 %v5281_v17 }
 0x42c   :  { %4967 = vmatpush3.bf16.msra.mxu0 %v5262_v33 }
 0x42d   :  { %4990 = vmatprep.subr.bf16.mxu0 %v5281_v17  ;;  %5013 = vmatpush3.bf16.msra.mxu1 %v5272_v3 }
 0x42e   :  { %5014 = vmatprep.subr.bf16.mxu1 %v5281_v17 }
 0x42f   :  { %4969 = vmatmul.mubr.msk.bf16.vlgmr.msra.gmra.mxu0 %vm3654_vm9, %v3794_v39 }
 0x430   :  { %5006 = vmatprep.mubr.msk.bf16.mxu0 %vm5282_vm8, %v5281_v17  ;;  %4991 = vmatpush3.bf16.msra.mxu0 %v5263_v46 }
 0x431   :  { %4992 = vmatprep.subr.bf16.mxu0 %v5281_v17  ;;  %5015 = vmatpush3.bf16.msra.mxu1 %v5273_v12 }
 0x432   :  { %5016 = vmatprep.subr.bf16.mxu1 %v5281_v17 }
 0x434   :  { %4993 = vmatpush3.bf16.msra.mxu0 %v5264_v18 }
 0x435   :  { %4994 = vmatprep.subr.bf16.mxu0 %v5281_v17  ;;  %5017 = vmatpush3.bf16.msra.mxu1 %v5274_v0 }
 0x436   :  { %5018 = vmatprep.subr.bf16.mxu1 %v5281_v17 }
 0x438   :  { %4995 = vmatpush3.bf16.msra.mxu0 %v5265_v44 }
 0x439   :  { %4996 = vmatprep.subr.bf16.mxu0 %v5281_v17  ;;  %5019 = vmatpush3.bf16.msra.mxu1 %v5275_v15 }
 0x43a   :  { %5020 = vmatprep.subr.bf16.mxu1 %v5281_v17 }
 0x43c   :  { %4997 = vmatpush3.bf16.msra.mxu0 %v5266_v27 }
 0x43d   :  { %4998 = vmatprep.subr.bf16.mxu0 %v5281_v17  ;;  %5021 = vmatpush3.bf16.msra.mxu1 %v5276_v63 }
 0x43e   :  { %5022 = vmatprep.subr.bf16.mxu1 %v5281_v17 }
 0x440   :  { %4999 = vmatpush3.bf16.msra.mxu0 %v5267_v45 }
 0x441   :  { %5000 = vmatprep.subr.bf16.mxu0 %v5281_v17  ;;  %5023 = vmatpush3.bf16.msra.mxu1 %v5277_v42 }
 0x442   :  { %5024 = vmatprep.subr.bf16.mxu1 %v5281_v17 }
 0x444   :  { %5001 = vmatpush3.bf16.msra.mxu0 %v5268_v38 }
 0x445   :  { %5002 = vmatprep.subr.bf16.mxu0 %v5281_v17  ;;  %5025 = vmatpush3.bf16.msra.mxu1 %v5278_v26 }
 0x448   :  { %5003 = vmatpush3.bf16.msra.mxu0 %v5269_v60 }
 0x449   :  { %5004 = vmatprep.subr.bf16.mxu0 %v5281_v17  ;;  %v4847_v17 = vld [vmem:[%s7140_s10] ss:$0 sm:$0xff] }
 0x44c   :  { %5005 = vmatpush3.bf16.msra.mxu0 %v5270_v28 }
 0x4cb   :  { %v3777_v21 = vpop.f32.mrf.mxu1 }
 0x4cd   :  { %v4952_v7 = vpop.f32.mrf.mxu1 }
 0x4cf   :  { %v3780_v36 = vpop.f32.mrf.mxu1 }
 0x4d1   :  { %v4953_v25 = vpop.f32.mrf.mxu1 }
 0x4d3   :  { %v3692_v40 = vpop.f32.mrf.mxu0 }
 0x4d4   :  { %v3778_v37 = vadd.f32 %v3777_v21, %v3692_v40 }
 0x4d5   :  { %v4934_v11 = vpop.f32.mrf.mxu0 }
 0x4d7   :  { %v3695_v47 = vpop.f32.mrf.mxu0 }
 0x4d9   :  { %v4935_v16 = vpop.f32.mrf.mxu0 }
 0x4e7   :  { %v4002_v49 = vpop.f32.mrf.mxu1 }
 0x4e9   :  { %v4988_v41 = vpop.f32.mrf.mxu1 }
 0x4eb   :  { %v4005_v10 = vpop.f32.mrf.mxu1 }
 0x4ed   :  { %v4989_v24 = vpop.f32.mrf.mxu1 }
 0x4ef   :  { %v3889_v32 = vpop.f32.mrf.mxu0 }
 0x4f0   :  { %v3895_v61 = vadd.f32 %v3889_v32, %v3778_v37 }
 0x4f1   :  { %v4970_v55 = vpop.f32.mrf.mxu0 }
 0x4f2   :  { %v4008_v30 = vadd.f32 %v4002_v49, %v3895_v61 }
 0x4f3   :  { %v3892_v57 = vpop.f32.mrf.mxu0 }
 0x4f4   :  { %v4016_v5 = vadd.f32 %v4837_v62, %v4008_v30 }
 0x4f5   :  { %v4971_v50 = vpop.f32.mrf.mxu0 }
 0x4f6   :  { %v4017_v23 = vmax.f32 %v4016_v5, 0.0 }
 0x4f8   :  { %v4018_v43 = vpack.c.bf16 %v4017_v23, %v4017_v23 }
 0x4fa   :  { %5007 = vmatmul.mubr.bf16.vlgmr.msra.gmra.mxu0 %v4018_v43 }
 0x5ba   :  { %v4124_v59 = vpop.f32.mrf.mxu0 }
 0x5bb   :  { %v4125_v1 = vadd.f32 %v4838_v29, %v4124_v59 }
 0x5bc   :  { %v5008_v35 = vpop.f32.mrf.mxu0 }
 0x5bd   :  { %v4130_v13 = vmax.f32 %v4125_v1, 0.0 }
 0x5be   :  { %v4127_v53 = vpop.f32.mrf.mxu0 }
 0x5bf   :  { %v4131_v20 = vpack.c.bf16 %v4130_v13, %v4130_v13 }
 0x5c0   :  { %v5009_v52 = vpop.f32.mrf.mxu0 }
 0x5c1   :  { %5027 = vmatmul.mubr.bf16.vlgmr.msra.gmra.mxu1 %v4131_v20 }
 0x681   :  { %v4237_v22 = vpop.f32.mrf.mxu1 }
 0x682   :  { %v4238_v8 = vadd.f32 %v4847_v17, %v4237_v22 }
 0x683   :  { %v5028_v34 = vpop.f32.mrf.mxu1 }
 0x684   :  { %4243 = vst [vmem:[%s7141_s11] sm:$0xff] %v4238_v8 }
 0x685   :  { %v4240_v4 = vpop.f32.mrf.mxu1 }
 0x687   :  { %v5029_v14 = vpop.f32.mrf.mxu1 }

</bundles_post_ra>
